<compile_context>
chip_gen: v7x
topology: tpu7x:2x2x1
jax: 0.10.0
libtpu: 0.0.40
codegen_flags: <defaults>
</compile_context>

<pallas_src>
import jax
import jax.numpy as jnp
import numpy as np
from jax.experimental import pallas as pl
from jax.experimental.pallas import tpu as pltpu

BN_EPS = 1e-5

H1 = 14            # conv1 output spatial size (28x28 -> 14x14)
HP = H1 + 2        # zero-padded spatial size feeding conv2 (pad=1)
H2 = 7             # conv2 output spatial size
C1 = 32            # conv1 output channels
C2P = 128          # conv2 output channels, padded 64 -> 128 (full lane width)
NPOS = H2 * H2     # 49 spatial positions seen by the 7x7 heads


# ------------------------------ Pallas kernel ------------------------------ #

def fused_disc_kernel(p1_ref, w1_ref, b1_ref, w2_ref, b2_ref, g_ref, be_ref,
                      wh_ref, bh_ref, head_ref, h1p_ref):
    """conv1+ReLU -> in-VMEM im2col -> conv2+BN+ReLU -> both 7x7 heads."""
    n = head_ref.shape[0]

    # ---- conv1 (im2col matmul) + bias + ReLU -------------------------------
    h1 = jnp.dot(p1_ref[...], w1_ref[...], preferred_element_type=jnp.float32)
    h1 = jnp.maximum(h1 + b1_ref[...], 0.0)                       # (N*196, 32) f32

    # ---- h1 into a zero-padded VMEM scratch (pad=1 around the 14x14 map) ---
    h1p_ref[...] = jnp.zeros(h1p_ref.shape, h1p_ref.dtype)
    h1p_ref[:, 1:1 + H1, 1:1 + H1, :] = h1.reshape(n, H1, H1, C1)

    # ---- conv2 stride-2 4x4 im2col: 16 static strided window reads ---------
    taps = []
    for ki in range(4):                                           # static 4x4 taps
        for kj in range(4):
            taps.append(h1p_ref[:, pl.ds(ki, H2, stride=2),
                                pl.ds(kj, H2, stride=2), :])      # (N, 7, 7, 32)
    p2 = jnp.concatenate(taps, axis=-1)                           # (N, 7, 7, 512)
    p2 = p2.reshape(n * NPOS, 16 * C1).astype(jnp.bfloat16)       # rows (n, oi, oj)

    # ---- conv2 + bias + BatchNorm (training batch stats) + ReLU ------------
    acc = jnp.dot(p2, w2_ref[...], preferred_element_type=jnp.float32)
    acc = acc + b2_ref[...]                                       # (N*49, 128) f32
    inv_rows = 1.0 / (n * NPOS)                                   # true row count
    mean = jnp.sum(acc, axis=0, keepdims=True) * inv_rows
    var = jnp.sum(acc * acc, axis=0, keepdims=True) * inv_rows - mean * mean
    var = jnp.maximum(var, 0.0)                                   # guard cancellation
    h2 = (acc - mean) * jax.lax.rsqrt(var + BN_EPS)               # rsqrt -> EUP
    h2 = jnp.maximum(h2 * g_ref[...] + be_ref[...], 0.0).astype(jnp.bfloat16)

    # ---- both 7x7 heads as ONE deep-K matmul: (N, 49*128) @ (49*128, 128) --
    h2_flat = h2.reshape(n, NPOS * C2P)
    head = jnp.dot(h2_flat, wh_ref[...], preferred_element_type=jnp.float32)
    head_ref[...] = head + bh_ref[...]                            # lane-dense (N, 128)


# ------------------------------- JAX wrapper -------------------------------- #

def im2col_nhwc(x, kh, kw, stride, pad):
    """NHWC -> (N*Ho*Wo, C*kh*kw) patches; rows (n, oi, oj), cols (C, kh, kw)."""
    N, H, W, C = x.shape
    xp = jnp.pad(x, ((0, 0), (pad, pad), (pad, pad), (0, 0)))
    Ho = (H + 2 * pad - kh) // stride + 1
    Wo = (W + 2 * pad - kw) // stride + 1
    taps = []
    for i in range(kh):
        for j in range(kw):
            taps.append(xp[:, i:i + stride * Ho:stride, j:j + stride * Wo:stride, :])
    p = jnp.stack(taps, axis=0).reshape(kh, kw, N, Ho, Wo, C)
    p = p.transpose(2, 3, 4, 5, 0, 1)                 # (N, Ho, Wo, C, kh, kw)
    return p.reshape(N * Ho * Wo, C * kh * kw), Ho, Wo


def init_params(key):
    ks = jax.random.split(key, 8)
    s = 0.05
    return {
        "w1": jax.random.normal(ks[0], (32, 1, 4, 4), jnp.float32) * s,
        "b1": jax.random.normal(ks[1], (32,), jnp.float32) * s,
        "w2": jax.random.normal(ks[2], (64, 32, 4, 4), jnp.float32) * s,
        "b2": jax.random.normal(ks[3], (64,), jnp.float32) * s,
        "gamma": jnp.ones((64,), jnp.float32),
        "beta": jnp.zeros((64,), jnp.float32),
        "w_adv": jax.random.normal(ks[4], (2, 64, 7, 7), jnp.float32) * s,
        "b_adv": jax.random.normal(ks[5], (2,), jnp.float32) * s,
        "w_cls": jax.random.normal(ks[6], (10, 64, 7, 7), jnp.float32) * s,
        "b_cls": jax.random.normal(ks[7], (10,), jnp.float32) * s,
    }


def discriminator_forward(x, params):
    N = x.shape[0]
    xh = jnp.transpose(x, (0, 2, 3, 1)).astype(jnp.bfloat16)      # NCHW -> NHWC

    # conv1 im2col on the raw input stays in XLA (tiny: the input must be read
    # from HBM anyway and has only 1 channel).
    # TODO(synk): fold this gather into the kernel too if input-path glue ever
    # shows up in profiles.
    p1, _, _ = im2col_nhwc(xh, 4, 4, 2, 1)                        # (N*196, 16) bf16
    w1 = params["w1"].reshape(C1, -1).T.astype(jnp.bfloat16)      # (16, 32)
    b1 = params["b1"][None, :]

    # conv2 weights re-laid-out to the kernel's (ki, kj, ci) patch order,
    # output channels zero-padded to 128 lanes.
    w2 = params["w2"].transpose(2, 3, 1, 0).reshape(16 * C1, 64)
    w2 = jnp.pad(w2, ((0, 0), (0, C2P - 64))).astype(jnp.bfloat16)        # (512, 128)
    b2 = jnp.pad(params["b2"], (0, C2P - 64))[None, :]
    gamma = jnp.concatenate([params["gamma"],
                             jnp.ones((C2P - 64,), jnp.float32)])[None, :]
    beta = jnp.pad(params["beta"], (0, C2P - 64))[None, :]

    # Both head weights as one (49*128, 128) matrix matching the in-kernel
    # (N, 49*128) flattening of h2; the 12 real logits are padded to 128 lanes.
    wh = jnp.concatenate([params["w_adv"], params["w_cls"]], axis=0)      # (12,64,7,7)
    wh = wh.transpose(2, 3, 1, 0)                                         # (7,7,64,12)
    wh = jnp.pad(wh, ((0, 0), (0, 0), (0, C2P - 64), (0, 128 - 12)))
    wh = wh.reshape(NPOS * C2P, 128).astype(jnp.bfloat16)                 # (6272, 128)
    bh = jnp.pad(jnp.concatenate([params["b_adv"], params["b_cls"]]),
                 (0, 128 - 12))[None, :]                                  # (1, 128)

    args = (p1, w1, b1, w2, b2, gamma, beta, wh, bh)

    # Single-block launch: every operand is one whole-array VMEM tile (< ~2 MiB
    # total at small batch).  For large batches, add a leading grid axis over
    # rows marked "parallel" (uses the 2nd TensorCore on v7x) and split BN into
    # a two-pass partial-sum / finalize reduction so batch stats stay correct.
    head = pl.pallas_call(
        fused_disc_kernel,
        out_shape=jax.ShapeDtypeStruct((N, 128), jnp.float32),
        grid=(1,),
        in_specs=[pl.BlockSpec(a.shape, lambda i, nd=a.ndim: (0,) * nd) for a in args],
        out_specs=pl.BlockSpec((N, 128), lambda i: (0, 0)),
        scratch_shapes=[pltpu.VMEM((N, HP, HP, C1), jnp.float32)],
        compiler_params=pltpu.CompilerParams(
            dimension_semantics=("arbitrary",),
            vmem_limit_bytes=32 * 1024 * 1024),
    )(*args)

    adv = jnp.squeeze(head[:, :2])     # mirrors torch .squeeze() on (N, 2, 1, 1)
    cls = jnp.squeeze(head[:, 2:12])   # mirrors torch .squeeze() on (N, 10, 1, 1)
    return adv, cls


# ----------------------- plain-JAX reference (check) ----------------------- #

def reference_forward(x, p):
    def conv2d(x, w, b, stride, pad):
        out = jax.lax.conv_general_dilated(
            x, w, (stride, stride), [(pad, pad), (pad, pad)],
            dimension_numbers=("NCHW", "OIHW", "NCHW"),
            precision=jax.lax.Precision.HIGHEST)
        return out + b[None, :, None, None]

    h = jnp.maximum(conv2d(x, p["w1"], p["b1"], 2, 1), 0.0)
    h2 = conv2d(h, p["w2"], p["b2"], 2, 1)
    mean = h2.mean(axis=(0, 2, 3), keepdims=True)
    var = jnp.square(h2 - mean).mean(axis=(0, 2, 3), keepdims=True)
    h2 = (h2 - mean) * jax.lax.rsqrt(var + BN_EPS)
    h2 = h2 * p["gamma"][None, :, None, None] + p["beta"][None, :, None, None]
    h2 = jnp.maximum(h2, 0.0)
    adv = jnp.squeeze(conv2d(h2, p["w_adv"], p["b_adv"], 1, 0))
    cls = jnp.squeeze(conv2d(h2, p["w_cls"], p["b_cls"], 1, 0))
    return adv, cls


# --------------------------------- main ------------------------------------ #

if __name__ == "__main__":
    key = jax.random.PRNGKey(0)
    kx, kp = jax.random.split(key)
    # MNIST-sized input implied by the 7x7 heads: (N, 1, 28, 28)
    x = jax.random.normal(kx, (2, 1, 28, 28), jnp.float32)
    params = init_params(kp)

    adv, cls = jax.jit(discriminator_forward)(x, params)
    adv, cls = jax.block_until_ready((adv, cls))

    adv_ref, cls_ref = reference_forward(x, params)
    assert adv.shape == (2, 2) and cls.shape == (2, 10)
    # bf16 MXU operands (f32 accumulation) vs an all-f32 reference.
    np.testing.assert_allclose(np.asarray(adv), np.asarray(adv_ref), rtol=3e-2, atol=3e-2)
    np.testing.assert_allclose(np.asarray(cls), np.asarray(cls_ref), rtol=3e-2, atol=3e-2)

    print("KERNEL_OK")
</pallas_src>

<mosaic_0001>
module attributes {stable_mosaic.version = 11 : i64} {
  func.func @fused_disc_kernel(%arg0: i32, %arg1: memref<392x16xbf16, #tpu.memory_space<vmem>>, %arg2: memref<16x32xbf16, #tpu.memory_space<vmem>>, %arg3: memref<1x32xf32, #tpu.memory_space<vmem>>, %arg4: memref<512x128xbf16, #tpu.memory_space<vmem>>, %arg5: memref<1x128xf32, #tpu.memory_space<vmem>>, %arg6: memref<1x128xf32, #tpu.memory_space<vmem>>, %arg7: memref<1x128xf32, #tpu.memory_space<vmem>>, %arg8: memref<6272x128xbf16, #tpu.memory_space<vmem>>, %arg9: memref<1x128xf32, #tpu.memory_space<vmem>>, %arg10: memref<2x128xf32, #tpu.memory_space<vmem>>, %arg11: memref<2x16x16x32xf32, #tpu.memory_space<vmem>>) attributes {dimension_semantics = [#tpu.dimension_semantics<arbitrary>], iteration_bounds = array<i64: 1>, scalar_prefetch = 0 : i64, scratch_operands = 1 : i64, tpu.core_type = #tpu.core_type<tc>, window_params = [{pipeline_mode = #tpu.pipeline_mode<synchronous>, transform_indices = @transform_0, window_bounds = array<i64: 392, 16>}, {pipeline_mode = #tpu.pipeline_mode<synchronous>, transform_indices = @transform_1, window_bounds = array<i64: 16, 32>}, {pipeline_mode = #tpu.pipeline_mode<synchronous>, transform_indices = @transform_2, window_bounds = array<i64: 1, 32>}, {pipeline_mode = #tpu.pipeline_mode<synchronous>, transform_indices = @transform_3, window_bounds = array<i64: 512, 128>}, {pipeline_mode = #tpu.pipeline_mode<synchronous>, transform_indices = @transform_4, window_bounds = array<i64: 1, 128>}, {pipeline_mode = #tpu.pipeline_mode<synchronous>, transform_indices = @transform_5, window_bounds = array<i64: 1, 128>}, {pipeline_mode = #tpu.pipeline_mode<synchronous>, transform_indices = @transform_6, window_bounds = array<i64: 1, 128>}, {pipeline_mode = #tpu.pipeline_mode<synchronous>, transform_indices = @transform_7, window_bounds = array<i64: 6272, 128>}, {pipeline_mode = #tpu.pipeline_mode<synchronous>, transform_indices = @transform_8, window_bounds = array<i64: 1, 128>}, {pipeline_mode = #tpu.pipeline_mode<synchronous>, transform_indices = @transform_9, window_bounds = array<i64: 2, 128>}]} {
    %c0 = arith.constant 0 : index
    %c0_0 = arith.constant 0 : index
    %0 = vector.load %arg1[%c0, %c0_0] : memref<392x16xbf16, #tpu.memory_space<vmem>>, vector<392x16xbf16>
    %c0_1 = arith.constant 0 : index
    %c0_2 = arith.constant 0 : index
    %1 = vector.load %arg2[%c0_1, %c0_2] : memref<16x32xbf16, #tpu.memory_space<vmem>>, vector<16x32xbf16>
    %cst = arith.constant dense<0.000000e+00> : vector<392x32xf32>
    %2 = tpu.matmul %0, %1, %cst {dimension_numbers = #tpu.dot_dimension_numbers<[1], [0], [0], [1], [0, 0, 1, 1], [], []>} : vector<392x16xbf16>, vector<16x32xbf16>, vector<392x32xf32> -> vector<392x32xf32>
    %c0_3 = arith.constant 0 : index
    %c0_4 = arith.constant 0 : index
    %3 = vector.load %arg3[%c0_3, %c0_4] : memref<1x32xf32, #tpu.memory_space<vmem>>, vector<1x32xf32>
    %4 = vector.broadcast %3 : vector<1x32xf32> to vector<392x32xf32>
    %5 = arith.addf %2, %4 : vector<392x32xf32>
    %cst_5 = arith.constant 0.000000e+00 : f32
    %6 = vector.broadcast %cst_5 : f32 to vector<392x32xf32>
    %7 = arith.maximumf %5, %6 : vector<392x32xf32>
    %cst_6 = arith.constant 0.000000e+00 : f32
    %8 = vector.broadcast %cst_6 : f32 to vector<2x16x16x32xf32>
    %c0_7 = arith.constant 0 : index
    %c0_8 = arith.constant 0 : index
    %c0_9 = arith.constant 0 : index
    %c0_10 = arith.constant 0 : index
    %9 = vector.load %arg11[%c0_7, %c0_8, %c0_9, %c0_10] : memref<2x16x16x32xf32, #tpu.memory_space<vmem>>, vector<2x16x16x32xf32>
    tpu.vector_store %arg11[%c0_7, %c0_8, %c0_9, %c0_10], %8 {strides = array<i32>} : memref<2x16x16x32xf32, #tpu.memory_space<vmem>>, vector<2x16x16x32xf32>,
    %10 = vector.shape_cast %7 : vector<392x32xf32> to vector<2x14x14x32xf32>
    %c0_11 = arith.constant 0 : index
    %c1 = arith.constant 1 : index
    %c1_12 = arith.constant 1 : index
    %c0_13 = arith.constant 0 : index
    %11 = vector.load %arg11[%c0_11, %c1, %c1_12, %c0_13] : memref<2x16x16x32xf32, #tpu.memory_space<vmem>>, vector<2x14x14x32xf32>
    tpu.vector_store %arg11[%c0_11, %c1, %c1_12, %c0_13], %10 {strides = array<i32>} : memref<2x16x16x32xf32, #tpu.memory_space<vmem>>, vector<2x14x14x32xf32>,
    %c0_14 = arith.constant 0 : index
    %c0_15 = arith.constant 0 : index
    %c0_16 = arith.constant 0 : index
    %c0_17 = arith.constant 0 : index
    %12 = tpu.strided_load %arg11[%c0_14, %c0_15, %c0_16, %c0_17] {strides = array<i32: 1, 2, 2, 1>} : memref<2x16x16x32xf32, #tpu.memory_space<vmem>>, vector<2x7x7x32xf32>
    %c0_18 = arith.constant 0 : index
    %c0_19 = arith.constant 0 : index
    %c1_20 = arith.constant 1 : index
    %c0_21 = arith.constant 0 : index
    %13 = tpu.strided_load %arg11[%c0_18, %c0_19, %c1_20, %c0_21] {strides = array<i32: 1, 2, 2, 1>} : memref<2x16x16x32xf32, #tpu.memory_space<vmem>>, vector<2x7x7x32xf32>
    %c0_22 = arith.constant 0 : index
    %c0_23 = arith.constant 0 : index
    %c2 = arith.constant 2 : index
    %c0_24 = arith.constant 0 : index
    %14 = tpu.strided_load %arg11[%c0_22, %c0_23, %c2, %c0_24] {strides = array<i32: 1, 2, 2, 1>} : memref<2x16x16x32xf32, #tpu.memory_space<vmem>>, vector<2x7x7x32xf32>
    %c0_25 = arith.constant 0 : index
    %c0_26 = arith.constant 0 : index
    %c3 = arith.constant 3 : index
    %c0_27 = arith.constant 0 : index
    %15 = tpu.strided_load %arg11[%c0_25, %c0_26, %c3, %c0_27] {strides = array<i32: 1, 2, 2, 1>} : memref<2x16x16x32xf32, #tpu.memory_space<vmem>>, vector<2x7x7x32xf32>
    %c0_28 = arith.constant 0 : index
    %c1_29 = arith.constant 1 : index
    %c0_30 = arith.constant 0 : index
    %c0_31 = arith.constant 0 : index
    %16 = tpu.strided_load %arg11[%c0_28, %c1_29, %c0_30, %c0_31] {strides = array<i32: 1, 2, 2, 1>} : memref<2x16x16x32xf32, #tpu.memory_space<vmem>>, vector<2x7x7x32xf32>
    %c0_32 = arith.constant 0 : index
    %c1_33 = arith.constant 1 : index
    %c1_34 = arith.constant 1 : index
    %c0_35 = arith.constant 0 : index
    %17 = tpu.strided_load %arg11[%c0_32, %c1_33, %c1_34, %c0_35] {strides = array<i32: 1, 2, 2, 1>} : memref<2x16x16x32xf32, #tpu.memory_space<vmem>>, vector<2x7x7x32xf32>
    %c0_36 = arith.constant 0 : index
    %c1_37 = arith.constant 1 : index
    %c2_38 = arith.constant 2 : index
    %c0_39 = arith.constant 0 : index
    %18 = tpu.strided_load %arg11[%c0_36, %c1_37, %c2_38, %c0_39] {strides = array<i32: 1, 2, 2, 1>} : memref<2x16x16x32xf32, #tpu.memory_space<vmem>>, vector<2x7x7x32xf32>
    %c0_40 = arith.constant 0 : index
    %c1_41 = arith.constant 1 : index
    %c3_42 = arith.constant 3 : index
    %c0_43 = arith.constant 0 : index
    %19 = tpu.strided_load %arg11[%c0_40, %c1_41, %c3_42, %c0_43] {strides = array<i32: 1, 2, 2, 1>} : memref<2x16x16x32xf32, #tpu.memory_space<vmem>>, vector<2x7x7x32xf32>
    %c0_44 = arith.constant 0 : index
    %c2_45 = arith.constant 2 : index
    %c0_46 = arith.constant 0 : index
    %c0_47 = arith.constant 0 : index
    %20 = tpu.strided_load %arg11[%c0_44, %c2_45, %c0_46, %c0_47] {strides = array<i32: 1, 2, 2, 1>} : memref<2x16x16x32xf32, #tpu.memory_space<vmem>>, vector<2x7x7x32xf32>
    %c0_48 = arith.constant 0 : index
    %c2_49 = arith.constant 2 : index
    %c1_50 = arith.constant 1 : index
    %c0_51 = arith.constant 0 : index
    %21 = tpu.strided_load %arg11[%c0_48, %c2_49, %c1_50, %c0_51] {strides = array<i32: 1, 2, 2, 1>} : memref<2x16x16x32xf32, #tpu.memory_space<vmem>>, vector<2x7x7x32xf32>
    %c0_52 = arith.constant 0 : index
    %c2_53 = arith.constant 2 : index
    %c2_54 = arith.constant 2 : index
    %c0_55 = arith.constant 0 : index
    %22 = tpu.strided_load %arg11[%c0_52, %c2_53, %c2_54, %c0_55] {strides = array<i32: 1, 2, 2, 1>} : memref<2x16x16x32xf32, #tpu.memory_space<vmem>>, vector<2x7x7x32xf32>
    %c0_56 = arith.constant 0 : index
    %c2_57 = arith.constant 2 : index
    %c3_58 = arith.constant 3 : index
    %c0_59 = arith.constant 0 : index
    %23 = tpu.strided_load %arg11[%c0_56, %c2_57, %c3_58, %c0_59] {strides = array<i32: 1, 2, 2, 1>} : memref<2x16x16x32xf32, #tpu.memory_space<vmem>>, vector<2x7x7x32xf32>
    %c0_60 = arith.constant 0 : index
    %c3_61 = arith.constant 3 : index
    %c0_62 = arith.constant 0 : index
    %c0_63 = arith.constant 0 : index
    %24 = tpu.strided_load %arg11[%c0_60, %c3_61, %c0_62, %c0_63] {strides = array<i32: 1, 2, 2, 1>} : memref<2x16x16x32xf32, #tpu.memory_space<vmem>>, vector<2x7x7x32xf32>
    %c0_64 = arith.constant 0 : index
    %c3_65 = arith.constant 3 : index
    %c1_66 = arith.constant 1 : index
    %c0_67 = arith.constant 0 : index
    %25 = tpu.strided_load %arg11[%c0_64, %c3_65, %c1_66, %c0_67] {strides = array<i32: 1, 2, 2, 1>} : memref<2x16x16x32xf32, #tpu.memory_space<vmem>>, vector<2x7x7x32xf32>
    %c0_68 = arith.constant 0 : index
    %c3_69 = arith.constant 3 : index
    %c2_70 = arith.constant 2 : index
    %c0_71 = arith.constant 0 : index
    %26 = tpu.strided_load %arg11[%c0_68, %c3_69, %c2_70, %c0_71] {strides = array<i32: 1, 2, 2, 1>} : memref<2x16x16x32xf32, #tpu.memory_space<vmem>>, vector<2x7x7x32xf32>
    %c0_72 = arith.constant 0 : index
    %c3_73 = arith.constant 3 : index
    %c3_74 = arith.constant 3 : index
    %c0_75 = arith.constant 0 : index
    %27 = tpu.strided_load %arg11[%c0_72, %c3_73, %c3_74, %c0_75] {strides = array<i32: 1, 2, 2, 1>} : memref<2x16x16x32xf32, #tpu.memory_space<vmem>>, vector<2x7x7x32xf32>
    %28 = tpu.concatenate %12, %13, %14, %15, %16, %17, %18, %19, %20, %21, %22, %23, %24, %25, %26, %27 in 3 : vector<2x7x7x32xf32>, vector<2x7x7x32xf32>, vector<2x7x7x32xf32>, vector<2x7x7x32xf32>, vector<2x7x7x32xf32>, vector<2x7x7x32xf32>, vector<2x7x7x32xf32>, vector<2x7x7x32xf32>, vector<2x7x7x32xf32>, vector<2x7x7x32xf32>, vector<2x7x7x32xf32>, vector<2x7x7x32xf32>, vector<2x7x7x32xf32>, vector<2x7x7x32xf32>, vector<2x7x7x32xf32>, vector<2x7x7x32xf32> -> vector<2x7x7x512xf32>
    %29 = vector.shape_cast %28 : vector<2x7x7x512xf32> to vector<98x512xf32>
    %30 = arith.truncf %29 : vector<98x512xf32> to vector<98x512xbf16>
    %c0_76 = arith.constant 0 : index
    %c0_77 = arith.constant 0 : index
    %31 = vector.load %arg4[%c0_76, %c0_77] : memref<512x128xbf16, #tpu.memory_space<vmem>>, vector<512x128xbf16>
    %cst_78 = arith.constant dense<0.000000e+00> : vector<98x128xf32>
    %32 = tpu.matmul %30, %31, %cst_78 {dimension_numbers = #tpu.dot_dimension_numbers<[1], [0], [0], [1], [0, 0, 1, 1], [], []>} : vector<98x512xbf16>, vector<512x128xbf16>, vector<98x128xf32> -> vector<98x128xf32>
    %c0_79 = arith.constant 0 : index
    %c0_80 = arith.constant 0 : index
    %33 = vector.load %arg5[%c0_79, %c0_80] : memref<1x128xf32, #tpu.memory_space<vmem>>, vector<1x128xf32>
    %34 = vector.broadcast %33 : vector<1x128xf32> to vector<98x128xf32>
    %35 = arith.addf %32, %34 : vector<98x128xf32>
    %cst_81 = arith.constant dense<0.000000e+00> : vector<128xf32>
    %36 = vector.multi_reduction <add>, %35, %cst_81 [0] : vector<98x128xf32> to vector<128xf32>
    %37 = vector.shape_cast %36 : vector<128xf32> to vector<1x128xf32>
    %cst_82 = arith.constant 0.0102040814 : f32
    %38 = vector.broadcast %cst_82 : f32 to vector<1x128xf32>
    %39 = arith.mulf %37, %38 : vector<1x128xf32>
    %40 = arith.mulf %35, %35 : vector<98x128xf32>
    %cst_83 = arith.constant dense<0.000000e+00> : vector<128xf32>
    %41 = vector.multi_reduction <add>, %40, %cst_83 [0] : vector<98x128xf32> to vector<128xf32>
    %42 = vector.shape_cast %41 : vector<128xf32> to vector<1x128xf32>
    %cst_84 = arith.constant 0.0102040814 : f32
    %43 = vector.broadcast %cst_84 : f32 to vector<1x128xf32>
    %44 = arith.mulf %42, %43 : vector<1x128xf32>
    %45 = arith.mulf %39, %39 : vector<1x128xf32>
    %46 = arith.subf %44, %45 : vector<1x128xf32>
    %cst_85 = arith.constant 0.000000e+00 : f32
    %47 = vector.broadcast %cst_85 : f32 to vector<1x128xf32>
    %48 = arith.maximumf %46, %47 : vector<1x128xf32>
    %49 = vector.broadcast %39 : vector<1x128xf32> to vector<98x128xf32>
    %50 = arith.subf %35, %49 : vector<98x128xf32>
    %cst_86 = arith.constant 9.99999974E-6 : f32
    %51 = vector.broadcast %cst_86 : f32 to vector<1x128xf32>
    %52 = arith.addf %48, %51 : vector<1x128xf32>
    %53 = math.rsqrt %52 : vector<1x128xf32>
    %54 = vector.broadcast %53 : vector<1x128xf32> to vector<98x128xf32>
    %55 = arith.mulf %50, %54 : vector<98x128xf32>
    %c0_87 = arith.constant 0 : index
    %c0_88 = arith.constant 0 : index
    %56 = vector.load %arg6[%c0_87, %c0_88] : memref<1x128xf32, #tpu.memory_space<vmem>>, vector<1x128xf32>
    %57 = vector.broadcast %56 : vector<1x128xf32> to vector<98x128xf32>
    %58 = arith.mulf %55, %57 : vector<98x128xf32>
    %c0_89 = arith.constant 0 : index
    %c0_90 = arith.constant 0 : index
    %59 = vector.load %arg7[%c0_89, %c0_90] : memref<1x128xf32, #tpu.memory_space<vmem>>, vector<1x128xf32>
    %60 = vector.broadcast %59 : vector<1x128xf32> to vector<98x128xf32>
    %61 = arith.addf %58, %60 : vector<98x128xf32>
    %cst_91 = arith.constant 0.000000e+00 : f32
    %62 = vector.broadcast %cst_91 : f32 to vector<98x128xf32>
    %63 = arith.maximumf %61, %62 : vector<98x128xf32>
    %64 = arith.truncf %63 : vector<98x128xf32> to vector<98x128xbf16>
    %65 = vector.shape_cast %64 : vector<98x128xbf16> to vector<2x6272xbf16>
    %c0_92 = arith.constant 0 : index
    %c0_93 = arith.constant 0 : index
    %66 = vector.load %arg8[%c0_92, %c0_93] : memref<6272x128xbf16, #tpu.memory_space<vmem>>, vector<6272x128xbf16>
    %cst_94 = arith.constant dense<0.000000e+00> : vector<2x128xf32>
    %67 = tpu.matmul %65, %66, %cst_94 {dimension_numbers = #tpu.dot_dimension_numbers<[1], [0], [0], [1], [0, 0, 1, 1], [], []>} : vector<2x6272xbf16>, vector<6272x128xbf16>, vector<2x128xf32> -> vector<2x128xf32>
    %c0_95 = arith.constant 0 : index
    %c0_96 = arith.constant 0 : index
    %68 = vector.load %arg9[%c0_95, %c0_96] : memref<1x128xf32, #tpu.memory_space<vmem>>, vector<1x128xf32>
    %69 = vector.broadcast %68 : vector<1x128xf32> to vector<2x128xf32>
    %70 = arith.addf %67, %69 : vector<2x128xf32>
    %c0_97 = arith.constant 0 : index
    %c0_98 = arith.constant 0 : index
    %71 = vector.load %arg10[%c0_97, %c0_98] : memref<2x128xf32, #tpu.memory_space<vmem>>, vector<2x128xf32>
    tpu.vector_store %arg10[%c0_97, %c0_98], %70 {strides = array<i32>} : memref<2x128xf32, #tpu.memory_space<vmem>>, vector<2x128xf32>,
    return
  }
  func.func @transform_0(%arg0: i32) -> (i32, i32) {
    %c0_i32 = arith.constant 0 : i32
    %c0_i32_0 = arith.constant 0 : i32
    %c0_i32_1 = arith.constant 0 : i32
    return %c0_i32, %c0_i32_0 : i32, i32
  }
  func.func @transform_1(%arg0: i32) -> (i32, i32) {
    %c0_i32 = arith.constant 0 : i32
    %c0_i32_0 = arith.constant 0 : i32
    %c0_i32_1 = arith.constant 0 : i32
    return %c0_i32, %c0_i32_0 : i32, i32
  }
  func.func @transform_2(%arg0: i32) -> (i32, i32) {
    %c0_i32 = arith.constant 0 : i32
    %c0_i32_0 = arith.constant 0 : i32
    %c0_i32_1 = arith.constant 0 : i32
    return %c0_i32, %c0_i32_0 : i32, i32
  }
  func.func @transform_3(%arg0: i32) -> (i32, i32) {
    %c0_i32 = arith.constant 0 : i32
    %c0_i32_0 = arith.constant 0 : i32
    %c0_i32_1 = arith.constant 0 : i32
    return %c0_i32, %c0_i32_0 : i32, i32
  }
  func.func @transform_4(%arg0: i32) -> (i32, i32) {
    %c0_i32 = arith.constant 0 : i32
    %c0_i32_0 = arith.constant 0 : i32
    %c0_i32_1 = arith.constant 0 : i32
    return %c0_i32, %c0_i32_0 : i32, i32
  }
  func.func @transform_5(%arg0: i32) -> (i32, i32) {
    %c0_i32 = arith.constant 0 : i32
    %c0_i32_0 = arith.constant 0 : i32
    %c0_i32_1 = arith.constant 0 : i32
    return %c0_i32, %c0_i32_0 : i32, i32
  }
  func.func @transform_6(%arg0: i32) -> (i32, i32) {
    %c0_i32 = arith.constant 0 : i32
    %c0_i32_0 = arith.constant 0 : i32
    %c0_i32_1 = arith.constant 0 : i32
    return %c0_i32, %c0_i32_0 : i32, i32
  }
  func.func @transform_7(%arg0: i32) -> (i32, i32) {
    %c0_i32 = arith.constant 0 : i32
    %c0_i32_0 = arith.constant 0 : i32
    %c0_i32_1 = arith.constant 0 : i32
    return %c0_i32, %c0_i32_0 : i32, i32
  }
  func.func @transform_8(%arg0: i32) -> (i32, i32) {
    %c0_i32 = arith.constant 0 : i32
    %c0_i32_0 = arith.constant 0 : i32
    %c0_i32_1 = arith.constant 0 : i32
    return %c0_i32, %c0_i32_0 : i32, i32
  }
  func.func @transform_9(%arg0: i32) -> (i32, i32) {
    %c0_i32 = arith.constant 0 : i32
    %c0_i32_0 = arith.constant 0 : i32
    %c0_i32_1 = arith.constant 0 : i32
    return %c0_i32, %c0_i32_0 : i32, i32
  }
}

</mosaic_0001>

<bundles_post_ra>
// kernel: discriminator_forward.1
= control target key start
LH: loop header
LB: loop body
LE: loop exit
PB: predicated region body
PF: predicated region fallthrough
CT: control target
= control target key end

     0   :  { %v12697_v0 = vmov 0.0   ;;  %vm12698_vm0 = vmmov 0   ;;  %vm220_vm1 = vcmask 130048   ;;  %vm577_vm2 = vcmask 261120   ;;  %s12699_s18 = smov 32   ;;  %s12700_s14 = smov 96   ;;  %s16303_s1 = inlined_call_operand.vmem [shape: bf16[16,32], index: 1, kind: input, shape index: {}]   ;;  %s16304_s0 = inlined_call_operand.vmem [shape: bf16[392,16], index: 0, kind: input, shape index: {}]   ;;  %s16305_s2 = inlined_call_operand.vmem [shape: f32[1,32], index: 2, kind: input, shape index: {}]   ;;  %s16306_s3 = inlined_call_operand.vmem [shape: bf16[512,128], index: 3, kind: input, shape index: {}]   ;;  %s16307_s7 = inlined_call_operand.vmem [shape: bf16[6272,128], index: 7, kind: input, shape index: {}]   ;;  %s16308_s4 = inlined_call_operand.vmem [shape: f32[1,128], index: 4, kind: input, shape index: {}]   ;;  %s16309_s5 = inlined_call_operand.vmem [shape: f32[1,128], index: 5, kind: input, shape index: {}]   ;;  %s16310_s6 = inlined_call_operand.vmem [shape: f32[1,128], index: 6, kind: input, shape index: {}]   ;;  %s16311_s8 = inlined_call_operand.vmem [shape: f32[1,128], index: 8, kind: input, shape index: {}]   ;;  %s16312_s9 = inlined_call_operand.vmem [shape: f32[2,128], index: 9, kind: output, shape index: {}]  }
   0x1   :  { %12114 = vmatprep.subr.bf16.mxu0 %v12697_v0  ;;  %v12243_v1 = vld [vmem:[%s16303_s1] sm:$0xff]   ;;  %12116 = vmatprep.mubr.msk.bf16.mxu0 %vm12698_vm0, %v12697_v0  ;;  %v12245_v3 = vld [vmem:[%s16304_s0 + $0x8] sm:$0xff]   ;;  %v12246_v4 = vld [vmem:[%s16304_s0 + $0x10] sm:$0xff]   ;;  %578 = vst.msk [vmem:[#allocation2] sm:$0xff] %vm577_vm2, %v12697_v0  ;;  %s12701_s1 = smov 64   ;;  %v695_v40 = vlaneseq  ;;  %vm2506_vm3 = vcmask 259072  }
   0x2   :  { %v12244_v2 = vld [vmem:[%s16304_s0] sm:$0xff]   ;;  %12115 = vmatpush3.bf16.msra.mxu0 %v12243_v1  ;;  %579 = vst.msk [vmem:[#allocation2 + $0x8] sm:$0xff] %vm577_vm2, %v12697_v0  ;;  %580 = vst.msk [vmem:[#allocation2 + $0x10] sm:$0xff] %vm577_vm2, %v12697_v0  ;;  %v12247_v5 = vld [vmem:[%s16304_s0 + $0x18] sm:$0xff]   ;;  %v12702_v38 = vmov 1983009808  }
   0x3   :  { %581 = vst.msk [vmem:[#allocation2 + $0x18] sm:$0xff] %vm577_vm2, %v12697_v0  ;;  %582 = vst.msk [vmem:[#allocation2 + $0x20] sm:$0xff] %vm577_vm2, %v12697_v0  ;;  %v12248_v7 = vld [vmem:[%s16304_s0 + $0x20] sm:$0xff]   ;;  %v12249_v8 = vld [vmem:[%s16304_s0 + $0x28] sm:$0xff]   ;;  %v693_v39 = vunpack.c.l.s4 %v12702_v38  ;;  %v13047_v42 = vshrl.u32 %v695_v40, 7  ;;  %vm3694_vm4 = vcmask 523264  }
   0x4   :  { %583 = vst.msk [vmem:[#allocation2 + $0x28] sm:$0xff] %vm577_vm2, %v12697_v0  ;;  %584 = vst.msk [vmem:[#allocation2 + $0x30] sm:$0xff] %vm577_vm2, %v12697_v0  ;;  %v12250_v9 = vld [vmem:[%s16304_s0 + $0x30] sm:$0xff]   ;;  %v12251_v10 = vld [vmem:[%s16304_s0 + $0x38] sm:$0xff]   ;;  %vm3709_vm5 = vcmask 785408   ;;  %vm6215_vm6 = vcmask 1041408  }
   0x5   :  { %12117 = vmatmul.mubr.msk.bf16.vlgmr.msra.gmra.mrb[0].mxu0 %vm220_vm1, %v12244_v2  ;;  %585 = vst.msk [vmem:[#allocation2 + $0x38] sm:$0xff] %vm577_vm2, %v12697_v0  ;;  %586 = vst.msk [vmem:[#allocation2 + $0x40] sm:$0xff] %vm577_vm2, %v12697_v0  ;;  %v12252_v11 = vld [vmem:[%s16304_s0 + $0x40] sm:$0xff]   ;;  %v12253_v12 = vld [vmem:[%s16304_s0 + $0x48] sm:$0xff]   ;;  %v694_v41 = vunpack.c.0.s8 %v693_v39  ;;  %vm6349_vm7 = vsmask.f32 256 }
   0x6   :  { %12120 = vmatprep.mubr.msk.bf16.mxu0 %vm12698_vm0, %v12697_v0  ;;  %587 = vst.msk [vmem:[#allocation2 + $0x48] sm:$0xff] %vm577_vm2, %v12697_v0  ;;  %588 = vst.msk [vmem:[#allocation2 + $0x50] sm:$0xff] %vm577_vm2, %v12697_v0  ;;  %v12254_v13 = vld [vmem:[%s16304_s0 + $0x50] sm:$0xff]   ;;  %v12255_v15 = vld [vmem:[%s16304_s0 + $0x58] sm:$0xff]   ;;  %vm6351_vm8 = vsmask.f32 770 }
   0x7   :  { %589 = vst.msk [vmem:[#allocation2 + $0x58] sm:$0xff] %vm577_vm2, %v12697_v0  ;;  %590 = vst.msk [vmem:[#allocation2 + $0x60] sm:$0xff] %vm577_vm2, %v12697_v0  ;;  %v12256_v19 = vld [vmem:[%s16304_s0 + $0x60] sm:$0xff]   ;;  %v12257_v23 = vld [vmem:[%s16304_s0 + $0x68] sm:$0xff]   ;;  %v13056_v46 = vsub.s32 %v694_v41, %v13047_v42 }
   0x8   :  { %591 = vst.msk [vmem:[#allocation2 + $0x68] sm:$0xff] %vm577_vm2, %v12697_v0  ;;  %592 = vst.msk [vmem:[#allocation2 + $0x70] sm:$0xff] %vm577_vm2, %v12697_v0  ;;  %v12258_v27 = vld [vmem:[%s16304_s0 + $0x70] sm:$0xff]   ;;  %v12259_v28 = vld [vmem:[%s16304_s0 + $0x78] sm:$0xff]  }
   0x9   :  { %593 = vst.msk [vmem:[#allocation2 + $0x78] sm:$0xff] %vm577_vm2, %v12697_v0  ;;  %594 = vst.msk [vmem:[#allocation2 + $0x80] sm:$0xff] %vm577_vm2, %v12697_v0  ;;  %v2590_v6 = vld [vmem:[#allocation2 + $0x1] ss:$2 sm:$0x7f]  ;;  %v12262_v31 = vld [vmem:[%s16304_s0 + $0x90] sm:$0xff]  }
   0xa   :  { %595 = vst.msk [vmem:[#allocation2 + $0x88] sm:$0xff] %vm577_vm2, %v12697_v0  ;;  %596 = vst.msk [vmem:[#allocation2 + $0x90] sm:$0xff] %vm577_vm2, %v12697_v0  ;;  %3022 = vrot.lane.b32.xlu0 %v2590_v6, %s12699_s18  ;;  %v2646_v14 = vld [vmem:[#allocation2 + $0x3] ss:$2 sm:$0x7f]  ;;  %v12263_v32 = vld [vmem:[%s16304_s0 + $0x98] sm:$0xff]  }
   0xb   :  { %597 = vst.msk [vmem:[#allocation2 + $0x98] sm:$0xff] %vm577_vm2, %v12697_v0  ;;  %598 = vst.msk [vmem:[#allocation2 + $0xa0] sm:$0xff] %vm577_vm2, %v12697_v0  ;;  %3134 = vrot.lane.b32.xlu1 %v2646_v14, %s12700_s14  ;;  %v2618_v16 = vld [vmem:[#allocation2 + $0x2] ss:$2 sm:$0x7f]  ;;  %v12266_v35 = vld [vmem:[%s16304_s0 + $0xb0] sm:$0xff]  }
   0xc   :  { %599 = vst.msk [vmem:[#allocation2 + $0xa8] sm:$0xff] %vm577_vm2, %v12697_v0  ;;  %600 = vst.msk [vmem:[#allocation2 + $0xb0] sm:$0xff] %vm577_vm2, %v12697_v0  ;;  %v12260_v29 = vld [vmem:[%s16304_s0 + $0x80] sm:$0xff]   ;;  %v12261_v30 = vld [vmem:[%s16304_s0 + $0x88] sm:$0xff]  }
   0xd   :  { %12121 = vmatmul.mubr.msk.bf16.gmra.mrb[4].mxu0 %vm220_vm1, %v12245_v3  ;;  %601 = vst.msk [vmem:[#allocation2 + $0xb8] sm:$0xff] %vm577_vm2, %v12697_v0  ;;  %602 = vst.msk [vmem:[#allocation2 + $0xc0] sm:$0xff] %vm577_vm2, %v12697_v0  ;;  %v12264_v33 = vld [vmem:[%s16304_s0 + $0xa0] sm:$0xff]   ;;  %v12265_v34 = vld [vmem:[%s16304_s0 + $0xa8] sm:$0xff]  }
   0xe   :  { %12124 = vmatprep.mubr.msk.bf16.mxu0 %vm12698_vm0, %v12697_v0  ;;  %603 = vst.msk [vmem:[#allocation2 + $0xc8] sm:$0xff] %vm577_vm2, %v12697_v0  ;;  %604 = vst.msk [vmem:[#allocation2 + $0xd0] sm:$0xff] %vm577_vm2, %v12697_v0  ;;  %3078 = vrot.lane.b32.xlu0 %v2618_v16, %s12701_s1  ;;  %v12267_v36 = vld [vmem:[%s16304_s0 + $0xb8] sm:$0xff]   ;;  %v12268_v37 = vld [vmem:[%s16304_s0 + $0xc0] ss:$0 sps:$4 sm:$0xff]  }
   0xf   :  { %605 = vst.msk [vmem:[#allocation2 + $0xd8] sm:$0xff] %vm577_vm2, %v12697_v0  ;;  %606 = vst.msk [vmem:[#allocation2 + $0xe0] sm:$0xff] %vm577_vm2, %v12697_v0  ;;  %v13052_v43 = vld [vmem:[%s16305_s2] ss:$0 sm:$0xff] }
  0x10   :  { %607 = vst.msk [vmem:[#allocation2 + $0xe8] sm:$0xff] %vm577_vm2, %v12697_v0  ;;  %608 = vst.msk [vmem:[#allocation2 + $0xf0] sm:$0xff] %vm577_vm2, %v12697_v0 }
  0x11   :  { %609 = vst.msk [vmem:[#allocation2 + $0xf8] sm:$0xff] %vm577_vm2, %v12697_v0  ;;  %610 = vst.msk [vmem:[#allocation2 + $0x100] sm:$0xff] %vm577_vm2, %v12697_v0 }
  0x12   :  { %611 = vst.msk [vmem:[#allocation2 + $0x108] sm:$0xff] %vm577_vm2, %v12697_v0  ;;  %612 = vst.msk [vmem:[#allocation2 + $0x110] sm:$0xff] %vm577_vm2, %v12697_v0 }
  0x13   :  { %613 = vst.msk [vmem:[#allocation2 + $0x118] sm:$0xff] %vm577_vm2, %v12697_v0  ;;  %614 = vst.msk [vmem:[#allocation2 + $0x120] sm:$0xff] %vm577_vm2, %v12697_v0 }
  0x14   :  { %615 = vst.msk [vmem:[#allocation2 + $0x128] sm:$0xff] %vm577_vm2, %v12697_v0  ;;  %616 = vst.msk [vmem:[#allocation2 + $0x130] sm:$0xff] %vm577_vm2, %v12697_v0 }
  0x15   :  { %12125 = vmatmul.mubr.msk.bf16.gmra.mrb[8].mxu0 %vm220_vm1, %v12246_v4  ;;  %617 = vst.msk [vmem:[#allocation2 + $0x138] sm:$0xff] %vm577_vm2, %v12697_v0  ;;  %618 = vst.msk [vmem:[#allocation2 + $0x140] sm:$0xff] %vm577_vm2, %v12697_v0 }
  0x16   :  { %12128 = vmatprep.mubr.msk.bf16.mxu0 %vm12698_vm0, %v12697_v0  ;;  %619 = vst.msk [vmem:[#allocation2 + $0x148] sm:$0xff] %vm577_vm2, %v12697_v0  ;;  %620 = vst.msk [vmem:[#allocation2 + $0x150] sm:$0xff] %vm577_vm2, %v12697_v0 }
  0x17   :  { %621 = vst.msk [vmem:[#allocation2 + $0x158] sm:$0xff] %vm577_vm2, %v12697_v0  ;;  %622 = vst.msk [vmem:[#allocation2 + $0x160] sm:$0xff] %vm577_vm2, %v12697_v0 }
  0x18   :  { %623 = vst.msk [vmem:[#allocation2 + $0x168] sm:$0xff] %vm577_vm2, %v12697_v0  ;;  %624 = vst.msk [vmem:[#allocation2 + $0x170] sm:$0xff] %vm577_vm2, %v12697_v0  ;;  %v2965_v17 = vld [vmem:[#allocation2 + $0xf2] ss:$2 sm:$0x7f] }
  0x19   :  { %625 = vst.msk [vmem:[#allocation2 + $0x178] sm:$0xff] %vm577_vm2, %v12697_v0  ;;  %626 = vst.msk [vmem:[#allocation2 + $0x180] sm:$0xff] %vm577_vm2, %v12697_v0  ;;  %3594 = vrot.lane.b32.xlu1 %v2965_v17, %s12701_s1  ;;  %v2937_v18 = vld [vmem:[#allocation2 + $0xf1] ss:$2 sm:$0x7f] }
  0x1a   :  { %627 = vst.msk [vmem:[#allocation2 + $0x188] sm:$0xff] %vm577_vm2, %v12697_v0  ;;  %628 = vst.msk [vmem:[#allocation2 + $0x190] sm:$0xff] %vm577_vm2, %v12697_v0  ;;  %3538 = vrot.lane.b32.xlu0 %v2937_v18, %s12699_s18  ;;  %v2993_v20 = vld [vmem:[#allocation2 + $0xf3] ss:$2 sm:$0x7f] }
  0x1b   :  { %629 = vst.msk [vmem:[#allocation2 + $0x198] sm:$0xff] %vm577_vm2, %v12697_v0  ;;  %630 = vst.msk [vmem:[#allocation2 + $0x1a0] sm:$0xff] %vm577_vm2, %v12697_v0  ;;  %v2604_v21 = vld [vmem:[#allocation2 + $0x101] ss:$2 sm:$0x7f] }
  0x1c   :  { %631 = vst.msk [vmem:[#allocation2 + $0x1a8] sm:$0xff] %vm577_vm2, %v12697_v0  ;;  %632 = vst.msk [vmem:[#allocation2 + $0x1b0] sm:$0xff] %vm577_vm2, %v12697_v0  ;;  %v2660_v22 = vld [vmem:[#allocation2 + $0x103] ss:$2 sm:$0x7f] }
  0x1d   :  { %633 = vst.msk [vmem:[#allocation2 + $0x1b8] sm:$0xff] %vm577_vm2, %v12697_v0  ;;  %634 = vst.msk [vmem:[#allocation2 + $0x1c0] sm:$0xff] %vm577_vm2, %v12697_v0  ;;  %12129 = vmatmul.mubr.msk.bf16.gmra.mrb[12].mxu0 %vm220_vm1, %v12247_v5  ;;  %3650 = vrot.lane.b32.xlu1 %v2993_v20, %s12700_s14  ;;  %v2632_v24 = vld [vmem:[#allocation2 + $0x102] ss:$2 sm:$0x7f] }
  0x1e   :  { %635 = vst.msk [vmem:[#allocation2 + $0x1c8] sm:$0xff] %vm577_vm2, %v12697_v0  ;;  %636 = vst.msk [vmem:[#allocation2 + $0x1d0] sm:$0xff] %vm577_vm2, %v12697_v0  ;;  %12132 = vmatprep.mubr.msk.bf16.mxu0 %vm12698_vm0, %v12697_v0  ;;  %3036 = vrot.lane.b32.xlu0 %v2604_v21, %s12699_s18 }
  0x1f   :  { %637 = vst.msk [vmem:[#allocation2 + $0x1d8] sm:$0xff] %vm577_vm2, %v12697_v0  ;;  %638 = vst.msk [vmem:[#allocation2 + $0x1e0] sm:$0xff] %vm577_vm2, %v12697_v0 }
  0x20   :  { %639 = vst.msk [vmem:[#allocation2 + $0x1e8] sm:$0xff] %vm577_vm2, %v12697_v0  ;;  %640 = vst.msk [vmem:[#allocation2 + $0x1f0] sm:$0xff] %vm577_vm2, %v12697_v0 }
  0x21   :  { %641 = vst.msk [vmem:[#allocation2 + $0x1f8] sm:$0xff] %vm577_vm2, %v12697_v0  ;;  %3148 = vrot.lane.b32.xlu1 %v2660_v22, %s12700_s14 }
  0x22   :  { %3092 = vrot.lane.b32.xlu0 %v2632_v24, %s12701_s1 }
  0x25   :  { %12133 = vmatmul.mubr.msk.bf16.gmra.mrb[16].mxu0 %vm220_vm1, %v12248_v7 }
  0x26   :  { %12136 = vmatprep.mubr.msk.bf16.mxu0 %vm12698_vm0, %v12697_v0 }
  0x28   :  { %v2951_v25 = vld [vmem:[#allocation2 + $0x1f1] ss:$2 sm:$0x7f]  ;;  %v2979_v26 = vld [vmem:[#allocation2 + $0x1f2] ss:$2 sm:$0x7f] }
  0x29   :  { %3552 = vrot.lane.b32.xlu1 %v2951_v25, %s12699_s18 }
  0x2d   :  { %12137 = vmatmul.mubr.msk.bf16.gmra.mrb[20].mxu0 %vm220_vm1, %v12249_v8  ;;  %3608 = vrot.lane.b32.xlu1 %v2979_v26, %s12701_s1 }
  0x2e   :  { %12140 = vmatprep.mubr.msk.bf16.mxu0 %vm12698_vm0, %v12697_v0 }
  0x35   :  { %12141 = vmatmul.mubr.msk.bf16.gmra.mrb[24].mxu0 %vm220_vm1, %v12250_v9 }
  0x36   :  { %12144 = vmatprep.mubr.msk.bf16.mxu0 %vm12698_vm0, %v12697_v0 }
  0x3d   :  { %12145 = vmatmul.mubr.msk.bf16.gmra.mrb[28].mxu0 %vm220_vm1, %v12251_v10 }
  0x3e   :  { %12148 = vmatprep.mubr.msk.bf16.mxu0 %vm12698_vm0, %v12697_v0 }
  0x45   :  { %12149 = vmatmul.mubr.msk.bf16.gmra.mrb[32].mxu0 %vm220_vm1, %v12252_v11 }
  0x46   :  { %12152 = vmatprep.mubr.msk.bf16.mxu0 %vm12698_vm0, %v12697_v0 }
  0x4d   :  { %12153 = vmatmul.mubr.msk.bf16.gmra.mrb[36].mxu0 %vm220_vm1, %v12253_v12 }
  0x4e   :  { %12156 = vmatprep.mubr.msk.bf16.mxu0 %vm12698_vm0, %v12697_v0 }
  0x55   :  { %12157 = vmatmul.mubr.msk.bf16.gmra.mrb[40].mxu0 %vm220_vm1, %v12254_v13 }
  0x56   :  { %12160 = vmatprep.mubr.msk.bf16.mxu0 %vm12698_vm0, %v12697_v0 }
  0x5d   :  { %12161 = vmatmul.mubr.msk.bf16.gmra.mrb[44].mxu0 %vm220_vm1, %v12255_v15 }
  0x5e   :  { %12164 = vmatprep.mubr.msk.bf16.mxu0 %vm12698_vm0, %v12697_v0 }
  0x65   :  { %12165 = vmatmul.mubr.msk.bf16.gmra.mrb[48].mxu0 %vm220_vm1, %v12256_v19 }
  0x66   :  { %12168 = vmatprep.mubr.msk.bf16.mxu0 %vm12698_vm0, %v12697_v0 }
  0x6d   :  { %12169 = vmatmul.mubr.msk.bf16.gmra.mrb[52].mxu0 %vm220_vm1, %v12257_v23 }
  0x6e   :  { %12172 = vmatprep.mubr.msk.bf16.mxu0 %vm12698_vm0, %v12697_v0 }
  0x75   :  { %12173 = vmatmul.mubr.msk.bf16.gmra.mrb[56].mxu0 %vm220_vm1, %v12258_v27 }
  0x76   :  { %12176 = vmatprep.mubr.msk.bf16.mxu0 %vm12698_vm0, %v12697_v0 }
  0x7d   :  { %12177 = vmatmul.mubr.msk.bf16.gmra.mrb[60].mxu0 %vm220_vm1, %v12259_v28 }
  0x7e   :  { %12180 = vmatprep.mubr.msk.bf16.mxu0 %vm12698_vm0, %v12697_v0 }
  0x85   :  { %12181 = vmatmul.mubr.msk.bf16.gmra.mrb[64].mxu0 %vm220_vm1, %v12260_v29 }
  0x86   :  { %12184 = vmatprep.mubr.msk.bf16.mxu0 %vm12698_vm0, %v12697_v0 }
  0x8d   :  { %12185 = vmatmul.mubr.msk.bf16.gmra.mrb[68].mxu0 %vm220_vm1, %v12261_v30 }
  0x8e   :  { %12188 = vmatprep.mubr.msk.bf16.mxu0 %vm12698_vm0, %v12697_v0 }
  0x95   :  { %12189 = vmatmul.mubr.msk.bf16.gmra.mrb[72].mxu0 %vm220_vm1, %v12262_v31 }
  0x96   :  { %12192 = vmatprep.mubr.msk.bf16.mxu0 %vm12698_vm0, %v12697_v0 }
  0x9d   :  { %12193 = vmatmul.mubr.msk.bf16.gmra.mrb[76].mxu0 %vm220_vm1, %v12263_v32 }
  0x9e   :  { %12196 = vmatprep.mubr.msk.bf16.mxu0 %vm12698_vm0, %v12697_v0 }
  0xa5   :  { %12197 = vmatmul.mubr.msk.bf16.gmra.mrb[80].mxu0 %vm220_vm1, %v12264_v33 }
  0xa6   :  { %12200 = vmatprep.mubr.msk.bf16.mxu0 %vm12698_vm0, %v12697_v0 }
  0xad   :  { %12201 = vmatmul.mubr.msk.bf16.gmra.mrb[84].mxu0 %vm220_vm1, %v12265_v34 }
  0xae   :  { %12204 = vmatprep.mubr.msk.bf16.mxu0 %vm12698_vm0, %v12697_v0 }
  0xb5   :  { %12205 = vmatmul.mubr.msk.bf16.gmra.mrb[88].mxu0 %vm220_vm1, %v12266_v35 }
  0xb6   :  { %12208 = vmatprep.mubr.msk.bf16.mxu0 %vm12698_vm0, %v12697_v0 }
  0xbd   :  { %12209 = vmatmul.mubr.msk.bf16.gmra.mrb[92].mxu0 %vm220_vm1, %v12267_v36 }
  0xbe   :  { %12212 = vmatprep.mubr.msk.bf16.mxu0 %vm12698_vm0, %v12697_v0 }
  0xc5   :  { %12213 = vmatmul.mubr.msk.bf16.gmra.mrb[96].mxu0 %vm220_vm1, %v12268_v37 }
  0xd8   :  { %v330_v44 = vpop.f32.mrb[0].mxu0 }
  0xd9   :  { %v331_v45 = vadd.f32 %v13052_v43, %v330_v44  ;;  %v12118_v47 = vpop.f32.mrb[1].mxu0 }
  0xda   :  { %v333_v48 = vpop.f32.mrb[2].mxu0 }
  0xdb   :  { %v528_v49 = vmax.f32 %v331_v45, 0.0  ;;  %v334_v50 = vadd.f32 %v13052_v43, %v333_v48  ;;  %v12119_v51 = vpop.f32.mrb[3].mxu0 }
  0xdd   :  { %v691_v52 = vcombine.high %v528_v49, %v528_v49  ;;  %v698_v53 = vrot.slane %v528_v49, %v13056_v46  ;;  %v529_v54 = vmax.f32 %v334_v50, 0.0 }
  0xdf   :  { %v705_v55 = vrot.slane %v691_v52, %v13056_v46  ;;  %v706_v56 = vcombine.high %v698_v53, %v698_v53  ;;  %v708_v57 = vcombine.high %v529_v54, %v529_v54  ;;  %v715_v58 = vrot.slane %v529_v54, %v13056_v46 }
  0xe0   :  { %v338_v59 = vpop.f32.mrb[4].mxu0 }
  0xe1   :  { %v707_v60 = vcombine.high %v705_v55, %v705_v55  ;;  %v1524_v61 = vcombine.low %v698_v53, %v706_v56  ;;  %v722_v62 = vrot.slane %v708_v57, %v13056_v46  ;;  %v723_v63 = vcombine.high %v715_v58, %v715_v58  ;;  %v12122_v1 = vpop.f32.mrb[5].mxu0 }
  0xe2   :  { %v339_v2 = vadd.f32 %v13052_v43, %v338_v59  ;;  %v341_v3 = vpop.f32.mrb[6].mxu0 }
  0xe3   :  { %v1525_v4 = vcombine.low %v705_v55, %v707_v60  ;;  %v1541_v5 = vcombine.low %v715_v58, %v723_v63  ;;  %v12123_v6 = vpop.f32.mrb[7].mxu0  ;;  %v342_v8 = vadd.f32 %v13052_v43, %v341_v3  ;;  %v1532_v9 = vrot.slane %v1524_v61, %v13056_v46 }
  0xe4   :  { %v530_v7 = vmax.f32 %v339_v2, 0.0  ;;  %v1555_v12 = vrot.slane %v722_v62, %v13056_v46  ;;  %v724_v13 = vcombine.high %v722_v62, %v722_v62 }
  0xe5   :  { %v1539_v10 = vrot.slane %v1525_v4, %v13056_v46  ;;  %v1548_v11 = vrot.slane %v1541_v5, %v13056_v46  ;;  %v531_v16 = vmax.f32 %v342_v8, 0.0 }
  0xe6   :  { %v725_v14 = vcombine.high %v530_v7, %v530_v7  ;;  %v732_v15 = vrot.slane %v530_v7, %v13056_v46 }
  0xe7   :  { %v1540_v17 = vcombine.low %v1532_v9, %v1539_v10  ;;  %v1556_v18 = vcombine.low %v1548_v11, %v1555_v12  ;;  %v742_v22 = vcombine.high %v531_v16, %v531_v16  ;;  %v749_v24 = vrot.slane %v531_v16, %v13056_v46 }
  0xe8   :  { %v739_v19 = vrot.slane %v725_v14, %v13056_v46  ;;  %v740_v20 = vcombine.high %v732_v15, %v732_v15  ;;  %v1557_v21 = vcombine.low %v724_v13, %v732_v15  ;;  %v346_v23 = vpop.f32.mrb[8].mxu0 }
  0xe9   :  { %2505 = vst.msk [vmem:[#allocation2 + $0x11] sm:$0xff] %vm577_vm2, %v1540_v17  ;;  %v347_v25 = vadd.f32 %v13052_v43, %v346_v23  ;;  %v12126_v26 = vpop.f32.mrb[9].mxu0  ;;  %v756_v29 = vrot.slane %v742_v22, %v13056_v46  ;;  %v757_v31 = vcombine.high %v749_v24, %v749_v24 }
  0xea   :  { %2507 = vst.msk [vmem:[#allocation2 + $0x19] sm:$0x3f] %vm2506_vm3, %v1556_v18  ;;  %v1558_v27 = vcombine.low %v740_v20, %v739_v19  ;;  %v741_v28 = vcombine.high %v739_v19, %v739_v19  ;;  %v349_v30 = vpop.f32.mrb[10].mxu0  ;;  %v1565_v35 = vrot.slane %v1557_v21, %v13056_v46 }
  0xeb   :  { %v532_v32 = vmax.f32 %v347_v25, 0.0  ;;  %v350_v33 = vadd.f32 %v13052_v43, %v349_v30  ;;  %v12127_v34 = vpop.f32.mrb[11].mxu0  ;;  %v758_v37 = vcombine.high %v756_v29, %v756_v29  ;;  %v1588_v47 = vrot.slane %v757_v31, %v13056_v46 }
  0xec   :  { %v1572_v36 = vrot.slane %v1558_v27, %v13056_v46  ;;  %v1574_v38 = vcombine.low %v741_v28, %v749_v24 }
  0xed   :  { %v759_v39 = vcombine.high %v532_v32, %v532_v32  ;;  %v766_v40 = vrot.slane %v532_v32, %v13056_v46  ;;  %v533_v41 = vmax.f32 %v350_v33, 0.0  ;;  %v1590_v48 = vcombine.low %v756_v29, %v758_v37 }
  0xee   :  { %v1573_v44 = vcombine.low %v1565_v35, %v1572_v36  ;;  %v1581_v45 = vrot.slane %v1574_v38, %v13056_v46 }
  0xef   :  { %v773_v49 = vrot.slane %v759_v39, %v13056_v46  ;;  %v774_v50 = vcombine.high %v766_v40, %v766_v40  ;;  %v776_v51 = vcombine.high %v533_v41, %v533_v41  ;;  %v783_v52 = vrot.slane %v533_v41, %v13056_v46 }
  0xf0   :  { %2508 = vst.msk [vmem:[#allocation2 + $0x21] sm:$0xff] %vm577_vm2, %v1573_v44  ;;  %v1589_v53 = vcombine.low %v1581_v45, %v1588_v47  ;;  %v354_v54 = vpop.f32.mrb[12].mxu0  ;;  %v1598_v1 = vrot.slane %v1590_v48, %v13056_v46 }
  0xf1   :  { %v2729_v55 = vld [vmem:[#allocation2 + $0x12] ss:$2 sm:$0x7f]  ;;  %v775_v56 = vcombine.high %v773_v49, %v773_v49  ;;  %v1591_v57 = vcombine.low %v766_v40, %v774_v50  ;;  %v790_v58 = vrot.slane %v776_v51, %v13056_v46  ;;  %v791_v59 = vcombine.high %v783_v52, %v783_v52  ;;  %v2701_v60 = vld [vmem:[#allocation2 + $0x11] ss:$2 sm:$0x7f] }
  0xf2   :  { %3246 = vrot.lane.b32.xlu0 %v2729_v55, %s12701_s1  ;;  %v12130_v61 = vpop.f32.mrb[13].mxu0  ;;  %2509 = vst.msk [vmem:[#allocation2 + $0x29] sm:$0x3f] %vm2506_vm3, %v1589_v53  ;;  %v355_v62 = vadd.f32 %v13052_v43, %v354_v54  ;;  %3190 = vrot.lane.b32.xlu1 %v2701_v60, %s12699_s18  ;;  %v2757_v7 = vld [vmem:[#allocation2 + $0x13] ss:$2 sm:$0x7f]  ;;  %v1621_v10 = vrot.slane %v783_v52, %v13056_v46 }
  0xf3   :  { %v357_v63 = vpop.f32.mrb[14].mxu0  ;;  %v1605_v2 = vrot.slane %v1591_v57, %v13056_v46  ;;  %v1607_v3 = vcombine.low %v773_v49, %v775_v56  ;;  %v1623_v11 = vcombine.low %v791_v59, %v790_v58  ;;  %v792_v12 = vcombine.high %v790_v58, %v790_v58 }
  0xf4   :  { %v12131_v4 = vpop.f32.mrb[15].mxu0  ;;  %v534_v5 = vmax.f32 %v355_v62, 0.0  ;;  %v358_v6 = vadd.f32 %v13052_v43, %v357_v63 }
  0xf5   :  { %v1606_v8 = vcombine.low %v1598_v1, %v1605_v2  ;;  %v1614_v9 = vrot.slane %v1607_v3, %v13056_v46  ;;  %v1631_v22 = vrot.slane %v1623_v11, %v13056_v46 }
  0xf6   :  { %3302 = vrot.lane.b32.xlu0 %v2757_v7, %s12700_s14  ;;  %v793_v13 = vcombine.high %v534_v5, %v534_v5  ;;  %v800_v14 = vrot.slane %v534_v5, %v13056_v46  ;;  %v535_v15 = vmax.f32 %v358_v6, 0.0 }
  0xf7   :  { %2510 = vst.msk [vmem:[#allocation2 + $0x31] sm:$0xff] %vm577_vm2, %v1606_v8  ;;  %v1622_v16 = vcombine.low %v1614_v9, %v1621_v10 }
  0xf8   :  { %v807_v17 = vrot.slane %v793_v13, %v13056_v46  ;;  %v808_v18 = vcombine.high %v800_v14, %v800_v14  ;;  %v1624_v19 = vcombine.low %v792_v12, %v800_v14  ;;  %v810_v20 = vcombine.high %v535_v15, %v535_v15  ;;  %v362_v21 = vpop.f32.mrb[16].mxu0 }
  0xf9   :  { %2511 = vst.msk [vmem:[#allocation2 + $0x39] sm:$0x3f] %vm2506_vm3, %v1622_v16  ;;  %v817_v23 = vrot.slane %v535_v15, %v13056_v46  ;;  %v363_v24 = vadd.f32 %v13052_v43, %v362_v21  ;;  %v2620_v25 = vld [vmem:[#allocation2 + $0x22] ss:$2 sm:$0x7f]  ;;  %v12134_v31 = vpop.f32.mrb[17].mxu0 }
  0xfa   :  { %v2592_v26 = vld [vmem:[#allocation2 + $0x21] ss:$2 sm:$0x7f]  ;;  %v809_v27 = vcombine.high %v807_v17, %v807_v17  ;;  %v1638_v28 = vrot.slane %v1624_v19, %v13056_v46  ;;  %v1640_v29 = vcombine.low %v808_v18, %v807_v17  ;;  %v824_v30 = vrot.slane %v810_v20, %v13056_v46  ;;  %3080 = vrot.lane.b32.xlu1 %v2620_v25, %s12701_s1  ;;  %v365_v34 = vpop.f32.mrb[18].mxu0 }
  0xfb   :  { %v825_v32 = vcombine.high %v817_v23, %v817_v23  ;;  %v536_v33 = vmax.f32 %v363_v24, 0.0  ;;  %3024 = vrot.lane.b32.xlu0 %v2592_v26, %s12699_s18  ;;  %v12135_v39 = vpop.f32.mrb[19].mxu0  ;;  %v366_v45 = vadd.f32 %v13052_v43, %v365_v34  ;;  %v2869_v47 = vld [vmem:[#allocation2 + $0x23] ss:$2 sm:$0x7f] }
  0xfc   :  { %v1639_v35 = vcombine.low %v1631_v22, %v1638_v28  ;;  %v1647_v36 = vrot.slane %v1640_v29, %v13056_v46  ;;  %v1654_v37 = vrot.slane %v809_v27, %v13056_v46  ;;  %v826_v38 = vcombine.high %v824_v30, %v824_v30  ;;  %v2813_v50 = vld [vmem:[#allocation2 + $0x21] ss:$2 sm:$0x7f]  ;;  %v2841_v2 = vld [vmem:[#allocation2 + $0x22] ss:$2 sm:$0x7f] }
  0xfd   :  { %v1656_v40 = vcombine.low %v817_v23, %v825_v32  ;;  %v827_v41 = vcombine.high %v536_v33, %v536_v33  ;;  %v834_v44 = vrot.slane %v536_v33, %v13056_v46  ;;  %v537_v54 = vmax.f32 %v366_v45, 0.0  ;;  %v2648_v19 = vld [vmem:[#allocation2 + $0x23] ss:$2 sm:$0x7f] }
  0xfe   :  { %v1655_v48 = vcombine.low %v1647_v36, %v1654_v37  ;;  %2512 = vst.msk [vmem:[#allocation2 + $0x41] sm:$0xff] %vm577_vm2, %v1639_v35  ;;  %v1657_v49 = vcombine.low %v824_v30, %v826_v38  ;;  %3470 = vrot.lane.b32.xlu1 %v2869_v47, %s12700_s14 }
  0xff   :  { %v1664_v51 = vrot.slane %v1656_v40, %v13056_v46  ;;  %v841_v52 = vrot.slane %v827_v41, %v13056_v46  ;;  %v842_v53 = vcombine.high %v834_v44, %v834_v44  ;;  %3358 = vrot.lane.b32.xlu0 %v2813_v50, %s12699_s18  ;;  %v844_v61 = vcombine.high %v537_v54, %v537_v54 }
 0x100   :  { %2513 = vst.msk [vmem:[#allocation2 + $0x49] sm:$0x3f] %vm2506_vm3, %v1655_v48  ;;  %v1671_v55 = vrot.slane %v1657_v49, %v13056_v46  ;;  %v370_v56 = vpop.f32.mrb[20].mxu0  ;;  %v2703_v57 = vld [vmem:[#allocation2 + $0x31] ss:$2 sm:$0x7f]  ;;  %v851_v63 = vrot.slane %v537_v54, %v13056_v46 }
 0x101   :  { %v1673_v58 = vcombine.low %v834_v44, %v842_v53  ;;  %v1687_v59 = vrot.slane %v841_v52, %v13056_v46  ;;  %v843_v60 = vcombine.high %v841_v52, %v841_v52  ;;  %v371_v1 = vadd.f32 %v13052_v43, %v370_v56  ;;  %v12138_v3 = vpop.f32.mrb[21].mxu0  ;;  %v2731_v14 = vld [vmem:[#allocation2 + $0x32] ss:$2 sm:$0x7f] }
 0x102   :  { %v1672_v62 = vcombine.low %v1664_v51, %v1671_v55  ;;  %3192 = vrot.lane.b32.xlu1 %v2703_v57, %s12699_s18  ;;  %v858_v5 = vrot.slane %v844_v61, %v13056_v46  ;;  %v373_v6 = vpop.f32.mrb[22].mxu0  ;;  %v859_v7 = vcombine.high %v851_v63, %v851_v63  ;;  %v2759_v26 = vld [vmem:[#allocation2 + $0x33] ss:$2 sm:$0x7f] }
 0x103   :  { %v1680_v4 = vrot.slane %v1673_v58, %v13056_v46  ;;  %3414 = vrot.lane.b32.xlu0 %v2841_v2, %s12701_s1  ;;  %v1689_v8 = vcombine.low %v843_v60, %v851_v63  ;;  %v538_v9 = vmax.f32 %v371_v1, 0.0  ;;  %v374_v10 = vadd.f32 %v13052_v43, %v373_v6  ;;  %v12139_v11 = vpop.f32.mrb[23].mxu0  ;;  %v2925_v34 = vld [vmem:[#allocation2 + $0x31] ss:$2 sm:$0x7f] }
 0x104   :  { %2514 = vst.msk [vmem:[#allocation2 + $0x51] sm:$0xff] %vm577_vm2, %v1672_v62  ;;  %v860_v13 = vcombine.high %v858_v5, %v858_v5  ;;  %v1690_v15 = vcombine.low %v859_v7, %v858_v5  ;;  %v2953_v53 = vld [vmem:[#allocation2 + $0x32] ss:$2 sm:$0x7f] }
 0x105   :  { %v1688_v12 = vcombine.low %v1680_v4, %v1687_v59  ;;  %v1697_v16 = vrot.slane %v1689_v8, %v13056_v46  ;;  %v861_v17 = vcombine.high %v538_v9, %v538_v9  ;;  %v868_v18 = vrot.slane %v538_v9, %v13056_v46  ;;  %v2981_v4 = vld [vmem:[#allocation2 + $0x33] ss:$2 sm:$0x7f] }
 0x106   :  { %3248 = vrot.lane.b32.xlu1 %v2731_v14, %s12701_s1  ;;  %v539_v20 = vmax.f32 %v374_v10, 0.0  ;;  %v1704_v21 = vrot.slane %v1690_v15, %v13056_v46 }
 0x107   :  { %2515 = vst.msk [vmem:[#allocation2 + $0x59] sm:$0x3f] %vm2506_vm3, %v1688_v12  ;;  %3136 = vrot.lane.b32.xlu0 %v2648_v19, %s12700_s14  ;;  %v875_v22 = vrot.slane %v861_v17, %v13056_v46  ;;  %v876_v23 = vcombine.high %v868_v18, %v868_v18  ;;  %v1706_v24 = vcombine.low %v860_v13, %v868_v18  ;;  %v2815_v49 = vld [vmem:[#allocation2 + $0x41] ss:$2 sm:$0x7f] }
 0x108   :  { %v378_v25 = vpop.f32.mrb[24].mxu0  ;;  %v878_v27 = vcombine.high %v539_v20, %v539_v20  ;;  %v885_v28 = vrot.slane %v539_v20, %v13056_v46  ;;  %v1705_v30 = vcombine.low %v1697_v16, %v1704_v21  ;;  %v2843_v62 = vld [vmem:[#allocation2 + $0x42] ss:$2 sm:$0x7f] }
 0x109   :  { %v379_v29 = vadd.f32 %v13052_v43, %v378_v25  ;;  %v877_v31 = vcombine.high %v875_v22, %v875_v22  ;;  %v1713_v32 = vrot.slane %v1706_v24, %v13056_v46  ;;  %v1720_v33 = vrot.slane %v876_v23, %v13056_v46  ;;  %v12142_v35 = vpop.f32.mrb[25].mxu0  ;;  %v2594_v18 = vld [vmem:[#allocation2 + $0x41] ss:$2 sm:$0x7f] }
 0x10a   :  { %3304 = vrot.lane.b32.xlu1 %v2759_v26, %s12700_s14  ;;  %v892_v36 = vrot.slane %v878_v27, %v13056_v46  ;;  %v893_v37 = vcombine.high %v885_v28, %v885_v28  ;;  %v381_v39 = vpop.f32.mrb[26].mxu0  ;;  %2516 = vst.msk [vmem:[#allocation2 + $0x61] sm:$0xff] %vm577_vm2, %v1705_v30 }
 0x10b   :  { %3526 = vrot.lane.b32.xlu0 %v2925_v34, %s12699_s18  ;;  %v540_v38 = vmax.f32 %v379_v29, 0.0  ;;  %v1721_v40 = vcombine.low %v1713_v32, %v1720_v33  ;;  %v1722_v41 = vcombine.low %v875_v22, %v877_v31  ;;  %v382_v44 = vadd.f32 %v13052_v43, %v381_v39  ;;  %v12143_v45 = vpop.f32.mrb[27].mxu0 }
 0x10c   :  { %v894_v47 = vcombine.high %v892_v36, %v892_v36  ;;  %v1723_v48 = vcombine.low %v885_v28, %v893_v37 }
 0x10d   :  { %v895_v50 = vcombine.high %v540_v38, %v540_v38  ;;  %v902_v51 = vrot.slane %v540_v38, %v13056_v46  ;;  %v1730_v52 = vrot.slane %v1722_v41, %v13056_v46  ;;  %2517 = vst.msk [vmem:[#allocation2 + $0x69] sm:$0x3f] %vm2506_vm3, %v1721_v40  ;;  %v541_v59 = vmax.f32 %v382_v44, 0.0 }
 0x10e   :  { %3360 = vrot.lane.b32.xlu1 %v2815_v49, %s12699_s18  ;;  %v1737_v54 = vrot.slane %v1723_v48, %v13056_v46  ;;  %v1739_v55 = vcombine.low %v892_v36, %v894_v47  ;;  %v2927_v17 = vld [vmem:[#allocation2 + $0x51] ss:$2 sm:$0x7f]  ;;  %v2955_v30 = vld [vmem:[#allocation2 + $0x52] ss:$2 sm:$0x7f] }
 0x10f   :  { %3582 = vrot.lane.b32.xlu0 %v2953_v53, %s12701_s1  ;;  %v909_v56 = vrot.slane %v895_v50, %v13056_v46  ;;  %v910_v57 = vcombine.high %v902_v51, %v902_v51  ;;  %v1753_v58 = vrot.slane %v902_v51, %v13056_v46  ;;  %v912_v5 = vcombine.high %v541_v59, %v541_v59  ;;  %v2871_v36 = vld [vmem:[#allocation2 + $0x43] ss:$2 sm:$0x7f]  ;;  %v2705_v50 = vld [vmem:[#allocation2 + $0x51] ss:$2 sm:$0x7f] }
 0x110   :  { %v386_v60 = vpop.f32.mrb[28].mxu0  ;;  %v1738_v61 = vcombine.low %v1730_v52, %v1737_v54  ;;  %v1746_v63 = vrot.slane %v1739_v55, %v13056_v46  ;;  %v919_v6 = vrot.slane %v541_v59, %v13056_v46  ;;  %v2622_v55 = vld [vmem:[#allocation2 + $0x42] ss:$2 sm:$0x7f] }
 0x111   :  { %v1755_v1 = vcombine.low %v910_v57, %v909_v56  ;;  %v911_v2 = vcombine.high %v909_v56, %v909_v56  ;;  %v12146_v3 = vpop.f32.mrb[29].mxu0  ;;  %v387_v7 = vadd.f32 %v13052_v43, %v386_v60  ;;  %v926_v13 = vrot.slane %v912_v5, %v13056_v46 }
 0x112   :  { %3416 = vrot.lane.b32.xlu1 %v2843_v62, %s12701_s1  ;;  %v389_v8 = vpop.f32.mrb[30].mxu0  ;;  %2518 = vst.msk [vmem:[#allocation2 + $0x71] sm:$0xff] %vm577_vm2, %v1738_v61  ;;  %v1754_v9 = vcombine.low %v1746_v63, %v1753_v58  ;;  %v927_v14 = vcombine.high %v919_v6, %v919_v6  ;;  %v2983_v3 = vld [vmem:[#allocation2 + $0x53] ss:$2 sm:$0x7f] }
 0x113   :  { %3638 = vrot.lane.b32.xlu0 %v2981_v4, %s12700_s14  ;;  %v1763_v10 = vrot.slane %v1755_v1, %v13056_v46  ;;  %v390_v11 = vadd.f32 %v13052_v43, %v389_v8  ;;  %v12147_v12 = vpop.f32.mrb[31].mxu0  ;;  %v1756_v15 = vcombine.low %v911_v2, %v919_v6  ;;  %v542_v16 = vmax.f32 %v387_v7, 0.0 }
 0x114   :  { %2519 = vst.msk [vmem:[#allocation2 + $0x79] sm:$0x3f] %vm2506_vm3, %v1754_v9  ;;  %v928_v19 = vcombine.high %v926_v13, %v926_v13  ;;  %v1772_v21 = vcombine.low %v927_v14, %v926_v13  ;;  %v2650_v9 = vld [vmem:[#allocation2 + $0x43] ss:$2 sm:$0x7f] }
 0x115   :  { %v1770_v20 = vrot.slane %v1756_v15, %v13056_v46  ;;  %v929_v22 = vcombine.high %v542_v16, %v542_v16  ;;  %v936_v23 = vrot.slane %v542_v16, %v13056_v46  ;;  %v543_v24 = vmax.f32 %v390_v11, 0.0 }
 0x116   :  { %3528 = vrot.lane.b32.xlu1 %v2927_v17, %s12699_s18  ;;  %v1779_v26 = vrot.slane %v1772_v21, %v13056_v46  ;;  %v1786_v27 = vrot.slane %v928_v19, %v13056_v46  ;;  %v2733_v21 = vld [vmem:[#allocation2 + $0x52] ss:$2 sm:$0x7f] }
 0x117   :  { %3026 = vrot.lane.b32.xlu0 %v2594_v18, %s12699_s18  ;;  %v1771_v25 = vcombine.low %v1763_v10, %v1770_v20  ;;  %v943_v28 = vrot.slane %v929_v22, %v13056_v46  ;;  %v944_v31 = vcombine.high %v936_v23, %v936_v23  ;;  %v946_v32 = vcombine.high %v543_v24, %v543_v24 }
 0x118   :  { %v394_v29 = vpop.f32.mrb[32].mxu0  ;;  %v953_v33 = vrot.slane %v543_v24, %v13056_v46  ;;  %v1787_v37 = vcombine.low %v1779_v26, %v1786_v27  ;;  %v2817_v26 = vld [vmem:[#allocation2 + $0x61] ss:$2 sm:$0x7f] }
 0x119   :  { %v395_v34 = vadd.f32 %v13052_v43, %v394_v29  ;;  %v12150_v35 = vpop.f32.mrb[33].mxu0  ;;  %2520 = vst.msk [vmem:[#allocation2 + $0x81] sm:$0xff] %vm577_vm2, %v1771_v25  ;;  %v945_v38 = vcombine.high %v943_v28, %v943_v28  ;;  %v1788_v40 = vcombine.low %v936_v23, %v944_v31  ;;  %v960_v41 = vrot.slane %v946_v32, %v13056_v46 }
 0x11a   :  { %3584 = vrot.lane.b32.xlu1 %v2955_v30, %s12701_s1  ;;  %v397_v39 = vpop.f32.mrb[34].mxu0  ;;  %v961_v44 = vcombine.high %v953_v33, %v953_v33  ;;  %2521 = vst.msk [vmem:[#allocation2 + $0x89] sm:$0x3f] %vm2506_vm3, %v1787_v37  ;;  %v2761_v30 = vld [vmem:[#allocation2 + $0x53] ss:$2 sm:$0x7f] }
 0x11b   :  { %3472 = vrot.lane.b32.xlu0 %v2871_v36, %s12700_s14  ;;  %v544_v45 = vmax.f32 %v395_v34, 0.0  ;;  %v12151_v47 = vpop.f32.mrb[35].mxu0  ;;  %v1789_v48 = vcombine.low %v943_v28, %v945_v38  ;;  %v398_v49 = vadd.f32 %v13052_v43, %v397_v39  ;;  %v1796_v51 = vrot.slane %v1788_v40, %v13056_v46  ;;  %v12269_v34 = vld [vmem:[%s16306_s3 + $0x40] sm:$0xff]  }
 0x11c   :  { %v1805_v52 = vcombine.low %v953_v33, %v961_v44  ;;  %v1819_v53 = vrot.slane %v960_v41, %v13056_v46  ;;  %v962_v54 = vcombine.high %v960_v41, %v960_v41  ;;  %v12270_v39 = vld [vmem:[%s16306_s3] sm:$0xff]   ;;  %11461 = vmatprep.subr.bf16.mxu1 %v12269_v34 }
 0x11d   :  { %v1803_v56 = vrot.slane %v1789_v48, %v13056_v46  ;;  %v963_v57 = vcombine.high %v544_v45, %v544_v45  ;;  %v970_v58 = vrot.slane %v544_v45, %v13056_v46  ;;  %v545_v59 = vmax.f32 %v398_v49, 0.0  ;;  %v12271_v48 = vld [vmem:[%s16306_s3 + $0x48] sm:$0xff]   ;;  %11462 = vmatpush3.bf16.msra.mxu1 %v12270_v39 }
 0x11e   :  { %3194 = vrot.lane.b32.xlu1 %v2705_v50, %s12699_s18  ;;  %v1812_v60 = vrot.slane %v1805_v52, %v13056_v46  ;;  %v2845_v49 = vld [vmem:[#allocation2 + $0x62] ss:$2 sm:$0x7f]  ;;  %11463 = vmatprep.subr.bf16.mxu1 %v12271_v48 }
 0x11f   :  { %3082 = vrot.lane.b32.xlu0 %v2622_v55, %s12701_s1  ;;  %v1804_v61 = vcombine.low %v1796_v51, %v1803_v56  ;;  %v977_v62 = vrot.slane %v963_v57, %v13056_v46  ;;  %v978_v63 = vcombine.high %v970_v58, %v970_v58  ;;  %v1821_v1 = vcombine.low %v962_v54, %v970_v58  ;;  %v12272_v57 = vld [vmem:[%s16306_s3 + $0x8] sm:$0xff]  }
 0x120   :  { %v402_v2 = vpop.f32.mrb[36].mxu0  ;;  %v1820_v4 = vcombine.low %v1812_v60, %v1819_v53  ;;  %v980_v5 = vcombine.high %v545_v59, %v545_v59  ;;  %v987_v6 = vrot.slane %v545_v59, %v13056_v46 }
 0x121   :  { %v403_v7 = vadd.f32 %v13052_v43, %v402_v2  ;;  %v12154_v8 = vpop.f32.mrb[37].mxu0  ;;  %2522 = vst.msk [vmem:[#allocation2 + $0x91] sm:$0xff] %vm577_vm2, %v1804_v61  ;;  %v1822_v10 = vcombine.low %v978_v63, %v977_v62  ;;  %v1829_v11 = vrot.slane %v1821_v1, %v13056_v46  ;;  %v979_v12 = vcombine.high %v977_v62, %v977_v62  ;;  %v2873_v62 = vld [vmem:[#allocation2 + $0x63] ss:$2 sm:$0x7f] }
 0x122   :  { %3640 = vrot.lane.b32.xlu1 %v2983_v3, %s12700_s14  ;;  %v405_v13 = vpop.f32.mrb[38].mxu0  ;;  %2523 = vst.msk [vmem:[#allocation2 + $0x99] sm:$0x3f] %vm2506_vm3, %v1820_v4  ;;  %v994_v14 = vrot.slane %v980_v5, %v13056_v46  ;;  %v995_v15 = vcombine.high %v987_v6, %v987_v6  ;;  %v2652_v63 = vld [vmem:[#allocation2 + $0x63] ss:$2 sm:$0x7f]  ;;  %11464 = vmatpush3.bf16.msra.mxu1 %v12272_v57 }
 0x123   :  { %3138 = vrot.lane.b32.xlu0 %v2650_v9, %s12700_s14  ;;  %v546_v16 = vmax.f32 %v403_v7, 0.0  ;;  %v406_v17 = vadd.f32 %v13052_v43, %v405_v13  ;;  %v12155_v18 = vpop.f32.mrb[39].mxu0  ;;  %v1836_v19 = vrot.slane %v1822_v10, %v13056_v46  ;;  %v1838_v20 = vcombine.low %v979_v12, %v987_v6  ;;  %v12273_v7 = vld [vmem:[%s16306_s3 + $0x50] sm:$0xff]  }
 0x124   :  { %v996_v22 = vcombine.high %v994_v14, %v994_v14  ;;  %v1852_v23 = vrot.slane %v995_v15, %v13056_v46  ;;  %v12274_v12 = vld [vmem:[%s16306_s3 + $0x10] sm:$0xff]   ;;  %11465 = vmatprep.subr.bf16.mxu1 %v12273_v7 }
 0x125   :  { %v997_v24 = vcombine.high %v546_v16, %v546_v16  ;;  %v1004_v25 = vrot.slane %v546_v16, %v13056_v46  ;;  %v1837_v27 = vcombine.low %v1829_v11, %v1836_v19  ;;  %v1845_v28 = vrot.slane %v1838_v20, %v13056_v46  ;;  %v2929_v16 = vld [vmem:[#allocation2 + $0x71] ss:$2 sm:$0x7f] }
 0x126   :  { %3250 = vrot.lane.b32.xlu1 %v2733_v21, %s12701_s1  ;;  %v547_v29 = vmax.f32 %v406_v17, 0.0  ;;  %v1854_v31 = vcombine.low %v994_v14, %v996_v22  ;;  %v2596_v21 = vld [vmem:[#allocation2 + $0x61] ss:$2 sm:$0x7f]  ;;  %11466 = vmatpush3.bf16.msra.mxu1 %v12274_v12 }
 0x127   :  { %3362 = vrot.lane.b32.xlu0 %v2817_v26, %s12699_s18  ;;  %v1011_v32 = vrot.slane %v997_v24, %v13056_v46  ;;  %v1012_v33 = vcombine.high %v1004_v25, %v1004_v25  ;;  %2524 = vst.msk [vmem:[#allocation2 + $0xa1] sm:$0xff] %vm577_vm2, %v1837_v27  ;;  %v1853_v35 = vcombine.low %v1845_v28, %v1852_v23 }
 0x128   :  { %v1014_v36 = vcombine.high %v547_v29, %v547_v29  ;;  %v1021_v37 = vrot.slane %v547_v29, %v13056_v46  ;;  %v410_v38 = vpop.f32.mrb[40].mxu0  ;;  %v1862_v40 = vrot.slane %v1854_v31, %v13056_v46  ;;  %v12275_v29 = vld [vmem:[%s16306_s3 + $0x58] sm:$0xff]  }
 0x129   :  { %v1013_v41 = vcombine.high %v1011_v32, %v1011_v32  ;;  %v1855_v44 = vcombine.low %v1004_v25, %v1012_v33  ;;  %v411_v45 = vadd.f32 %v13052_v43, %v410_v38  ;;  %v12158_v47 = vpop.f32.mrb[41].mxu0  ;;  %2525 = vst.msk [vmem:[#allocation2 + $0xa9] sm:$0x3f] %vm2506_vm3, %v1853_v35  ;;  %v2957_v31 = vld [vmem:[#allocation2 + $0x72] ss:$2 sm:$0x7f]  ;;  %11467 = vmatprep.subr.bf16.mxu1 %v12275_v29 }
 0x12a   :  { %3306 = vrot.lane.b32.xlu1 %v2761_v30, %s12700_s14  ;;  %v1028_v50 = vrot.slane %v1014_v36, %v13056_v46  ;;  %v1029_v51 = vcombine.high %v1021_v37, %v1021_v37  ;;  %v1885_v54 = vrot.slane %v1021_v37, %v13056_v46  ;;  %v413_v56 = vpop.f32.mrb[42].mxu0  ;;  %v2624_v30 = vld [vmem:[#allocation2 + $0x62] ss:$2 sm:$0x7f] }
 0x12b   :  { %3418 = vrot.lane.b32.xlu0 %v2845_v49, %s12701_s1  ;;  %v1869_v52 = vrot.slane %v1855_v44, %v13056_v46  ;;  %v1871_v53 = vcombine.low %v1011_v32, %v1013_v41  ;;  %v548_v55 = vmax.f32 %v411_v45, 0.0  ;;  %v414_v60 = vadd.f32 %v13052_v43, %v413_v56  ;;  %v12159_v61 = vpop.f32.mrb[43].mxu0  ;;  %v12277_v45 = vld [vmem:[%s16306_s3 + $0x60] sm:$0xff]  }
 0x12c   :  { %v1887_v58 = vcombine.low %v1029_v51, %v1028_v50  ;;  %v1030_v59 = vcombine.high %v1028_v50, %v1028_v50  ;;  %v12278_v50 = vld [vmem:[%s16306_s3 + $0x20] sm:$0xff]  }
 0x12d   :  { %v1870_v1 = vcombine.low %v1862_v40, %v1869_v52  ;;  %v1878_v2 = vrot.slane %v1871_v53, %v13056_v46  ;;  %v1031_v3 = vcombine.high %v548_v55, %v548_v55  ;;  %v1038_v4 = vrot.slane %v548_v55, %v13056_v46  ;;  %v12276_v40 = vld [vmem:[%s16306_s3 + $0x18] sm:$0xff]  }
 0x12e   :  { %3140 = vrot.lane.b32.xlu1 %v2652_v63, %s12700_s14  ;;  %v1895_v5 = vrot.slane %v1887_v58, %v13056_v46  ;;  %v549_v6 = vmax.f32 %v414_v60, 0.0  ;;  %11468 = vmatpush3.bf16.msra.mxu1 %v12276_v40  ;;  %v2985_v53 = vld [vmem:[#allocation2 + $0x73] ss:$2 sm:$0x7f] }
 0x12f   :  { %3474 = vrot.lane.b32.xlu0 %v2873_v62, %s12700_s14  ;;  %2526 = vst.msk [vmem:[#allocation2 + $0xb1] sm:$0xff] %vm577_vm2, %v1870_v1  ;;  %v1886_v8 = vcombine.low %v1878_v2, %v1885_v54  ;;  %v1045_v9 = vrot.slane %v1031_v3, %v13056_v46  ;;  %v1046_v10 = vcombine.high %v1038_v4, %v1038_v4  ;;  %v12279_v1 = vld [vmem:[%s16306_s3 + $0x68] sm:$0xff]  }
 0x130   :  { %v1888_v11 = vcombine.low %v1030_v59, %v1038_v4  ;;  %v1048_v13 = vcombine.high %v549_v6, %v549_v6  ;;  %v1055_v14 = vrot.slane %v549_v6, %v13056_v46  ;;  %v418_v15 = vpop.f32.mrb[44].mxu0  ;;  %11469 = vmatprep.subr.bf16.mxu1 %v12277_v45  ;;  %v2819_v59 = vld [vmem:[#allocation2 + $0x81] ss:$2 sm:$0x7f] }
 0x131   :  { %2527 = vst.msk [vmem:[#allocation2 + $0xb9] sm:$0x3f] %vm2506_vm3, %v1886_v8  ;;  %v1047_v17 = vcombine.high %v1045_v9, %v1045_v9  ;;  %v1904_v19 = vcombine.low %v1046_v10, %v1045_v9  ;;  %v419_v20 = vadd.f32 %v13052_v43, %v418_v15  ;;  %v12162_v28 = vpop.f32.mrb[45].mxu0  ;;  %v12280_v6 = vld [vmem:[%s16306_s3 + $0x28] sm:$0xff]  }
 0x132   :  { %v1902_v18 = vrot.slane %v1888_v11, %v13056_v46  ;;  %3530 = vrot.lane.b32.xlu1 %v2929_v16, %s12699_s18  ;;  %v1062_v22 = vrot.slane %v1048_v13, %v13056_v46  ;;  %v1063_v23 = vcombine.high %v1055_v14, %v1055_v14  ;;  %v421_v34 = vpop.f32.mrb[46].mxu0  ;;  %11470 = vmatpush3.bf16.msra.mxu1 %v12278_v50  ;;  %v2707_v10 = vld [vmem:[#allocation2 + $0x71] ss:$2 sm:$0x7f]  ;;  %v13293_v28 = vld [vmem:[%s16305_s2] ss:$0 sm:$0xff] }
 0x133   :  { %3028 = vrot.lane.b32.xlu0 %v2596_v21, %s12699_s18  ;;  %v1911_v25 = vrot.slane %v1904_v19, %v13056_v46  ;;  %v1918_v26 = vrot.slane %v1047_v17, %v13056_v46  ;;  %v550_v27 = vmax.f32 %v419_v20, 0.0  ;;  %v422_v38 = vadd.f32 %v13052_v43, %v421_v34  ;;  %v12163_v39 = vpop.f32.mrb[47].mxu0  ;;  %11471 = vmatprep.subr.bf16.mxu1 %v12279_v1  ;;  %v12283_v50 = vld [vmem:[%s16306_s3 + $0x78] sm:$0xff]  }
 0x134   :  { %v1903_v24 = vcombine.low %v1895_v5, %v1902_v18  ;;  %v1064_v32 = vcombine.high %v1062_v22, %v1062_v22  ;;  %v1920_v33 = vcombine.low %v1055_v14, %v1063_v23  ;;  %v2847_v14 = vld [vmem:[#allocation2 + $0x82] ss:$2 sm:$0x7f] }
 0x135   :  { %v1919_v35 = vcombine.low %v1911_v25, %v1918_v26  ;;  %v1065_v36 = vcombine.high %v550_v27, %v550_v27  ;;  %v1072_v37 = vrot.slane %v550_v27, %v13056_v46  ;;  %v551_v49 = vmax.f32 %v422_v38, 0.0  ;;  %v2735_v25 = vld [vmem:[#allocation2 + $0x72] ss:$2 sm:$0x7f] }
 0x136   :  { %2528 = vst.msk [vmem:[#allocation2 + $0xc1] sm:$0xff] %vm577_vm2, %v1903_v24  ;;  %3586 = vrot.lane.b32.xlu1 %v2957_v31, %s12701_s1  ;;  %v1921_v41 = vcombine.low %v1062_v22, %v1064_v32  ;;  %v1928_v44 = vrot.slane %v1920_v33, %v13056_v46  ;;  %11472 = vmatpush3.bf16.msra.mxu1 %v12280_v6  ;;  %v12281_v31 = vld [vmem:[%s16306_s3 + $0x70] sm:$0xff]   ;;  %v2598_v33 = vld [vmem:[#allocation2 + $0x81] ss:$2 sm:$0x7f] }
 0x137   :  { %3084 = vrot.lane.b32.xlu0 %v2624_v30, %s12701_s1  ;;  %2529 = vst.msk [vmem:[#allocation2 + $0xc9] sm:$0x3f] %vm2506_vm3, %v1919_v35  ;;  %v1079_v47 = vrot.slane %v1065_v36, %v13056_v46  ;;  %v1080_v48 = vcombine.high %v1072_v37, %v1072_v37  ;;  %v1082_v57 = vcombine.high %v551_v49, %v551_v49  ;;  %v12282_v32 = vld [vmem:[%s16306_s3 + $0x30] sm:$0xff]   ;;  %v2875_v6 = vld [vmem:[#allocation2 + $0x83] ss:$2 sm:$0x7f] }
 0x138   :  { %v1935_v51 = vrot.slane %v1921_v41, %v13056_v46  ;;  %v426_v52 = vpop.f32.mrb[48].mxu0  ;;  %v1089_v61 = vrot.slane %v551_v49, %v13056_v46  ;;  %11473 = vmatprep.subr.bf16.mxu1 %v12281_v31 }
 0x139   :  { %v1937_v54 = vcombine.low %v1072_v37, %v1080_v48  ;;  %v1951_v55 = vrot.slane %v1079_v47, %v13056_v46  ;;  %v1081_v56 = vcombine.high %v1079_v47, %v1079_v47  ;;  %v12166_v58 = vpop.f32.mrb[49].mxu0  ;;  %v427_v62 = vadd.f32 %v13052_v43, %v426_v52  ;;  %v13307_v47 = vpop.permute.xlu1 %3134 }
 0x13a   :  { %3642 = vrot.lane.b32.xlu1 %v2985_v53, %s12700_s14  ;;  %v1936_v60 = vcombine.low %v1928_v44, %v1935_v51  ;;  %v429_v63 = vpop.f32.mrb[50].mxu0  ;;  %v1096_v3 = vrot.slane %v1082_v57, %v13056_v46  ;;  %v1097_v7 = vcombine.high %v1089_v61, %v1089_v61  ;;  %11474 = vmatpush3.bf16.msra.mxu1 %v12282_v32  ;;  %v2763_v51 = vld [vmem:[#allocation2 + $0x73] ss:$2 sm:$0x7f] }
 0x13b   :  { %3364 = vrot.lane.b32.xlu0 %v2819_v59, %s12699_s18  ;;  %v1944_v2 = vrot.slane %v1937_v54, %v13056_v46  ;;  %v430_v4 = vadd.f32 %v13052_v43, %v429_v63  ;;  %v12167_v5 = vpop.f32.mrb[51].mxu0  ;;  %v1953_v8 = vcombine.low %v1081_v56, %v1089_v61  ;;  %v552_v9 = vmax.f32 %v427_v62, 0.0  ;;  %v12284_v56 = vld [vmem:[%s16306_s3 + $0x38] sm:$0xff]   ;;  %v2626_v57 = vld [vmem:[#allocation2 + $0x82] ss:$2 sm:$0x7f]  ;;  %11475 = vmatprep.subr.bf16.mxu1 %v12283_v50 }
 0x13c   :  { %2530 = vst.msk [vmem:[#allocation2 + $0xd1] sm:$0xff] %vm577_vm2, %v1936_v60  ;;  %v1098_v12 = vcombine.high %v1096_v3, %v1096_v3  ;;  %v1954_v43 = vcombine.low %v1097_v7, %v1096_v3  ;;  %v13322_v60 = vpop.permute.xlu0 %3022 }
 0x13d   :  { %v1952_v11 = vcombine.low %v1944_v2, %v1951_v55  ;;  %v553_v13 = vmax.f32 %v430_v4, 0.0  ;;  %v1961_v15 = vrot.slane %v1953_v8, %v13056_v46  ;;  %v1099_v16 = vcombine.high %v552_v9, %v552_v9 }
 0x13e   :  { %3196 = vrot.lane.b32.xlu1 %v2707_v10, %s12699_s18  ;;  %v1106_v17 = vrot.slane %v552_v9, %v13056_v46  ;;  %v1968_v20 = vrot.slane %v1954_v43, %v13056_v46  ;;  %11476 = vmatpush3.bf16.msra.mxu1 %v12284_v56 }
 0x13f   :  { %3420 = vrot.lane.b32.xlu0 %v2847_v14, %s12701_s1  ;;  %2531 = vst.msk [vmem:[#allocation2 + $0xd9] sm:$0x3f] %vm2506_vm3, %v1952_v11  ;;  %v1116_v18 = vcombine.high %v553_v13, %v553_v13  ;;  %v1123_v19 = vrot.slane %v553_v13, %v13056_v46  ;;  %v1113_v21 = vrot.slane %v1099_v16, %v13056_v46  ;;  %v13330_v13 = vpop.permute.xlu1 %3594 }
 0x140   :  { %v1114_v22 = vcombine.high %v1106_v17, %v1106_v17  ;;  %v1970_v23 = vcombine.low %v1098_v12, %v1106_v17  ;;  %v434_v24 = vpop.f32.mrb[52].mxu0  ;;  %v1969_v34 = vcombine.low %v1961_v15, %v1968_v20  ;;  %v2654_v12 = vld [vmem:[#allocation2 + $0x83] ss:$2 sm:$0x7f] }
 0x141   :  { %v1130_v26 = vrot.slane %v1116_v18, %v13056_v46  ;;  %v1131_v27 = vcombine.high %v1123_v19, %v1123_v19  ;;  %v435_v29 = vadd.f32 %v13293_v28, %v434_v24  ;;  %v12170_v30 = vpop.f32.mrb[53].mxu0  ;;  %v1115_v35 = vcombine.high %v1113_v21, %v1113_v21  ;;  %v13338_v24 = vpop.permute.xlu0 %3078 }
 0x142   :  { %3252 = vrot.lane.b32.xlu1 %v2735_v25, %s12701_s1  ;;  %v1977_v36 = vrot.slane %v1970_v23, %v13056_v46  ;;  %v1984_v37 = vrot.slane %v1114_v22, %v13056_v46  ;;  %v437_v38 = vpop.f32.mrb[54].mxu0  ;;  %2532 = vst.msk [vmem:[#allocation2 + $0xe1] sm:$0xff] %vm577_vm2, %v1969_v34  ;;  %v2931_v23 = vld [vmem:[#allocation2 + $0x91] ss:$2 sm:$0x7f] }
 0x143   :  { %3030 = vrot.lane.b32.xlu0 %v2598_v33, %s12699_s18  ;;  %v1132_v39 = vcombine.high %v1130_v26, %v1130_v26  ;;  %v1987_v40 = vcombine.low %v1123_v19, %v1131_v27  ;;  %v554_v41 = vmax.f32 %v435_v29, 0.0  ;;  %v438_v44 = vadd.f32 %v13293_v28, %v437_v38  ;;  %v12171_v45 = vpop.f32.mrb[55].mxu0  ;;  %v2709_v30 = vld [vmem:[#allocation2 + $0x91] ss:$2 sm:$0x7f] }
 0x144   :  { %v1985_v48 = vcombine.low %v1977_v36, %v1984_v37  ;;  %v1986_v49 = vcombine.low %v1113_v21, %v1115_v35  ;;  %v13347_v37 = vpop.permute.xlu1 %3650 }
 0x145   :  { %v2001_v52 = vrot.slane %v1987_v40, %v13056_v46  ;;  %v2003_v53 = vcombine.low %v1130_v26, %v1132_v39  ;;  %v1133_v54 = vcombine.high %v554_v41, %v554_v41  ;;  %v1140_v55 = vrot.slane %v554_v41, %v13056_v46  ;;  %v2959_v41 = vld [vmem:[#allocation2 + $0x92] ss:$2 sm:$0x7f] }
 0x146   :  { %3308 = vrot.lane.b32.xlu1 %v2763_v51, %s12700_s14  ;;  %v1994_v58 = vrot.slane %v1986_v49, %v13056_v46  ;;  %2533 = vst.msk [vmem:[#allocation2 + $0xe9] sm:$0x3f] %vm2506_vm3, %v1985_v48  ;;  %v555_v59 = vmax.f32 %v438_v44, 0.0  ;;  %v2821_v51 = vld [vmem:[#allocation2 + $0xa1] ss:$2 sm:$0x7f] }
 0x147   :  { %3086 = vrot.lane.b32.xlu0 %v2626_v57, %s12701_s1  ;;  %v1147_v61 = vrot.slane %v1133_v54, %v13056_v46  ;;  %v1148_v62 = vcombine.high %v1140_v55, %v1140_v55  ;;  %v2010_v63 = vrot.slane %v2003_v53, %v13056_v46  ;;  %v2017_v1 = vrot.slane %v1140_v55, %v13056_v46  ;;  %v13356_v54 = vpop.permute.xlu0 %3538 }
 0x148   :  { %v2002_v2 = vcombine.low %v1994_v58, %v2001_v52  ;;  %v1150_v3 = vcombine.high %v555_v59, %v555_v59  ;;  %v1157_v4 = vrot.slane %v555_v59, %v13056_v46  ;;  %v442_v5 = vpop.f32.mrb[56].mxu0 }
 0x149   :  { %v2018_v7 = vcombine.low %v2010_v63, %v2017_v1  ;;  %v2019_v8 = vcombine.low %v1148_v62, %v1147_v61  ;;  %v1149_v9 = vcombine.high %v1147_v61, %v1147_v61  ;;  %v443_v10 = vadd.f32 %v13293_v28, %v442_v5  ;;  %v12174_v11 = vpop.f32.mrb[57].mxu0  ;;  %v2987_v1 = vld [vmem:[#allocation2 + $0x93] ss:$2 sm:$0x7f] }
 0x14a   :  { %3476 = vrot.lane.b32.xlu1 %v2875_v6, %s12700_s14  ;;  %2534 = vst.msk [vmem:[#allocation2 + $0x111] sm:$0xff] %vm577_vm2, %v2002_v2  ;;  %v1164_v14 = vrot.slane %v1150_v3, %v13056_v46  ;;  %v1165_v43 = vcombine.high %v1157_v4, %v1157_v4  ;;  %v445_v15 = vpop.f32.mrb[58].mxu0  ;;  %v2849_v5 = vld [vmem:[#allocation2 + $0xa2] ss:$2 sm:$0x7f]  ;;  %v13364_v6 = vpop.permute.xlu1 %3148 }
 0x14b   :  { %3142 = vrot.lane.b32.xlu0 %v2654_v12, %s12700_s14  ;;  %v2027_v16 = vrot.slane %v2019_v8, %v13056_v46  ;;  %2535 = vst.msk [vmem:[#allocation2 + $0x119] sm:$0x3f] %vm2506_vm3, %v2018_v7  ;;  %v2020_v17 = vcombine.low %v1149_v9, %v1157_v4  ;;  %v556_v18 = vmax.f32 %v443_v10, 0.0  ;;  %v446_v19 = vadd.f32 %v13293_v28, %v445_v15  ;;  %v12175_v20 = vpop.f32.mrb[59].mxu0 }
 0x14c   :  { %v1166_v21 = vcombine.high %v1164_v14, %v1164_v14  ;;  %v2036_v22 = vcombine.low %v1165_v43, %v1164_v14 }
 0x14d   :  { %v2034_v25 = vrot.slane %v2020_v17, %v13056_v46  ;;  %v1167_v26 = vcombine.high %v556_v18, %v556_v18  ;;  %v1174_v27 = vrot.slane %v556_v18, %v13056_v46  ;;  %v557_v29 = vmax.f32 %v446_v19, 0.0  ;;  %v13370_v17 = vpop.permute.xlu0 %3036  ;;  %v2737_v18 = vld [vmem:[#allocation2 + $0x92] ss:$2 sm:$0x7f] }
 0x14e   :  { %3532 = vrot.lane.b32.xlu1 %v2931_v23, %s12699_s18  ;;  %v2043_v31 = vrot.slane %v2036_v22, %v13056_v46  ;;  %v2050_v32 = vrot.slane %v1166_v21, %v13056_v46 }
 0x14f   :  { %3198 = vrot.lane.b32.xlu0 %v2709_v30, %s12699_s18  ;;  %v2035_v33 = vcombine.low %v2027_v16, %v2034_v25  ;;  %v1181_v34 = vrot.slane %v1167_v26, %v13056_v46  ;;  %v1182_v35 = vcombine.high %v1174_v27, %v1174_v27  ;;  %v1184_v36 = vcombine.high %v557_v29, %v557_v29  ;;  %v2877_v25 = vld [vmem:[#allocation2 + $0xa3] ss:$2 sm:$0x7f] }
 0x150   :  { %v2051_v38 = vcombine.low %v2043_v31, %v2050_v32  ;;  %v1191_v39 = vrot.slane %v557_v29, %v13056_v46  ;;  %v450_v40 = vpop.f32.mrb[60].mxu0 }
 0x151   :  { %2536 = vst.msk [vmem:[#allocation2 + $0x121] sm:$0xff] %vm577_vm2, %v2035_v33  ;;  %v1183_v44 = vcombine.high %v1181_v34, %v1181_v34  ;;  %v2052_v45 = vcombine.low %v1174_v27, %v1182_v35  ;;  %v1198_v48 = vrot.slane %v1184_v36, %v13056_v46  ;;  %v451_v49 = vadd.f32 %v13293_v28, %v450_v40  ;;  %v12178_v50 = vpop.f32.mrb[61].mxu0  ;;  %v13381_v35 = vpop.permute.xlu1 %3552 }
 0x152   :  { %3588 = vrot.lane.b32.xlu1 %v2959_v41, %s12701_s1  ;;  %2537 = vst.msk [vmem:[#allocation2 + $0x129] sm:$0x3f] %vm2506_vm3, %v2051_v38  ;;  %v1199_v52 = vcombine.high %v1191_v39, %v1191_v39  ;;  %v453_v53 = vpop.f32.mrb[62].mxu0 }
 0x153   :  { %3366 = vrot.lane.b32.xlu0 %v2821_v51, %s12699_s18  ;;  %v2053_v55 = vcombine.low %v1181_v34, %v1183_v44  ;;  %v2060_v56 = vrot.slane %v2052_v45, %v13056_v46  ;;  %v558_v57 = vmax.f32 %v451_v49, 0.0  ;;  %v12179_v58 = vpop.f32.mrb[63].mxu0  ;;  %v2083_v61 = vrot.slane %v1198_v48, %v13056_v46  ;;  %v13387_v51 = vpop.permute.xlu0 %3092 }
 0x154   :  { %v2069_v59 = vcombine.low %v1191_v39, %v1199_v52  ;;  %v1200_v62 = vcombine.high %v1198_v48, %v1198_v48  ;;  %v454_v63 = vadd.f32 %v13293_v28, %v453_v53  ;;  %v2765_v39 = vld [vmem:[#allocation2 + $0x93] ss:$2 sm:$0x7f]  ;;  %v2600_v48 = vld [vmem:[#allocation2 + $0xa1] ss:$2 sm:$0x7f] }
 0x155   :  { %v2067_v2 = vrot.slane %v2053_v55, %v13056_v46  ;;  %v1201_v3 = vcombine.high %v558_v57, %v558_v57  ;;  %v1208_v4 = vrot.slane %v558_v57, %v13056_v46 }
 0x156   :  { %3644 = vrot.lane.b32.xlu1 %v2987_v1, %s12700_s14  ;;  %v2076_v7 = vrot.slane %v2069_v59, %v13056_v46  ;;  %v559_v8 = vmax.f32 %v454_v63, 0.0  ;;  %v2656_v59 = vld [vmem:[#allocation2 + $0xa3] ss:$2 sm:$0x7f] }
 0x157   :  { %3422 = vrot.lane.b32.xlu0 %v2849_v5, %s12701_s1  ;;  %v2068_v9 = vcombine.low %v2060_v56, %v2067_v2  ;;  %v1215_v10 = vrot.slane %v1201_v3, %v13056_v46  ;;  %v1216_v11 = vcombine.high %v1208_v4, %v1208_v4  ;;  %v2085_v12 = vcombine.low %v1200_v62, %v1208_v4  ;;  %v13396_v2 = vpop.permute.xlu1 %3608  ;;  %v2628_v3 = vld [vmem:[#allocation2 + $0xa2] ss:$2 sm:$0x7f] }
 0x158   :  { %v2084_v14 = vcombine.low %v2076_v7, %v2083_v61  ;;  %v1218_v43 = vcombine.high %v559_v8, %v559_v8  ;;  %v1225_v15 = vrot.slane %v559_v8, %v13056_v46  ;;  %v458_v16 = vpop.f32.mrb[64].mxu0 }
 0x159   :  { %2538 = vst.msk [vmem:[#allocation2 + $0x131] sm:$0xff] %vm577_vm2, %v2068_v9  ;;  %v2086_v19 = vcombine.low %v1216_v11, %v1215_v10  ;;  %v2093_v20 = vrot.slane %v2085_v12, %v13056_v46  ;;  %v1217_v21 = vcombine.high %v1215_v10, %v1215_v10  ;;  %v459_v22 = vadd.f32 %v13293_v28, %v458_v16  ;;  %v12182_v23 = vpop.f32.mrb[65].mxu0  ;;  %v2961_v16 = vld [vmem:[#allocation2 + $0xb2] ss:$2 sm:$0x7f] }
 0x15a   :  { %3254 = vrot.lane.b32.xlu1 %v2737_v18, %s12701_s1  ;;  %2539 = vst.msk [vmem:[#allocation2 + $0x139] sm:$0x3f] %vm2506_vm3, %v2084_v14  ;;  %v1232_v26 = vrot.slane %v1218_v43, %v13056_v46  ;;  %v1233_v27 = vcombine.high %v1225_v15, %v1225_v15  ;;  %v461_v29 = vpop.f32.mrb[66].mxu0 }
 0x15b   :  { %3478 = vrot.lane.b32.xlu0 %v2877_v25, %s12700_s14  ;;  %v2100_v30 = vrot.slane %v2086_v19, %v13056_v46  ;;  %v2102_v31 = vcombine.low %v1217_v21, %v1225_v15  ;;  %v560_v32 = vmax.f32 %v459_v22, 0.0  ;;  %v462_v33 = vadd.f32 %v13293_v28, %v461_v29  ;;  %v12183_v34 = vpop.f32.mrb[67].mxu0  ;;  %v2933_v22 = vld [vmem:[#allocation2 + $0xb1] ss:$2 sm:$0x7f] }
 0x15c   :  { %v1234_v36 = vcombine.high %v1232_v26, %v1232_v26  ;;  %v2116_v38 = vrot.slane %v1233_v27, %v13056_v46 }
 0x15d   :  { %v2101_v40 = vcombine.low %v2093_v20, %v2100_v30  ;;  %v2109_v41 = vrot.slane %v2102_v31, %v13056_v46  ;;  %v1235_v44 = vcombine.high %v560_v32, %v560_v32  ;;  %v1242_v45 = vrot.slane %v560_v32, %v13056_v46 }
 0x15e   :  { %3310 = vrot.lane.b32.xlu1 %v2765_v39, %s12700_s14  ;;  %v2118_v49 = vcombine.low %v1232_v26, %v1234_v36  ;;  %v561_v50 = vmax.f32 %v462_v33, 0.0 }
 0x15f   :  { %3032 = vrot.lane.b32.xlu0 %v2600_v48, %s12699_s18  ;;  %2540 = vst.msk [vmem:[#allocation2 + $0x141] sm:$0xff] %vm577_vm2, %v2101_v40  ;;  %v2117_v52 = vcombine.low %v2109_v41, %v2116_v38  ;;  %v1249_v53 = vrot.slane %v1235_v44, %v13056_v46  ;;  %v1250_v55 = vcombine.high %v1242_v45, %v1242_v45  ;;  %v2989_v38 = vld [vmem:[#allocation2 + $0xb3] ss:$2 sm:$0x7f] }
 0x160   :  { %v1252_v56 = vcombine.high %v561_v50, %v561_v50  ;;  %v1259_v57 = vrot.slane %v561_v50, %v13056_v46  ;;  %v466_v58 = vpop.f32.mrb[68].mxu0  ;;  %v2126_v61 = vrot.slane %v2118_v49, %v13056_v46  ;;  %v2823_v44 = vld [vmem:[#allocation2 + $0xc1] ss:$2 sm:$0x7f] }
 0x161   :  { %2541 = vst.msk [vmem:[#allocation2 + $0x149] sm:$0x3f] %vm2506_vm3, %v2117_v52  ;;  %v1251_v62 = vcombine.high %v1249_v53, %v1249_v53  ;;  %v2119_v63 = vcombine.low %v1242_v45, %v1250_v55  ;;  %v467_v1 = vadd.f32 %v13293_v28, %v466_v58  ;;  %v12186_v12 = vpop.f32.mrb[69].mxu0 }
 0x162   :  { %3144 = vrot.lane.b32.xlu1 %v2656_v59, %s12700_s14  ;;  %v1266_v4 = vrot.slane %v1252_v56, %v13056_v46  ;;  %v1267_v5 = vcombine.high %v1259_v57, %v1259_v57  ;;  %v2149_v10 = vrot.slane %v1259_v57, %v13056_v46  ;;  %v469_v15 = vpop.f32.mrb[70].mxu0 }
 0x163   :  { %3088 = vrot.lane.b32.xlu0 %v2628_v3, %s12701_s1  ;;  %v2133_v8 = vrot.slane %v2119_v63, %v13056_v46  ;;  %v2135_v9 = vcombine.low %v1249_v53, %v1251_v62  ;;  %v562_v11 = vmax.f32 %v467_v1, 0.0  ;;  %v12187_v21 = vpop.f32.mrb[71].mxu0  ;;  %v470_v25 = vadd.f32 %v13293_v28, %v469_v15  ;;  %v2711_v1 = vld [vmem:[#allocation2 + $0xb1] ss:$2 sm:$0x7f] }
 0x164   :  { %v13401_v7 = vpop.permute.xlu0 %3246  ;;  %v2151_v14 = vcombine.low %v1267_v5, %v1266_v4  ;;  %v1268_v43 = vcombine.high %v1266_v4, %v1266_v4  ;;  %v13414_v30 = vpop.permute.xlu1 %3190  ;;  %v2851_v3 = vld [vmem:[#allocation2 + $0xc2] ss:$2 sm:$0x7f]  ;;  %v2739_v21 = vld [vmem:[#allocation2 + $0xb2] ss:$2 sm:$0x7f] }
 0x165   :  { %v2134_v18 = vcombine.low %v2126_v61, %v2133_v8  ;;  %v2142_v19 = vrot.slane %v2135_v9, %v13056_v46  ;;  %v1269_v20 = vcombine.high %v562_v11, %v562_v11  ;;  %v1276_v23 = vrot.slane %v562_v11, %v13056_v46 }
 0x166   :  { %3590 = vrot.lane.b32.xlu1 %v2961_v16, %s12701_s1  ;;  %v2159_v31 = vrot.slane %v2151_v14, %v13056_v46  ;;  %v563_v34 = vmax.f32 %v470_v25, 0.0 }
 0x167   :  { %3534 = vrot.lane.b32.xlu0 %v2933_v22, %s12699_s18  ;;  %2542 = vst.msk [vmem:[#allocation2 + $0x151] sm:$0xff] %vm577_vm2, %v2134_v18  ;;  %v2150_v27 = vcombine.low %v2142_v19, %v2149_v10  ;;  %v1283_v29 = vrot.slane %v1269_v20, %v13056_v46  ;;  %v1284_v32 = vcombine.high %v1276_v23, %v1276_v23 }
 0x168   :  { %v13410_v26 = vpop.permute.xlu0 %3302  ;;  %v2152_v33 = vcombine.low %v1268_v43, %v1276_v23  ;;  %v474_v36 = vpop.f32.mrb[72].mxu0  ;;  %v1286_v49 = vcombine.high %v563_v34, %v563_v34  ;;  %v1293_v50 = vrot.slane %v563_v34, %v13056_v46 }
 0x169   :  { %2543 = vst.msk [vmem:[#allocation2 + $0x159] sm:$0x3f] %vm2506_vm3, %v2150_v27  ;;  %v1285_v39 = vcombine.high %v1283_v29, %v1283_v29  ;;  %v475_v40 = vadd.f32 %v13293_v28, %v474_v36  ;;  %v12190_v41 = vpop.f32.mrb[73].mxu0  ;;  %v2168_v48 = vcombine.low %v1284_v32, %v1283_v29  ;;  %v2602_v29 = vld [vmem:[#allocation2 + $0xc1] ss:$2 sm:$0x7f] }
 0x16a   :  { %3646 = vrot.lane.b32.xlu1 %v2989_v38, %s12700_s14  ;;  %v2166_v45 = vrot.slane %v2152_v33, %v13056_v46  ;;  %v477_v52 = vpop.f32.mrb[74].mxu0  ;;  %v1300_v61 = vrot.slane %v1286_v49, %v13056_v46  ;;  %v1301_v62 = vcombine.high %v1293_v50, %v1293_v50 }
 0x16b   :  { %3368 = vrot.lane.b32.xlu0 %v2823_v44, %s12699_s18  ;;  %v2182_v53 = vrot.slane %v1285_v39, %v13056_v46  ;;  %v564_v55 = vmax.f32 %v475_v40, 0.0  ;;  %v12191_v56 = vpop.f32.mrb[75].mxu0  ;;  %v2175_v59 = vrot.slane %v2168_v48, %v13056_v46  ;;  %v478_v8 = vadd.f32 %v13293_v28, %v477_v52 }
 0x16c   :  { %v13424_v57 = vpop.permute.xlu1 %3080  ;;  %v2167_v58 = vcombine.low %v2159_v31, %v2166_v45  ;;  %v1302_v10 = vcombine.high %v1300_v61, %v1300_v61  ;;  %v2184_v11 = vcombine.low %v1293_v50, %v1301_v62  ;;  %v12703_v50 = vmov 1966171168  }
 0x16d   :  { %v13428_v63 = vpop.permute.xlu0 %3024  ;;  %v1303_v4 = vcombine.high %v564_v55, %v564_v55  ;;  %v1310_v5 = vrot.slane %v564_v55, %v13056_v46  ;;  %v2183_v9 = vcombine.low %v2175_v59, %v2182_v53  ;;  %v565_v43 = vmax.f32 %v478_v8, 0.0  ;;  %v2767_v55 = vld [vmem:[#allocation2 + $0xb3] ss:$2 sm:$0x7f] }
 0x16e   :  { %3200 = vrot.lane.b32.xlu1 %v2711_v1, %s12699_s18  ;;  %2544 = vst.msk [vmem:[#allocation2 + $0x161] sm:$0xff] %vm577_vm2, %v2167_v58  ;;  %v2185_v16 = vcombine.low %v1300_v61, %v1302_v10  ;;  %v2192_v18 = vrot.slane %v2184_v11, %v13056_v46  ;;  %v3911_v52 = vunpack.c.l.s4 %v12703_v50  ;;  %v2630_v61 = vld [vmem:[#allocation2 + $0xc2] ss:$2 sm:$0x7f] }
 0x16f   :  { %3424 = vrot.lane.b32.xlu0 %v2851_v3, %s12701_s1  ;;  %v1317_v12 = vrot.slane %v1303_v4, %v13056_v46  ;;  %v1318_v14 = vcombine.high %v1310_v5, %v1310_v5  ;;  %2545 = vst.msk [vmem:[#allocation2 + $0x169] sm:$0x3f] %vm2506_vm3, %v2183_v9  ;;  %v1320_v27 = vcombine.high %v565_v43, %v565_v43  ;;  %v2562_v4 = vld [vmem:[#allocation2] ss:$2 sm:$0x7f] }
 0x170   :  { %v13436_v15 = vpop.permute.xlu1 %3470  ;;  %v482_v19 = vpop.f32.mrb[76].mxu0  ;;  %v2199_v31 = vrot.slane %v2185_v16, %v13056_v46  ;;  %v1327_v32 = vrot.slane %v565_v43, %v13056_v46  ;;  %v2673_v9 = vld [vmem:[#allocation2 + $0x10] ss:$2 sm:$0x7f]  ;;  %v3912_v43 = vunpack.c.0.s8 %v3911_v52 }
 0x171   :  { %v13440_v20 = vpop.permute.xlu0 %3358  ;;  %v2201_v22 = vcombine.low %v1310_v5, %v1318_v14  ;;  %v2215_v23 = vrot.slane %v1317_v12, %v13056_v46  ;;  %v1319_v25 = vcombine.high %v1317_v12, %v1317_v12  ;;  %v483_v33 = vadd.f32 %v13293_v28, %v482_v19  ;;  %v12194_v34 = vpop.f32.mrb[77].mxu0  ;;  %v2935_v52 = vld [vmem:[#allocation2 + $0xd1] ss:$2 sm:$0x7f] }
 0x172   :  { %3256 = vrot.lane.b32.xlu1 %v2739_v21, %s12701_s1  ;;  %v1334_v38 = vrot.slane %v1320_v27, %v13056_v46  ;;  %v485_v39 = vpop.f32.mrb[78].mxu0  ;;  %v2200_v41 = vcombine.low %v2192_v18, %v2199_v31  ;;  %v1335_v44 = vcombine.high %v1327_v32, %v1327_v32  ;;  %v2879_v18 = vld [vmem:[#allocation2 + $0xc3] ss:$2 sm:$0x7f] }
 0x173   :  { %3034 = vrot.lane.b32.xlu0 %v2602_v29, %s12699_s18  ;;  %v2208_v36 = vrot.slane %v2201_v22, %v13056_v46  ;;  %v2217_v45 = vcombine.low %v1319_v25, %v1327_v32  ;;  %v566_v48 = vmax.f32 %v483_v33, 0.0  ;;  %v12195_v49 = vpop.f32.mrb[79].mxu0  ;;  %v486_v59 = vadd.f32 %v13293_v28, %v485_v39  ;;  %v2658_v27 = vld [vmem:[#allocation2 + $0xc3] ss:$2 sm:$0x7f] }
 0x174   :  { %v13450_v40 = vpop.permute.xlu1 %3192  ;;  %v1336_v58 = vcombine.high %v1334_v38, %v1334_v38  ;;  %2546 = vst.msk [vmem:[#allocation2 + $0x171] sm:$0xff] %vm577_vm2, %v2200_v41  ;;  %v2218_v62 = vcombine.low %v1335_v44, %v1334_v38  ;;  %v3724_v25 = vsel %vm577_vm2, %v2673_v9, %v13414_v30  ;;  %v3680_v30 = vsel %vm577_vm2, %v2562_v4, %v13322_v60 }
 0x175   :  { %v13452_v53 = vpop.permute.xlu0 %3414  ;;  %v2216_v56 = vcombine.low %v2208_v36, %v2215_v23  ;;  %v2225_v1 = vrot.slane %v2217_v45, %v13056_v46  ;;  %v1337_v3 = vcombine.high %v566_v48, %v566_v48  ;;  %v1344_v5 = vrot.slane %v566_v48, %v13056_v46 }
 0x176   :  { %3312 = vrot.lane.b32.xlu1 %v2767_v55, %s12700_s14  ;;  %v567_v8 = vmax.f32 %v486_v59, 0.0  ;;  %v2232_v11 = vrot.slane %v2218_v62, %v13056_v46  ;;  %v13483_v59 = vsub.s32 %v3912_v43, %v13047_v42  ;;  %v3738_v60 = vsel %vm3694_vm4, %v3724_v25, %v13401_v7 }
 0x177   :  { %3090 = vrot.lane.b32.xlu0 %v2630_v61, %s12701_s1  ;;  %2547 = vst.msk [vmem:[#allocation2 + $0x179] sm:$0x3f] %vm2506_vm3, %v2216_v56  ;;  %v1351_v12 = vrot.slane %v1337_v3, %v13056_v46  ;;  %v1352_v19 = vcombine.high %v1344_v5, %v1344_v5  ;;  %v2234_v21 = vcombine.low %v1336_v58, %v1344_v5  ;;  %v2713_v61 = vld [vmem:[#allocation2 + $0xd1] ss:$2 sm:$0x7f] }
 0x178   :  { %v13461_v10 = vpop.permute.xlu1 %3248  ;;  %v490_v14 = vpop.f32.mrb[80].mxu0  ;;  %v1354_v22 = vcombine.high %v567_v8, %v567_v8  ;;  %v2233_v29 = vcombine.low %v2225_v1, %v2232_v11  ;;  %v1361_v32 = vrot.slane %v567_v8, %v13056_v46  ;;  %v2785_v1 = vld [vmem:[#allocation2 + $0x20] ss:$2 sm:$0x7f]  ;;  %v3695_v8 = vsel %vm3694_vm4, %v3680_v30, %v13338_v24 }
 0x179   :  { %v13465_v16 = vpop.permute.xlu0 %3136  ;;  %v12198_v23 = vpop.f32.mrb[81].mxu0  ;;  %v1353_v31 = vcombine.high %v1351_v12, %v1351_v12  ;;  %v2241_v34 = vrot.slane %v2234_v21, %v13056_v46  ;;  %v2248_v36 = vrot.slane %v1352_v19, %v13056_v46  ;;  %v491_v39 = vadd.f32 %v13293_v28, %v490_v14  ;;  %v2897_v11 = vld [vmem:[#allocation2 + $0x30] ss:$2 sm:$0x7f] }
 0x17a   :  { %3480 = vrot.lane.b32.xlu1 %v2879_v18, %s12700_s14  ;;  %v493_v33 = vpop.f32.mrb[82].mxu0  ;;  %v1368_v38 = vrot.slane %v1354_v22, %v13056_v46  ;;  %2548 = vst.msk [vmem:[#allocation2 + $0x181] sm:$0xff] %vm577_vm2, %v2233_v29  ;;  %v1369_v48 = vcombine.high %v1361_v32, %v1361_v32  ;;  %v13496_v7 = vsel %vm3709_vm5, %v3738_v60, %v13410_v26  ;;  %v2963_v21 = vld [vmem:[#allocation2 + $0xd2] ss:$2 sm:$0x7f] }
 0x17b   :  { %3146 = vrot.lane.b32.xlu0 %v2658_v27, %s12700_s14  ;;  %v12199_v41 = vpop.f32.mrb[83].mxu0  ;;  %v2250_v45 = vcombine.low %v1351_v12, %v1353_v31  ;;  %v494_v49 = vadd.f32 %v13293_v28, %v493_v33  ;;  %v2249_v55 = vcombine.low %v2241_v34, %v2248_v36  ;;  %v568_v58 = vmax.f32 %v491_v39, 0.0 }
 0x17c   :  { %v13478_v44 = vpop.permute.xlu1 %3304  ;;  %v1370_v56 = vcombine.high %v1368_v38, %v1368_v38  ;;  %v2251_v3 = vcombine.low %v1361_v32, %v1369_v48  ;;  %v3766_v9 = vsel %vm577_vm2, %v2785_v1, %v13440_v20  ;;  %v2825_v20 = vld [vmem:[#allocation2 + $0xe1] ss:$2 sm:$0x7f]  ;;  %v13522_v60 = vsel %vm3709_vm5, %v3695_v8, %v13307_v47  ;;  %v2853_v1 = vld [vmem:[#allocation2 + $0xe2] ss:$2 sm:$0x7f] }
 0x17d   :  { %v3527_v50 = vpop.permute.xlu0 %3526  ;;  %v2258_v62 = vrot.slane %v2250_v45, %v13056_v46  ;;  %2549 = vst.msk [vmem:[#allocation2 + $0x189] sm:$0x3f] %vm2506_vm3, %v2249_v55  ;;  %v1371_v5 = vcombine.high %v568_v58, %v568_v58  ;;  %v1378_v42 = vrot.slane %v568_v58, %v13056_v46  ;;  %v569_v14 = vmax.f32 %v494_v49, 0.0 }
 0x17e   :  { %3536 = vrot.lane.b32.xlu1 %v2935_v52, %s12699_s18  ;;  %v2267_v4 = vcombine.low %v1368_v38, %v1370_v56  ;;  %v3780_v18 = vsel %vm3694_vm4, %v3766_v9, %v13452_v53  ;;  %v2265_v22 = vrot.slane %v2251_v3, %v13056_v46  ;;  %v3808_v25 = vsel %vm577_vm2, %v2897_v11, %v3527_v50  ;;  %v2991_v50 = vld [vmem:[#allocation2 + $0xd3] ss:$2 sm:$0x7f]  ;;  %v2675_v9 = vld [vmem:[#allocation2 + $0x30] ss:$2 sm:$0x7f] }
 0x17f   :  { %3202 = vrot.lane.b32.xlu0 %v2713_v61, %s12699_s18  ;;  %v1385_v24 = vrot.slane %v1371_v5, %v13056_v46  ;;  %v1386_v23 = vcombine.high %v1378_v42, %v1378_v42  ;;  %v2281_v29 = vrot.slane %v1378_v42, %v13056_v46  ;;  %v1388_v31 = vcombine.high %v569_v14, %v569_v14  ;;  %v2564_v5 = vld [vmem:[#allocation2 + $0x20] ss:$2 sm:$0x7f] }
 0x180   :  { %v13500_v12 = vpop.permute.xlu1 %3360  ;;  %v498_v43 = vpop.f32.mrb[84].mxu0  ;;  %v2274_v27 = vrot.slane %v2267_v4, %v13056_v46  ;;  %v2266_v53 = vcombine.low %v2258_v62, %v2265_v22  ;;  %v1395_v36 = vrot.slane %v569_v14, %v13056_v46  ;;  %v3794_v61 = vsel %vm3709_vm5, %v3780_v18, %v13436_v15  ;;  %v2741_v22 = vld [vmem:[#allocation2 + $0xd2] ss:$2 sm:$0x7f] }
 0x181   :  { %v3583_v19 = vpop.permute.xlu0 %3582  ;;  %v12202_v26 = vpop.f32.mrb[85].mxu0  ;;  %v2283_v33 = vcombine.low %v1386_v23, %v1385_v24  ;;  %v1387_v34 = vcombine.high %v1385_v24, %v1385_v24  ;;  %v1402_v45 = vrot.slane %v1388_v31, %v13056_v46  ;;  %v499_v48 = vadd.f32 %v13293_v28, %v498_v43 }
 0x182   :  { %3592 = vrot.lane.b32.xlu1 %v2963_v21, %s12701_s1  ;;  %v501_v32 = vpop.f32.mrb[86].mxu0  ;;  %v3822_v39 = vsel %vm3694_vm4, %v3808_v25, %v3583_v19  ;;  %v2282_v30 = vcombine.low %v2274_v27, %v2281_v29  ;;  %2550 = vst.msk [vmem:[#allocation2 + $0x191] sm:$0xff] %vm577_vm2, %v2266_v53  ;;  %v1403_v55 = vcombine.high %v1395_v36, %v1395_v36 }
 0x183   :  { %3370 = vrot.lane.b32.xlu0 %v2825_v20, %s12699_s18  ;;  %v12203_v38 = vpop.f32.mrb[87].mxu0  ;;  %v2291_v52 = vrot.slane %v2283_v33, %v13056_v46  ;;  %v2284_v56 = vcombine.low %v1387_v34, %v1395_v36  ;;  %v502_v58 = vadd.f32 %v13293_v28, %v501_v32  ;;  %v1404_v3 = vcombine.high %v1402_v45, %v1402_v45  ;;  %v2881_v20 = vld [vmem:[#allocation2 + $0xe3] ss:$2 sm:$0x7f] }
 0x184   :  { %v13513_v41 = vpop.permute.xlu1 %3416  ;;  %2551 = vst.msk [vmem:[#allocation2 + $0x199] sm:$0x3f] %vm2506_vm3, %v2282_v30  ;;  %v3906_v4 = vcombine.low %v13522_v60, %v13496_v7  ;;  %v2300_v8 = vcombine.low %v1403_v55, %v1402_v45  ;;  %v570_v14 = vmax.f32 %v499_v48, 0.0  ;;  %v3681_v18 = vsel %vm577_vm2, %v2564_v5, %v13428_v63 }
 0x185   :  { %v3639_v49 = vpop.permute.xlu0 %3638  ;;  %v2298_v47 = vrot.slane %v2284_v56, %v13056_v46  ;;  %v2314_v11 = vrot.slane %v1404_v3, %v13056_v46  ;;  %v3725_v19 = vsel %vm577_vm2, %v2675_v9, %v13450_v40  ;;  %v571_v23 = vmax.f32 %v502_v58, 0.0  ;;  %v2715_v58 = vld [vmem:[#allocation2 + $0x111] ss:$2 sm:$0x7f] }
 0x186   :  { %v3836_v62 = vsel %vm3709_vm5, %v3822_v39, %v3639_v49  ;;  %3648 = vrot.lane.b32.xlu1 %v2991_v50, %s12700_s14  ;;  %v2307_v27 = vrot.slane %v2300_v8, %v13056_v46  ;;  %v1405_v29 = vcombine.high %v570_v14, %v570_v14  ;;  %v1412_v31 = vrot.slane %v570_v14, %v13056_v46  ;;  %v2769_v50 = vld [vmem:[#allocation2 + $0xd3] ss:$2 sm:$0x7f]  ;;  %v2606_v14 = vld [vmem:[#allocation2 + $0x121] ss:$2 sm:$0x7f] }
 0x187   :  { %v3908_v42 = vcombine.low %v3794_v61, %v3836_v62  ;;  %3426 = vrot.lane.b32.xlu0 %v2853_v1, %s12701_s1  ;;  %v2299_v24 = vcombine.low %v2291_v52, %v2298_v47  ;;  %v3916_v40 = vrot.slane %v3906_v4, %v13483_v59  ;;  %v3739_v32 = vsel %vm3694_vm4, %v3725_v19, %v13461_v10  ;;  %v2787_v52 = vld [vmem:[#allocation2 + $0x40] ss:$2 sm:$0x7f] }
 0x188   :  { %v3529_v15 = vpop.permute.xlu1 %3528  ;;  %v13534_v43 = vpop.f32.mrb[88].mxu0  ;;  %v3909_v53 = vcombine.high %v3794_v61, %v3836_v62  ;;  %v2315_v36 = vcombine.low %v2307_v27, %v2314_v11  ;;  %v1419_v38 = vrot.slane %v1405_v29, %v13056_v46  ;;  %v1420_v39 = vcombine.high %v1412_v31, %v1412_v31 }
 0x189   :  { %v13540_v21 = vpop.permute.xlu0 %3026  ;;  %v12206_v26 = vpop.f32.mrb[89].mxu0  ;;  %v3930_v25 = vrot.slane %v3908_v42, %v13483_v59  ;;  %2552 = vst.msk [vmem:[#allocation2 + $0x1a1] sm:$0xff] %vm577_vm2, %v2299_v24  ;;  %v1422_v30 = vcombine.high %v571_v23, %v571_v23  ;;  %v3907_v45 = vcombine.high %v13522_v60, %v13496_v7  ;;  %v3696_v48 = vsel %vm3694_vm4, %v3681_v18, %v13424_v57  ;;  %v2899_v60 = vld [vmem:[#allocation2 + $0x50] ss:$2 sm:$0x7f] }
 0x18a   :  { %3258 = vrot.lane.b32.xlu1 %v2741_v22, %s12701_s1  ;;  %v13546_v63 = vpop.f32.mrb[90].mxu0  ;;  %v13560_v10 = vsel %vm3709_vm5, %v3739_v32, %v13478_v44  ;;  %2553 = vst.msk [vmem:[#allocation2 + $0x1a9] sm:$0x3f] %vm2506_vm3, %v2315_v36  ;;  %v1421_v61 = vcombine.high %v1419_v38, %v1419_v38  ;;  %v2316_v62 = vcombine.low %v1412_v31, %v1420_v39  ;;  %v2743_v24 = vld [vmem:[#allocation2 + $0x112] ss:$2 sm:$0x7f] }
 0x18b   :  { %3482 = vrot.lane.b32.xlu0 %v2881_v20, %s12700_s14  ;;  %v12207_v33 = vpop.f32.mrb[91].mxu0  ;;  %v3938_v55 = vcombine.low %v3916_v40, %v3930_v25  ;;  %v3939_v56 = vcombine.high %v3916_v40, %v3930_v25  ;;  %v13566_v7 = vsel %vm3709_vm5, %v3696_v48, %v13465_v16  ;;  %v3767_v57 = vsel %vm577_vm2, %v2787_v52, %v13500_v12  ;;  %v2634_v39 = vld [vmem:[#allocation2 + $0x122] ss:$2 sm:$0x7f]  ;;  %v13607_v48 = vld [vmem:[%s16305_s2] ss:$0 sm:$0xff] }
 0x18c   :  { %v3585_v34 = vpop.permute.xlu1 %3584  ;;  %v3937_v44 = vrot.slane %v3909_v53, %v13483_v59  ;;  %v2317_v3 = vcombine.low %v1419_v38, %v1421_v61  ;;  %v2324_v4 = vrot.slane %v2316_v62, %v13056_v46  ;;  %v1429_v5 = vrot.slane %v571_v23, %v13056_v46 }
 0x18d   :  { %v3473_v49 = vpop.permute.xlu0 %3472  ;;  %v1436_v42 = vrot.slane %v1422_v30, %v13056_v46  ;;  %v3923_v16 = vrot.slane %v3907_v45, %v13483_v59  ;;  %v3973_v12 = vcombine.low %v13566_v7, %v13560_v10  ;;  %v3781_v8 = vsel %vm3694_vm4, %v3767_v57, %v13513_v41 }
 0x18e   :  { %3314 = vrot.lane.b32.xlu1 %v2769_v50, %s12700_s14  ;;  %v3809_v9 = vsel %vm577_vm2, %v2899_v60, %v3529_v15  ;;  %v3948_v19 = vrot.slane %v3938_v55, %v13483_v59  ;;  %v3962_v22 = vrot.slane %v3939_v56, %v13483_v59  ;;  %v2331_v23 = vrot.slane %v2317_v3, %v13056_v46 }
 0x18f   :  { %3204 = vrot.lane.b32.xlu0 %v2715_v58, %s12699_s18  ;;  %v1437_v26 = vcombine.high %v1429_v5, %v1429_v5  ;;  %v3940_v20 = vcombine.low %v3923_v16, %v3937_v44  ;;  %v3941_v41 = vcombine.high %v3923_v16, %v3937_v44  ;;  %v13594_v15 = vsel %vm3709_vm5, %v3781_v8, %v3473_v49 }
 0x190   :  { %v13572_v1 = vpop.permute.xlu1 %3194  ;;  %v13577_v47 = vpop.f32.mrb[92].mxu0  ;;  %v507_v27 = vadd.f32 %v13293_v28, %v13534_v43  ;;  %v3823_v31 = vsel %vm3694_vm4, %v3809_v9, %v3585_v34  ;;  %v2332_v32 = vcombine.low %v2324_v4, %v2331_v23  ;;  %v2347_v33 = vrot.slane %v1436_v42, %v13056_v46  ;;  %v2771_v34 = vld [vmem:[#allocation2 + $0x113] ss:$2 sm:$0x7f] }
 0x191   :  { %v13585_v11 = vpop.permute.xlu0 %3082  ;;  %v12210_v18 = vpop.f32.mrb[93].mxu0  ;;  %v2333_v53 = vcombine.low %v1429_v5, %v1437_v26  ;;  %v1438_v45 = vcombine.high %v1436_v42, %v1436_v42  ;;  %v510_v28 = vadd.f32 %v13607_v48, %v13546_v63  ;;  %v4844_v49 = vcombine.low %v3948_v19, %v3962_v22 }
 0x192   :  { %3038 = vrot.lane.b32.xlu1 %v2606_v14, %s12699_s18  ;;  %v13591_v25 = vpop.f32.mrb[94].mxu0  ;;  %v572_v30 = vmax.f32 %v507_v27, 0.0  ;;  %v11000_v50 = vcombine.high %v3948_v19, %v3962_v22  ;;  %2554 = vst.msk [vmem:[#allocation2 + $0x1b1] sm:$0xff] %vm577_vm2, %v2332_v32  ;;  %v3974_v55 = vcombine.high %v13566_v7, %v13560_v10  ;;  %v13618_v56 = vrot.slane %v3973_v12, %v13483_v59  ;;  %v2883_v7 = vld [vmem:[#allocation2 + $0x123] ss:$2 sm:$0x7f] }
 0x193   :  { %3260 = vrot.lane.b32.xlu0 %v2743_v24, %s12701_s1  ;;  %v12211_v29 = vpop.f32.mrb[95].mxu0  ;;  %v2340_v52 = vrot.slane %v2333_v53, %v13056_v46  ;;  %v3955_v61 = vrot.slane %v3940_v20, %v13483_v59  ;;  %v3969_v62 = vrot.slane %v3941_v41, %v13483_v59  ;;  %v573_v16 = vmax.f32 %v510_v28, 0.0  ;;  %v2827_v14 = vld [vmem:[#allocation2 + $0x121] ss:$2 sm:$0x7f] }
 0x194   :  { %v3641_v40 = vpop.permute.xlu1 %3640  ;;  %v1439_v63 = vcombine.high %v572_v30, %v572_v30  ;;  %v1446_v58 = vrot.slane %v572_v30, %v13056_v46  ;;  %v4854_v18 = vrot.slane %v4844_v49, %v13483_v59  ;;  %v4861_v19 = vrot.slane %v11000_v50, %v13483_v59 }
 0x195   :  { %v13601_v36 = vpop.permute.xlu0 %3138  ;;  %v3837_v38 = vsel %vm3709_vm5, %v3823_v31, %v3641_v40  ;;  %v2348_v60 = vcombine.low %v2340_v52, %v2347_v33  ;;  %v515_v27 = vadd.f32 %v13607_v48, %v13577_v47  ;;  %v3971_v29 = vcombine.high %v3955_v61, %v3955_v61  ;;  %v2717_v40 = vld [vmem:[#allocation2 + $0x131] ss:$2 sm:$0x7f] }
 0x196   :  { %v3975_v43 = vcombine.low %v13594_v15, %v3837_v38  ;;  %3094 = vrot.lane.b32.xlu1 %v2634_v39, %s12701_s1  ;;  %v13634_v4 = vrot.slane %v1439_v63, %v13056_v46  ;;  %v1454_v5 = vcombine.high %v1446_v58, %v1446_v58  ;;  %v2349_v42 = vcombine.low %v1438_v45, %v1446_v58  ;;  %v2566_v39 = vld [vmem:[#allocation2 + $0x40] ss:$2 sm:$0x7f] }
 0x197   :  { %3316 = vrot.lane.b32.xlu0 %v2771_v34, %s12700_s14  ;;  %v3976_v8 = vcombine.high %v13594_v15, %v3837_v38  ;;  %2555 = vst.msk [vmem:[#allocation2 + $0x1b9] sm:$0x3f] %vm2506_vm3, %v2348_v60  ;;  %v4846_v15 = vcombine.low %v3955_v61, %v3969_v62  ;;  %v1456_v53 = vcombine.high %v573_v16, %v573_v16  ;;  %v2855_v45 = vld [vmem:[#allocation2 + $0x122] ss:$2 sm:$0x7f] }
 0x198   :  { %v13625_v57 = vrot.slane %v3975_v43, %v13483_v59  ;;  %v13627_v44 = vpop.permute.xlu1 %3250  ;;  %v13629_v3 = vpop.f32.mrb[96].mxu0  ;;  %v2350_v24 = vcombine.low %v1454_v5, %v13634_v4  ;;  %v2357_v23 = vrot.slane %v2349_v42, %v13056_v46  ;;  %v1463_v33 = vrot.slane %v573_v16, %v13056_v46  ;;  %v2677_v34 = vld [vmem:[#allocation2 + $0x50] ss:$2 sm:$0x7f] }
 0x199   :  { %v13631_v10 = vpop.permute.xlu0 %3362  ;;  %v12214_v12 = vpop.f32.mrb[97].mxu0  ;;  %v13656_v38 = vrot.slane %v3974_v55, %v13483_v59  ;;  %v13659_v30 = vrot.slane %v3976_v8, %v13483_v59  ;;  %v4877_v47 = vcombine.high %v4854_v18, %v4861_v19  ;;  %v4876_v28 = vcombine.low %v4854_v18, %v4861_v19  ;;  %v2662_v42 = vld [vmem:[#allocation2 + $0x123] ss:$2 sm:$0x7f] }
 0x19a   :  { %v4005_v9 = vcombine.low %v13618_v56, %v13625_v57  ;;  %3484 = vrot.lane.b32.xlu1 %v2883_v7, %s12700_s14  ;;  %v525_v22 = vpop.f32.mrb[98].mxu0  ;;  %v2364_v32 = vrot.slane %v2350_v24, %v13056_v46  ;;  %v3682_v43 = vsel %vm577_vm2, %v2566_v39, %v13540_v21  ;;  %v1455_v52 = vcombine.high %v13634_v4, %v13634_v4  ;;  %v2745_v7 = vld [vmem:[#allocation2 + $0x132] ss:$2 sm:$0x7f] }
 0x19b   :  { %3372 = vrot.lane.b32.xlu0 %v2827_v14, %s12699_s18  ;;  %v12215_v26 = vpop.f32.mrb[99].mxu0  ;;  %v3726_v55 = vsel %vm577_vm2, %v2677_v34, %v13572_v1  ;;  %v4006_v63 = vcombine.high %v13618_v56, %v13625_v57  ;;  %v4868_v61 = vrot.slane %v4846_v15, %v13483_v59  ;;  %v574_v21 = vmax.f32 %v515_v27, 0.0  ;;  %v2773_v27 = vld [vmem:[#allocation2 + $0x133] ss:$2 sm:$0x7f] }
 0x19c   :  { %v13647_v20 = vrot.slane %v4005_v9, %v13483_v59  ;;  %v3307_v41 = vpop.permute.xlu1 %3306  ;;  %v2365_v50 = vcombine.low %v2357_v23, %v2364_v32  ;;  %v3697_v62 = vsel %vm3694_vm4, %v3682_v43, %v13585_v11  ;;  %v1470_v4 = vrot.slane %v1456_v53, %v13056_v46  ;;  %v2789_v26 = vld [vmem:[#allocation2 + $0x60] ss:$2 sm:$0x7f]  ;;  %v2939_v39 = vld [vmem:[#allocation2 + $0x131] ss:$2 sm:$0x7f] }
 0x19d   :  { %v13651_v31 = vpop.permute.xlu0 %3418  ;;  %v1471_v1 = vcombine.high %v1463_v33, %v1463_v33  ;;  %v13682_v56 = vsel %vm3709_vm5, %v3697_v62, %v13601_v36  ;;  %v4007_v57 = vcombine.low %v13656_v38, %v13659_v30  ;;  %v13688_v11 = vrot.slane %v4877_v47, %v13483_v59 }
 0x19e   :  { %3206 = vrot.lane.b32.xlu1 %v2717_v40, %s12699_s18  ;;  %v4847_v49 = vcombine.low %v3971_v29, %v13647_v20  ;;  %2556 = vst.msk [vmem:[#allocation2 + $0x1c1] sm:$0xff] %vm577_vm2, %v2365_v50  ;;  %v13691_v16 = vrot.slane %v4876_v28, %v13483_v59  ;;  %v1472_v9 = vcombine.high %v1470_v4, %v1470_v4 }
 0x19f   :  { %3428 = vrot.lane.b32.xlu0 %v2855_v45, %s12701_s1  ;;  %v2366_v14 = vcombine.low %v1455_v52, %v1463_v33  ;;  %v13695_v36 = vrot.slane %v4006_v63, %v13483_v59  ;;  %v2380_v19 = vrot.slane %v1471_v1, %v13056_v46  ;;  %v1473_v22 = vcombine.high %v574_v21, %v574_v21  ;;  %v2829_v63 = vld [vmem:[#allocation2 + $0x141] ss:$2 sm:$0x7f] }
 0x1a0   :  { %v13672_v58 = vpop.permute.xlu1 %3140  ;;  %v4875_v5 = vrot.slane %v4847_v49, %v13483_v59  ;;  %v518_v24 = vadd.f32 %v13607_v48, %v13591_v25  ;;  %v3740_v23 = vsel %vm3694_vm4, %v3726_v55, %v13627_v44  ;;  %v4008_v53 = vcombine.high %v13656_v38, %v13659_v30 }
 0x1a1   :  { %v3475_v60 = vpop.permute.xlu0 %3474  ;;  %v2373_v32 = vrot.slane %v2366_v14, %v13056_v46  ;;  %v13714_v25 = vrot.slane %v4007_v57, %v13483_v59  ;;  %v3768_v44 = vsel %vm577_vm2, %v2789_v26, %v13631_v10  ;;  %v13719_v33 = vsel %vm3709_vm5, %v3740_v23, %v3307_v41 }
 0x1a2   :  { %3262 = vrot.lane.b32.xlu1 %v2745_v7, %s12701_s1  ;;  %v4879_v12 = vcombine.high %v4868_v61, %v4875_v5  ;;  %v4878_v8 = vcombine.low %v4868_v61, %v4875_v5  ;;  %v4037_v45 = vcombine.high %v13647_v20, %v13647_v20  ;;  %v2382_v43 = vcombine.low %v1470_v4, %v1472_v9  ;;  %v2901_v7 = vld [vmem:[#allocation2 + $0x70] ss:$2 sm:$0x7f] }
 0x1a3   :  { %3150 = vrot.lane.b32.xlu0 %v2662_v42, %s12700_s14  ;;  %v2381_v28 = vcombine.low %v2373_v32, %v2380_v19  ;;  %v4039_v34 = vcombine.high %v13695_v36, %v13695_v36  ;;  %v1480_v41 = vrot.slane %v574_v21, %v13056_v46  ;;  %v1487_v49 = vrot.slane %v1473_v22, %v13056_v46  ;;  %v2967_v5 = vld [vmem:[#allocation2 + $0x132] ss:$2 sm:$0x7f] }
 0x1a4   :  { %v3531_v18 = vpop.permute.xlu1 %3530  ;;  %v13705_v29 = vrot.slane %v4879_v12, %v13483_v59  ;;  %v13708_v40 = vrot.slane %v4878_v8, %v13483_v59  ;;  %v575_v50 = vmax.f32 %v518_v24, 0.0  ;;  %v4040_v52 = vcombine.low %v13682_v56, %v13719_v33 }
 0x1a5   :  { %v13702_v15 = vpop.permute.xlu0 %3028  ;;  %v3782_v20 = vsel %vm3694_vm4, %v3768_v44, %v13651_v31  ;;  %2557 = vst.msk [vmem:[#allocation2 + $0x1c9] sm:$0x3f] %vm2506_vm3, %v2381_v28  ;;  %v523_v61 = vadd.f32 %v13607_v48, %v13629_v3  ;;  %v1488_v4 = vcombine.high %v1480_v41, %v1480_v41  ;;  %v1489_v31 = vcombine.high %v1487_v49, %v1487_v49  ;;  %v2995_v44 = vld [vmem:[#allocation2 + $0x133] ss:$2 sm:$0x7f] }
 0x1a6   :  { %3318 = vrot.lane.b32.xlu1 %v2773_v27, %s12700_s14  ;;  %v4909_v47 = vcombine.high %v13691_v16, %v13708_v40  ;;  %v4911_v21 = vcombine.high %v13688_v11, %v13705_v29  ;;  %v13743_v62 = vsel %vm3709_vm5, %v3782_v20, %v3475_v60  ;;  %v1490_v1 = vcombine.high %v575_v50, %v575_v50 }
 0x1a7   :  { %3540 = vrot.lane.b32.xlu0 %v2939_v39, %s12699_s18  ;;  %v3810_v57 = vsel %vm577_vm2, %v2901_v7, %v3531_v18  ;;  %v2390_v42 = vrot.slane %v2382_v43, %v13056_v46  ;;  %v1497_v48 = vrot.slane %v575_v50, %v13056_v46  ;;  %v576_v3 = vmax.f32 %v523_v61, 0.0  ;;  %v2857_v18 = vld [vmem:[#allocation2 + $0x142] ss:$2 sm:$0x7f] }
 0x1a8   :  { %v3587_v10 = vpop.permute.xlu1 %3586  ;;  %v2383_v8 = vcombine.low %v1480_v41, %v1488_v4  ;;  %v2399_v9 = vcombine.low %v1487_v49, %v1489_v31  ;;  %v1504_v14 = vrot.slane %v1490_v1, %v13056_v46  ;;  %v4050_v27 = vrot.slane %v4040_v52, %v13483_v59  ;;  %v2941_v7 = vld [vmem:[#allocation2 + $0x151] ss:$2 sm:$0x7f] }
 0x1a9   :  { %v13735_v55 = vpop.permute.xlu0 %3084  ;;  %v3824_v12 = vsel %vm3694_vm4, %v3810_v57, %v3587_v10  ;;  %v1505_v24 = vcombine.high %v1497_v48, %v1497_v48  ;;  %v2413_v23 = vrot.slane %v1497_v48, %v13056_v46  ;;  %v1507_v26 = vcombine.high %v576_v3, %v576_v3  ;;  %v2608_v48 = vld [vmem:[#allocation2 + $0x141] ss:$2 sm:$0x7f] }
 0x1aa   :  { %3374 = vrot.lane.b32.xlu1 %v2829_v63, %s12699_s18  ;;  %v4912_v39 = vcombine.low %v13695_v36, %v4037_v45  ;;  %v2397_v28 = vrot.slane %v2383_v8, %v13056_v46  ;;  %v2406_v43 = vrot.slane %v2399_v9, %v13056_v46  ;;  %v1506_v41 = vcombine.high %v1504_v14, %v1504_v14  ;;  %v2969_v9 = vld [vmem:[#allocation2 + $0x152] ss:$2 sm:$0x7f] }
 0x1ab   :  { %3596 = vrot.lane.b32.xlu0 %v2967_v5, %s12701_s1  ;;  %v2415_v10 = vcombine.low %v1505_v24, %v1504_v14  ;;  %v1514_v49 = vrot.slane %v576_v3, %v13056_v46  ;;  %v4913_v20 = vcombine.low %v4039_v34, %v13714_v25  ;;  %v1521_v61 = vrot.slane %v1507_v26, %v13056_v46  ;;  %v2885_v26 = vld [vmem:[#allocation2 + $0x143] ss:$2 sm:$0x7f] }
 0x1ac   :  { %v3643_v60 = vpop.permute.xlu1 %3642  ;;  %v2398_v63 = vcombine.low %v2390_v42, %v2397_v28  ;;  %v4038_v36 = vcombine.high %v13714_v25, %v13714_v25  ;;  %v2414_v5 = vcombine.low %v2406_v43, %v2413_v23  ;;  %v4036_v31 = vrot.slane %v4008_v53, %v13483_v59 }
 0x1ad   :  { %v13753_v19 = vsel %vm3709_vm5, %v3824_v12, %v3643_v60  ;;  %v13755_v22 = vpop.permute.xlu0 %3364  ;;  %v1522_v4 = vcombine.high %v1514_v49, %v1514_v49  ;;  %v2423_v25 = vrot.slane %v2415_v10, %v13056_v46  ;;  %v1523_v34 = vcombine.high %v1521_v61, %v1521_v61  ;;  %v2719_v10 = vld [vmem:[#allocation2 + $0x151] ss:$2 sm:$0x7f] }
 0x1ae   :  { %v4042_v32 = vcombine.low %v13743_v62, %v13753_v19  ;;  %3430 = vrot.lane.b32.xlu1 %v2857_v18, %s12701_s1  ;;  %2558 = vst.msk [vmem:[#allocation2 + $0x1d1] sm:$0xff] %vm577_vm2, %v2398_v63  ;;  %v2416_v42 = vcombine.low %v1506_v41, %v1514_v49  ;;  %v4922_v53 = vrot.slane %v4912_v39, %v13483_v59 }
 0x1af   :  { %3652 = vrot.lane.b32.xlu0 %v2995_v44, %s12700_s14  ;;  %2559 = vst.msk [vmem:[#allocation2 + $0x1d9] sm:$0x3f] %vm2506_vm3, %v2414_v5  ;;  %v2432_v3 = vcombine.low %v1522_v4, %v1521_v61  ;;  %v4929_v60 = vrot.slane %v4913_v20, %v13483_v59  ;;  %v4914_v14 = vcombine.low %v4036_v31, %v4038_v36  ;;  %v2997_v4 = vld [vmem:[#allocation2 + $0x153] ss:$2 sm:$0x7f] }
 0x1b0   :  { %v4064_v50 = vrot.slane %v4042_v32, %v13483_v59  ;;  %v13768_v52 = vpop.permute.xlu1 %3196  ;;  %v2430_v18 = vrot.slane %v2416_v42, %v13056_v46  ;;  %v2446_v23 = vrot.slane %v1523_v34, %v13056_v46  ;;  %v4910_v34 = vcombine.low %v13688_v11, %v13705_v29 }
 0x1b1   :  { %v13774_v45 = vpop.permute.xlu0 %3420  ;;  %v2439_v24 = vrot.slane %v2432_v3, %v13056_v46  ;;  %v4945_v28 = vcombine.high %v4922_v53, %v4929_v60  ;;  %v4936_v41 = vrot.slane %v4914_v14, %v13483_v59  ;;  %v4944_v46 = vcombine.low %v4922_v53, %v4929_v60 }
 0x1b2   :  { %v4072_v1 = vcombine.low %v4050_v27, %v4064_v50  ;;  %v4073_v57 = vcombine.high %v4050_v27, %v4064_v50  ;;  %3542 = vrot.lane.b32.xlu1 %v2941_v7, %s12699_s18  ;;  %v2431_v32 = vcombine.low %v2423_v25, %v2430_v18  ;;  %v2636_v50 = vld [vmem:[#allocation2 + $0x142] ss:$2 sm:$0x7f]  ;;  %v4043_v7 = vcombine.high %v13743_v62, %v13753_v19  ;;  %v2664_v25 = vld [vmem:[#allocation2 + $0x143] ss:$2 sm:$0x7f] }
 0x1b3   :  { %3040 = vrot.lane.b32.xlu0 %v2608_v48, %s12699_s18  ;;  %v2447_v44 = vcombine.low %v2439_v24, %v2446_v23  ;;  %v4961_v36 = vrot.slane %v4945_v28, %v13483_v59  ;;  %v4041_v48 = vcombine.high %v13682_v56, %v13719_v33  ;;  %v4908_v62 = vcombine.low %v13691_v16, %v13708_v40  ;;  %v2747_v18 = vld [vmem:[#allocation2 + $0x152] ss:$2 sm:$0x7f] }
 0x1b4   :  { %v13786_v12 = vrot.slane %v4072_v1, %v13483_v59  ;;  %v13789_v38 = vrot.slane %v4073_v57, %v13483_v59  ;;  %v13791_v30 = vpop.permute.xlu1 %3252  ;;  %2560 = vst.msk [vmem:[#allocation2 + $0x1e1] sm:$0xff] %vm577_vm2, %v2431_v32  ;;  %v4954_v1 = vrot.slane %v4944_v46, %v13483_v59  ;;  %v4071_v14 = vrot.slane %v4043_v7, %v13483_v59  ;;  %v2859_v46 = vld [vmem:[#allocation2 + $0x162] ss:$2 sm:$0x7f] }
 0x1b5   :  { %v13795_v8 = vpop.permute.xlu0 %3030  ;;  %2561 = vst.msk [vmem:[#allocation2 + $0x1e9] sm:$0x3f] %vm2506_vm3, %v2447_v44  ;;  %v4057_v44 = vrot.slane %v4041_v48, %v13483_v59  ;;  %v2887_v48 = vld [vmem:[#allocation2 + $0x163] ss:$2 sm:$0x7f] }
 0x1b6   :  { %3598 = vrot.lane.b32.xlu1 %v2969_v9, %s12701_s1  ;;  %v4915_v27 = vcombine.low %v13786_v12, %v13789_v38  ;;  %v2568_v9 = vld [vmem:[#allocation2 + $0x60] ss:$2 sm:$0x7f] }
 0x1b7   :  { %3486 = vrot.lane.b32.xlu0 %v2885_v26, %s12700_s14  ;;  %v2679_v26 = vld [vmem:[#allocation2 + $0x70] ss:$2 sm:$0x7f]  ;;  %v3683_v28 = vsel %vm577_vm2, %v2568_v9, %v13702_v15  ;;  %v4074_v40 = vcombine.low %v4057_v44, %v4071_v14 }
 0x1b8   :  { %v3309_v39 = vpop.permute.xlu1 %3308  ;;  %v4943_v49 = vrot.slane %v4915_v27, %v13483_v59  ;;  %v2831_v27 = vld [vmem:[#allocation2 + $0x161] ss:$2 sm:$0x7f]  ;;  %v3698_v11 = vsel %vm3694_vm4, %v3683_v28, %v13735_v55 }
 0x1b9   :  { %v13804_v43 = vpop.permute.xlu0 %3086  ;;  %v4089_v7 = vrot.slane %v4074_v40, %v13483_v59 }
 0x1ba   :  { %3208 = vrot.lane.b32.xlu1 %v2719_v10, %s12699_s18  ;;  %v4947_v20 = vcombine.high %v4936_v41, %v4943_v49  ;;  %v4946_v63 = vcombine.low %v4936_v41, %v4943_v49  ;;  %v3727_v10 = vsel %vm577_vm2, %v2679_v26, %v13768_v52  ;;  %v2775_v49 = vld [vmem:[#allocation2 + $0x153] ss:$2 sm:$0x7f]  ;;  %v2903_v52 = vld [vmem:[#allocation2 + $0x90] ss:$2 sm:$0x7f] }
 0x1bb   :  { %3096 = vrot.lane.b32.xlu0 %v2636_v50, %s12701_s1  ;;  %v3741_v29 = vsel %vm3694_vm4, %v3727_v10, %v13791_v30  ;;  %v3713_v30 = vsel %vm3709_vm5, %v3698_v11, %v13672_v58 }
 0x1bc   :  { %v3477_v61 = vpop.permute.xlu1 %3476  ;;  %v4975_v31 = vrot.slane %v4947_v20, %v13483_v59  ;;  %v4968_v57 = vrot.slane %v4946_v63, %v13483_v59  ;;  %v3755_v41 = vsel %vm3709_vm5, %v3741_v29, %v3309_v39 }
 0x1bd   :  { %v13815_v5 = vpop.permute.xlu0 %3142  ;;  %v4107_v20 = vcombine.low %v3713_v30, %v3755_v41 }
 0x1be   :  { %3654 = vrot.lane.b32.xlu1 %v2997_v4, %s12700_s14  ;;  %v4978_v19 = vcombine.low %v4961_v36, %v4975_v31  ;;  %v4976_v42 = vcombine.low %v4954_v1, %v4968_v57  ;;  %v4977_v3 = vcombine.high %v4954_v1, %v4968_v57  ;;  %v4979_v53 = vcombine.high %v4961_v36, %v4975_v31  ;;  %v2943_v1 = vld [vmem:[#allocation2 + $0x171] ss:$2 sm:$0x7f] }
 0x1bf   :  { %3152 = vrot.lane.b32.xlu0 %v2664_v25, %s12700_s14  ;;  %v4117_v25 = vrot.slane %v4107_v20, %v13483_v59 }
 0x1c0   :  { %v3533_v60 = vpop.permute.xlu1 %3532  ;;  %v5738_v33 = vpack.c.bf16 %v4978_v19, %v4910_v34  ;;  %v5737_v24 = vpack.c.bf16 %v4976_v42, %v4908_v62  ;;  %v13834_v23 = vpack.c.bf16 %v4979_v53, %v4911_v21  ;;  %v13840_v32 = vpack.c.bf16 %v4977_v3, %v4909_v47  ;;  %v2791_v21 = vld [vmem:[#allocation2 + $0x80] ss:$2 sm:$0x7f]  ;;  %v2971_v53 = vld [vmem:[#allocation2 + $0x172] ss:$2 sm:$0x7f] }
 0x1c1   :  { %v13829_v56 = vpop.permute.xlu0 %3198  ;;  %v4075_v47 = vcombine.high %v4057_v44, %v4071_v14  ;;  %v3769_v55 = vsel %vm577_vm2, %v2791_v21, %v13755_v22  ;;  %v3811_v50 = vsel %vm577_vm2, %v2903_v52, %v3533_v60  ;;  %v4108_v42 = vcombine.high %v3713_v30, %v3755_v41  ;;  %v2610_v14 = vld [vmem:[#allocation2 + $0x161] ss:$2 sm:$0x7f]  ;;  %v2570_v41 = vld [vmem:[#allocation2 + $0x80] ss:$2 sm:$0x7f] }
 0x1c2   :  { %3264 = vrot.lane.b32.xlu1 %v2747_v18, %s12701_s1  ;;  %6060 = vmatprep.mubr.bf16.mxu1 %v5738_v33  ;;  %v3783_v39 = vsel %vm3694_vm4, %v3769_v55, %v13774_v45  ;;  %v4105_v18 = vcombine.high %v4089_v7, %v4089_v7  ;;  %v2612_v52 = vld [vmem:[#allocation2 + $0x181] ss:$2 sm:$0x7f]  ;;  %v2681_v30 = vld [vmem:[#allocation2 + $0x90] ss:$2 sm:$0x7f] }
 0x1c3   :  { %3376 = vrot.lane.b32.xlu0 %v2831_v27, %s12699_s18  ;;  %6061 = vmatmul.mubr.bf16.vlgmr.msra.gmra.mrb[0].mxu1 %v5737_v24  ;;  %v4103_v4 = vrot.slane %v4075_v47, %v13483_v59  ;;  %v3797_v22 = vsel %vm3709_vm5, %v3783_v39, %v3477_v61  ;;  %v11001_v61 = vcombine.high %v13786_v12, %v13789_v38  ;;  %v2999_v27 = vld [vmem:[#allocation2 + $0x173] ss:$2 sm:$0x7f] }
 0x1c4   :  { %v3589_v16 = vpop.permute.xlu1 %3588  ;;  %v4124_v12 = vrot.slane %v4108_v42, %v13483_v59  ;;  %v2721_v42 = vld [vmem:[#allocation2 + $0x171] ss:$2 sm:$0x7f] }
 0x1c5   :  { %v13853_v15 = vpop.permute.xlu0 %3366  ;;  %v3825_v63 = vsel %vm3694_vm4, %v3811_v50, %v3589_v16  ;;  %v4981_v19 = vcombine.low %v4089_v7, %v4103_v4  ;;  %v4990_v44 = vrot.slane %v11001_v61, %v13483_v59  ;;  %v2638_v16 = vld [vmem:[#allocation2 + $0x162] ss:$2 sm:$0x7f]  ;;  %v2666_v50 = vld [vmem:[#allocation2 + $0x163] ss:$2 sm:$0x7f] }
 0x1c6   :  { %3320 = vrot.lane.b32.xlu1 %v2775_v49, %s12700_s14 }
 0x1c7   :  { %3432 = vrot.lane.b32.xlu0 %v2859_v46, %s12701_s1  ;;  %v4997_v28 = vrot.slane %v4981_v19, %v13483_v59 }
 0x1c8   :  { %v3645_v36 = vpop.permute.xlu1 %3644 }
 0x1c9   :  { %v3839_v31 = vsel %vm3709_vm5, %v3825_v63, %v3645_v36  ;;  %v13869_v58 = vpop.permute.xlu0 %3422  ;;  %v5013_v46 = vcombine.high %v4990_v44, %v4997_v28  ;;  %v5012_v55 = vcombine.low %v4990_v44, %v4997_v28  ;;  %v3684_v63 = vsel %vm577_vm2, %v2570_v41, %v13795_v8  ;;  %v2668_v28 = vld [vmem:[#allocation2 + $0x183] ss:$2 sm:$0x7f] }
 0x1ca   :  { %v4109_v57 = vcombine.low %v3797_v22, %v3839_v31  ;;  %3544 = vrot.lane.b32.xlu1 %v2943_v1, %s12699_s18  ;;  %v4110_v45 = vcombine.high %v3797_v22, %v3839_v31  ;;  %v3728_v36 = vsel %vm577_vm2, %v2681_v30, %v13829_v56  ;;  %v3699_v4 = vsel %vm3694_vm4, %v3684_v63, %v13804_v43  ;;  %v2793_v22 = vld [vmem:[#allocation2 + $0xa0] ss:$2 sm:$0x7f] }
 0x1cb   :  { %3488 = vrot.lane.b32.xlu0 %v2887_v48, %s12700_s14  ;;  %v13916_v61 = vrot.slane %v5013_v46, %v13483_v59  ;;  %v13919_v43 = vrot.slane %v5012_v55, %v13483_v59  ;;  %v2723_v46 = vld [vmem:[#allocation2 + $0x191] ss:$2 sm:$0x7f] }
 0x1cc   :  { %v4131_v34 = vrot.slane %v4109_v57, %v13483_v59  ;;  %v3255_v62 = vpop.permute.xlu1 %3254  ;;  %v13881_v33 = vrot.slane %v4110_v45, %v13483_v59  ;;  %v3770_v45 = vsel %vm577_vm2, %v2793_v22, %v13853_v15  ;;  %v2751_v22 = vld [vmem:[#allocation2 + $0x192] ss:$2 sm:$0x7f] }
 0x1cd   :  { %v13877_v3 = vpop.permute.xlu0 %3478  ;;  %v3742_v31 = vsel %vm3694_vm4, %v3728_v36, %v3255_v62 }
 0x1ce   :  { %v4139_v60 = vcombine.low %v4117_v25, %v4131_v34  ;;  %v4140_v9 = vcombine.high %v4117_v25, %v4131_v34  ;;  %3600 = vrot.lane.b32.xlu1 %v2971_v53, %s12701_s1  ;;  %v4141_v40 = vcombine.low %v4124_v12, %v13881_v33  ;;  %v2905_v25 = vld [vmem:[#allocation2 + $0xb0] ss:$2 sm:$0x7f]  ;;  %v2640_v34 = vld [vmem:[#allocation2 + $0x182] ss:$2 sm:$0x7f]  ;;  %v4142_v62 = vcombine.high %v4124_v12, %v13881_v33 }
 0x1cf   :  { %3042 = vrot.lane.b32.xlu0 %v2610_v14, %s12699_s18  ;;  %v3784_v33 = vsel %vm3694_vm4, %v3770_v45, %v13869_v58 }
 0x1d0   :  { %v4149_v24 = vrot.slane %v4139_v60, %v13483_v59  ;;  %v3311_v26 = vpop.permute.xlu1 %3310  ;;  %v4163_v10 = vrot.slane %v4140_v9, %v13483_v59  ;;  %v4156_v7 = vrot.slane %v4141_v40, %v13483_v59  ;;  %v13932_v60 = vsel %vm3709_vm5, %v3699_v4, %v13815_v5 }
 0x1d1   :  { %v13886_v38 = vpop.permute.xlu0 %3032  ;;  %v13913_v8 = vsel %vm3709_vm5, %v3742_v31, %v3311_v26 }
 0x1d2   :  { %v4171_v11 = vcombine.high %v4149_v24, %v4149_v24  ;;  %v4982_v29 = vcombine.low %v4105_v18, %v4149_v24  ;;  %3656 = vrot.lane.b32.xlu1 %v2999_v27, %s12700_s14  ;;  %v4172_v9 = vcombine.high %v4156_v7, %v4156_v7  ;;  %v4173_v14 = vcombine.high %v4163_v10, %v4163_v10 }
 0x1d3   :  { %3098 = vrot.lane.b32.xlu0 %v2638_v16, %s12701_s1  ;;  %v4174_v18 = vcombine.low %v13932_v60, %v13913_v8  ;;  %v13946_v27 = vsel %vm3709_vm5, %v3784_v33, %v13877_v3 }
 0x1d4   :  { %v4983_v47 = vcombine.low %v4163_v10, %v4171_v11  ;;  %v13894_v21 = vpop.permute.xlu1 %3144  ;;  %v5004_v39 = vrot.slane %v4982_v29, %v13483_v59  ;;  %v4170_v10 = vrot.slane %v4142_v62, %v13483_v59  ;;  %v2749_v29 = vld [vmem:[#allocation2 + $0x172] ss:$2 sm:$0x7f]  ;;  %v5048_v16 = vcombine.low %v4173_v14, %v4156_v7  ;;  %v2779_v62 = vld [vmem:[#allocation2 + $0x193] ss:$2 sm:$0x7f] }
 0x1d5   :  { %v13896_v49 = vpop.permute.xlu0 %3088  ;;  %v4184_v3 = vrot.slane %v4174_v18, %v13483_v59 }
 0x1d6   :  { %3044 = vrot.lane.b32.xlu1 %v2612_v52, %s12699_s18  ;;  %v5011_v20 = vrot.slane %v4983_v47, %v13483_v59  ;;  %v5049_v40 = vcombine.low %v4170_v10, %v4172_v9  ;;  %v5058_v36 = vrot.slane %v5048_v16, %v13483_v59  ;;  %v2835_v10 = vld [vmem:[#allocation2 + $0x1a1] ss:$2 sm:$0x7f] }
 0x1d7   :  { %3154 = vrot.lane.b32.xlu0 %v2666_v50, %s12700_s14  ;;  %v2777_v50 = vld [vmem:[#allocation2 + $0x173] ss:$2 sm:$0x7f]  ;;  %v2889_v16 = vld [vmem:[#allocation2 + $0x183] ss:$2 sm:$0x7f] }
 0x1d8   :  { %v3591_v1 = vpop.permute.xlu1 %3590  ;;  %v5015_v57 = vcombine.high %v5004_v39, %v5011_v20  ;;  %v5014_v48 = vcombine.low %v5004_v39, %v5011_v20  ;;  %v5065_v7 = vrot.slane %v5049_v40, %v13483_v59 }
 0x1d9   :  { %v3535_v56 = vpop.permute.xlu0 %3534 }
 0x1da   :  { %v3812_v19 = vsel %vm577_vm2, %v2905_v25, %v3535_v56  ;;  %3100 = vrot.lane.b32.xlu1 %v2640_v34, %s12701_s1  ;;  %v13925_v15 = vrot.slane %v5015_v57, %v13483_v59  ;;  %v13928_v53 = vrot.slane %v5014_v48, %v13483_v59  ;;  %v2833_v57 = vld [vmem:[#allocation2 + $0x181] ss:$2 sm:$0x7f]  ;;  %v5081_v25 = vcombine.high %v5058_v36, %v5065_v7 }
 0x1db   :  { %3210 = vrot.lane.b32.xlu0 %v2721_v42, %s12699_s18  ;;  %v3826_v26 = vsel %vm3694_vm4, %v3812_v19, %v3591_v1  ;;  %v5080_v19 = vcombine.low %v5058_v36, %v5065_v7  ;;  %v2861_v42 = vld [vmem:[#allocation2 + $0x182] ss:$2 sm:$0x7f] }
 0x1dc   :  { %v3647_v24 = vpop.permute.xlu1 %3646  ;;  %v5047_v12 = vcombine.high %v13916_v61, %v13925_v15  ;;  %v5045_v5 = vcombine.high %v13919_v43, %v13928_v53  ;;  %v5097_v18 = vrot.slane %v5081_v25, %v13483_v59  ;;  %v5046_v40 = vcombine.low %v13916_v61, %v13925_v15  ;;  %v2909_v61 = vld [vmem:[#allocation2 + $0xf0] ss:$2 sm:$0x7f] }
 0x1dd   :  { %v13949_v58 = vsel %vm3709_vm5, %v3826_v26, %v3647_v24  ;;  %v13951_v44 = vpop.permute.xlu0 %3368 }
 0x1de   :  { %v4176_v11 = vcombine.low %v13946_v27, %v13949_v58  ;;  %3156 = vrot.lane.b32.xlu1 %v2668_v28, %s12700_s14  ;;  %v4177_v26 = vcombine.high %v13946_v27, %v13949_v58  ;;  %v5044_v27 = vcombine.low %v13919_v43, %v13928_v53 }
 0x1df   :  { %3266 = vrot.lane.b32.xlu0 %v2749_v29, %s12701_s1 }
 0x1e0   :  { %v4198_v47 = vrot.slane %v4176_v11, %v13483_v59  ;;  %v13960_v41 = vpop.permute.xlu1 %3200  ;;  %v5090_v11 = vrot.slane %v5080_v19, %v13483_v59  ;;  %v4205_v36 = vrot.slane %v4177_v26, %v13483_v59  ;;  %v2891_v19 = vld [vmem:[#allocation2 + $0x1a3] ss:$2 sm:$0x7f] }
 0x1e1   :  { %v13962_v52 = vpop.permute.xlu0 %3424 }
 0x1e2   :  { %v4206_v55 = vcombine.low %v4184_v3, %v4198_v47  ;;  %v4207_v30 = vcombine.high %v4184_v3, %v4198_v47  ;;  %3212 = vrot.lane.b32.xlu1 %v2723_v46, %s12699_s18  ;;  %v4175_v46 = vcombine.high %v13932_v60, %v13913_v8  ;;  %v2863_v8 = vld [vmem:[#allocation2 + $0x1a2] ss:$2 sm:$0x7f] }
 0x1e3   :  { %3322 = vrot.lane.b32.xlu0 %v2777_v50, %s12700_s14 }
 0x1e4   :  { %v4216_v39 = vrot.slane %v4206_v55, %v13483_v59  ;;  %v4230_v20 = vrot.slane %v4207_v30, %v13483_v59  ;;  %v3257_v63 = vpop.permute.xlu1 %3256  ;;  %v4191_v15 = vrot.slane %v4175_v46, %v13483_v59  ;;  %v2574_v46 = vld [vmem:[#allocation2 + $0xc0] ss:$2 sm:$0x7f] }
 0x1e5   :  { %v13970_v4 = vpop.permute.xlu0 %3034 }
 0x1e6   :  { %v5050_v31 = vcombine.low %v4216_v39, %v4230_v20  ;;  %v11002_v1 = vcombine.high %v4216_v39, %v4230_v20  ;;  %3268 = vrot.lane.b32.xlu1 %v2751_v22, %s12701_s1  ;;  %v2572_v20 = vld [vmem:[#allocation2 + $0xa0] ss:$2 sm:$0x7f] }
 0x1e7   :  { %3378 = vrot.lane.b32.xlu0 %v2833_v57, %s12699_s18 }
 0x1e8   :  { %v3313_v48 = vpop.permute.xlu1 %3312  ;;  %v5072_v45 = vrot.slane %v5050_v31, %v13483_v59  ;;  %v5079_v56 = vrot.slane %v11002_v1, %v13483_v59  ;;  %v2683_v31 = vld [vmem:[#allocation2 + $0xb0] ss:$2 sm:$0x7f]  ;;  %v2945_v1 = vld [vmem:[#allocation2 + $0x191] ss:$2 sm:$0x7f] }
 0x1e9   :  { %v13976_v34 = vpop.permute.xlu0 %3090  ;;  %v3729_v57 = vsel %vm577_vm2, %v2683_v31, %v13960_v41  ;;  %v2973_v41 = vld [vmem:[#allocation2 + $0x192] ss:$2 sm:$0x7f] }
 0x1ea   :  { %3324 = vrot.lane.b32.xlu1 %v2779_v62, %s12700_s14  ;;  %v5083_v9 = vcombine.high %v5072_v45, %v5079_v56  ;;  %v5082_v14 = vcombine.low %v5072_v45, %v5079_v56  ;;  %v3743_v53 = vsel %vm3694_vm4, %v3729_v57, %v3257_v63  ;;  %v4208_v45 = vcombine.low %v4191_v15, %v4205_v36  ;;  %v2795_v56 = vld [vmem:[#allocation2 + $0xc0] ss:$2 sm:$0x7f]  ;;  %v2975_v31 = vld [vmem:[#allocation2 + $0x1b2] ss:$2 sm:$0x7f] }
 0x1eb   :  { %3434 = vrot.lane.b32.xlu0 %v2861_v42, %s12701_s1  ;;  %v3757_v25 = vsel %vm3709_vm5, %v3743_v53, %v3313_v48  ;;  %v2907_v42 = vld [vmem:[#allocation2 + $0xd0] ss:$2 sm:$0x7f] }
 0x1ec   :  { %v3481_v33 = vpop.permute.xlu1 %3480  ;;  %v5111_v24 = vrot.slane %v5083_v9, %v13483_v59  ;;  %v5104_v29 = vrot.slane %v5082_v14, %v13483_v59  ;;  %v4209_v9 = vcombine.high %v4191_v15, %v4205_v36  ;;  %v3686_v36 = vsel %vm577_vm2, %v2574_v46, %v13970_v4  ;;  %v2670_v46 = vld [vmem:[#allocation2 + $0x1a3] ss:$2 sm:$0x7f] }
 0x1ed   :  { %v13984_v28 = vpop.permute.xlu0 %3146  ;;  %v3701_v53 = vsel %vm3694_vm4, %v3686_v36, %v13976_v34 }
 0x1ee   :  { %3380 = vrot.lane.b32.xlu1 %v2835_v10, %s12699_s18  ;;  %v5114_v3 = vcombine.low %v5097_v18, %v5111_v24  ;;  %v5115_v47 = vcombine.high %v5097_v18, %v5111_v24  ;;  %v5112_v58 = vcombine.low %v5090_v11, %v5104_v29  ;;  %v5113_v55 = vcombine.high %v5090_v11, %v5104_v29  ;;  %v2947_v29 = vld [vmem:[#allocation2 + $0x1b1] ss:$2 sm:$0x7f] }
 0x1ef   :  { %3490 = vrot.lane.b32.xlu0 %v2889_v16, %s12700_s14  ;;  %v14033_v10 = vrot.slane %v4208_v45, %v13483_v59 }
 0x1f0   :  { %v3537_v30 = vpop.permute.xlu1 %3536  ;;  %v5742_v50 = vpack.c.bf16 %v5114_v3, %v5046_v40  ;;  %v13999_v39 = vpack.c.bf16 %v5115_v47, %v5047_v12  ;;  %v5741_v60 = vpack.c.bf16 %v5112_v58, %v5044_v27  ;;  %v14007_v22 = vpack.c.bf16 %v5113_v55, %v5045_v5  ;;  %v2797_v58 = vld [vmem:[#allocation2 + $0xe0] ss:$2 sm:$0x7f] }
 0x1f1   :  { %v14002_v7 = vpop.permute.xlu0 %3202  ;;  %v3685_v12 = vsel %vm577_vm2, %v2572_v20, %v13886_v38  ;;  %v3814_v38 = vsel %vm577_vm2, %v2909_v61, %v13356_v54  ;;  %v3813_v14 = vsel %vm577_vm2, %v2907_v42, %v3537_v30  ;;  %v4237_v47 = vrot.slane %v4209_v9, %v13483_v59  ;;  %v3003_v9 = vld [vmem:[#allocation2 + $0x1b3] ss:$2 sm:$0x7f] }
 0x1f2   :  { %6068 = vmatprep.mubr.bf16.mxu1 %v5742_v50  ;;  %3436 = vrot.lane.b32.xlu1 %v2863_v8, %s12701_s1  ;;  %v3700_v43 = vsel %vm3694_vm4, %v3685_v12, %v13896_v49  ;;  %v3771_v49 = vsel %vm577_vm2, %v2795_v56, %v13951_v44  ;;  %v3828_v16 = vsel %vm3694_vm4, %v3814_v38, %v13330_v13 }
 0x1f3   :  { %3546 = vrot.lane.b32.xlu0 %v2945_v1, %s12699_s18  ;;  %6069 = vmatmul.mubr.bf16.gmra.mrb[4].mxu1 %v5741_v60  ;;  %v3715_v63 = vsel %vm3709_vm5, %v3700_v43, %v13894_v21  ;;  %v3785_v48 = vsel %vm3694_vm4, %v3771_v49, %v13962_v52  ;;  %v3001_v52 = vld [vmem:[#allocation2 + $0x193] ss:$2 sm:$0x7f]  ;;  %v3842_v50 = vsel %vm3709_vm5, %v3828_v16, %v13347_v37  ;;  %v2685_v1 = vld [vmem:[#allocation2 + $0xd0] ss:$2 sm:$0x7f] }
 0x1f4   :  { %v3593_v5 = vpop.permute.xlu1 %3592  ;;  %v4241_v18 = vcombine.low %v3715_v63, %v3757_v25  ;;  %v4242_v54 = vcombine.high %v3715_v63, %v3757_v25  ;;  %v3799_v44 = vsel %vm3709_vm5, %v3785_v48, %v3481_v33  ;;  %v4239_v20 = vcombine.high %v14033_v10, %v14033_v10  ;;  %v2614_v43 = vld [vmem:[#allocation2 + $0x1a1] ss:$2 sm:$0x7f] }
 0x1f5   :  { %v3371_v62 = vpop.permute.xlu0 %3370  ;;  %v3827_v24 = vsel %vm3694_vm4, %v3813_v14, %v3593_v5  ;;  %v5116_v37 = vcombine.low %v14033_v10, %v4237_v47  ;;  %v3730_v4 = vsel %vm577_vm2, %v2685_v1, %v14002_v7  ;;  %v3716_v38 = vsel %vm3709_vm5, %v3701_v53, %v13984_v28 }
 0x1f6   :  { %3492 = vrot.lane.b32.xlu1 %v2891_v19, %s12700_s14  ;;  %v4251_v27 = vrot.slane %v4241_v18, %v13483_v59  ;;  %v4258_v33 = vrot.slane %v4242_v54, %v13483_v59  ;;  %v3772_v8 = vsel %vm577_vm2, %v2797_v58, %v3371_v62  ;;  %v2642_v18 = vld [vmem:[#allocation2 + $0x1a2] ss:$2 sm:$0x7f] }
 0x1f7   :  { %3602 = vrot.lane.b32.xlu0 %v2973_v41, %s12701_s1 }
 0x1f8   :  { %v3649_v26 = vpop.permute.xlu1 %3648 }
 0x1f9   :  { %v3841_v11 = vsel %vm3709_vm5, %v3827_v24, %v3649_v26  ;;  %v3427_v21 = vpop.permute.xlu0 %3426 }
 0x1fa   :  { %v4243_v40 = vcombine.low %v3799_v44, %v3841_v11  ;;  %v4244_v3 = vcombine.high %v3799_v44, %v3841_v11  ;;  %3548 = vrot.lane.b32.xlu1 %v2947_v29, %s12699_s18  ;;  %v3786_v57 = vsel %vm3694_vm4, %v3772_v8, %v3427_v21 }
 0x1fb   :  { %3658 = vrot.lane.b32.xlu0 %v3001_v52, %s12700_s14 }
 0x1fc   :  { %v4265_v55 = vrot.slane %v4243_v40, %v13483_v59  ;;  %v4272_v30 = vrot.slane %v4244_v3, %v13483_v59  ;;  %v3259_v13 = vpop.permute.xlu1 %3258  ;;  %v2616_v3 = vld [vmem:[#allocation2 + $0x1c1] ss:$2 sm:$0x7f] }
 0x1fd   :  { %v3483_v60 = vpop.permute.xlu0 %3482  ;;  %v3744_v62 = vsel %vm3694_vm4, %v3730_v4, %v3259_v13 }
 0x1fe   :  { %v4273_v61 = vcombine.low %v4251_v27, %v4265_v55  ;;  %v4274_v15 = vcombine.high %v4251_v27, %v4265_v55  ;;  %v4275_v12 = vcombine.low %v4258_v33, %v4272_v30  ;;  %3604 = vrot.lane.b32.xlu1 %v2975_v31, %s12701_s1  ;;  %v3800_v5 = vsel %vm3709_vm5, %v3786_v57, %v3483_v60 }
 0x1ff   :  { %3046 = vrot.lane.b32.xlu0 %v2614_v43, %s12699_s18  ;;  %v4310_v34 = vcombine.low %v3800_v5, %v3842_v50  ;;  %v4311_v42 = vcombine.high %v3800_v5, %v3842_v50  ;;  %v4276_v49 = vcombine.high %v4258_v33, %v4272_v30  ;;  %v5126_v27 = vrot.slane %v5116_v37, %v13483_v59  ;;  %v2644_v43 = vld [vmem:[#allocation2 + $0x1c2] ss:$2 sm:$0x7f]  ;;  %v2725_v37 = vld [vmem:[#allocation2 + $0x1b1] ss:$2 sm:$0x7f] }
 0x200   :  { %v4283_v45 = vrot.slane %v4273_v61, %v13483_v59  ;;  %v4290_v56 = vrot.slane %v4275_v12, %v13483_v59  ;;  %v4297_v25 = vrot.slane %v4274_v15, %v13483_v59  ;;  %v3315_v19 = vpop.permute.xlu1 %3314 }
 0x201   :  { %v3758_v7 = vsel %vm3709_vm5, %v3744_v62, %v3315_v19  ;;  %v14069_v41 = vpop.permute.xlu0 %3204  ;;  %v4332_v44 = vrot.slane %v4310_v34, %v13483_v59  ;;  %v4339_v21 = vrot.slane %v4311_v42, %v13483_v59  ;;  %v4304_v47 = vrot.slane %v4276_v49, %v13483_v59  ;;  %v2672_v34 = vld [vmem:[#allocation2 + $0x1c3] ss:$2 sm:$0x7f] }
 0x202   :  { %v4305_v63 = vcombine.high %v4283_v45, %v4283_v45  ;;  %v4307_v14 = vcombine.high %v4297_v25, %v4297_v25  ;;  %v5117_v48 = vcombine.low %v4239_v20, %v4283_v45  ;;  %3660 = vrot.lane.b32.xlu1 %v3003_v9, %s12700_s14  ;;  %v4308_v54 = vcombine.low %v3716_v38, %v3758_v7 }
 0x203   :  { %v4309_v24 = vcombine.high %v3716_v38, %v3758_v7  ;;  %3102 = vrot.lane.b32.xlu0 %v2642_v18, %s12701_s1  ;;  %v4306_v26 = vcombine.high %v4290_v56, %v4290_v56 }
 0x204   :  { %v5118_v28 = vcombine.low %v4297_v25, %v4305_v63  ;;  %v5119_v10 = vcombine.low %v4307_v14, %v4290_v56  ;;  %v14074_v11 = vpop.permute.xlu1 %3038  ;;  %v4318_v29 = vrot.slane %v4308_v54, %v13483_v59  ;;  %v5133_v52 = vrot.slane %v5117_v48, %v13483_v59  ;;  %v2753_v63 = vld [vmem:[#allocation2 + $0x1b2] ss:$2 sm:$0x7f]  ;;  %v12285_v48 = vld [vmem:[%s16306_s3 + $0xc0] sm:$0xff]  }
 0x205   :  { %v4325_v16 = vrot.slane %v4309_v24, %v13483_v59  ;;  %v14079_v40 = vpop.permute.xlu0 %3260  ;;  %v5184_v20 = vcombine.low %v4304_v47, %v4306_v26  ;;  %11519 = vmatprep.subr.bf16.mxu1 %v12285_v48  ;;  %v12289_v48 = vld [vmem:[%s16306_s3 + $0xd0] sm:$0xff]  }
 0x206   :  { %3048 = vrot.lane.b32.xlu1 %v2616_v3, %s12699_s18  ;;  %v5140_v33 = vrot.slane %v5118_v28, %v13483_v59  ;;  %v5147_v58 = vrot.slane %v5119_v10, %v13483_v59  ;;  %v4340_v55 = vcombine.low %v4318_v29, %v4332_v44  ;;  %v4341_v30 = vcombine.high %v4318_v29, %v4332_v44  ;;  %v12286_v44 = vld [vmem:[%s16306_s3 + $0x80] sm:$0xff]  }
 0x207   :  { %v4342_v13 = vcombine.low %v4325_v16, %v4339_v21  ;;  %v4343_v50 = vcombine.high %v4325_v16, %v4339_v21  ;;  %3158 = vrot.lane.b32.xlu0 %v2670_v46, %s12700_s14  ;;  %v5149_v8 = vcombine.high %v5126_v27, %v5133_v52  ;;  %v5148_v4 = vcombine.low %v5126_v27, %v5133_v52  ;;  %v2727_v16 = vld [vmem:[#allocation2 + $0x1d1] ss:$2 sm:$0x7f] }
 0x208   :  { %v14088_v36 = vpop.permute.xlu1 %3094  ;;  %v5151_v60 = vcombine.high %v5140_v33, %v5147_v58  ;;  %v5150_v31 = vcombine.low %v5140_v33, %v5147_v58  ;;  %v4350_v1 = vrot.slane %v4340_v55, %v13483_v59  ;;  %v4364_v15 = vrot.slane %v4341_v30, %v13483_v59  ;;  %v2781_v46 = vld [vmem:[#allocation2 + $0x1b3] ss:$2 sm:$0x7f]  ;;  %11520 = vmatpush3.bf16.msra.mxu1 %v12286_v44  ;;  %v12287_v33 = vld [vmem:[%s16306_s3 + $0xc8] sm:$0xff]  }
 0x209   :  { %v14092_v61 = vrot.slane %v4342_v13, %v13483_v59  ;;  %v4371_v12 = vrot.slane %v4343_v50, %v13483_v59  ;;  %v14096_v57 = vpop.permute.xlu0 %3316  ;;  %v5165_v62 = vrot.slane %v5149_v8, %v13483_v59  ;;  %v5194_v19 = vrot.slane %v5184_v20, %v13483_v59  ;;  %v12288_v58 = vld [vmem:[%s16306_s3 + $0x88] sm:$0xff]   ;;  %11521 = vmatprep.subr.bf16.mxu1 %v12287_v33 }
 0x20a   :  { %3104 = vrot.lane.b32.xlu1 %v2644_v43, %s12701_s1  ;;  %v5179_v53 = vrot.slane %v5151_v60, %v13483_v59  ;;  %v5185_v5 = vcombine.low %v4350_v1, %v4364_v15  ;;  %v11003_v45 = vcombine.high %v4350_v1, %v4364_v15  ;;  %v5172_v49 = vrot.slane %v5150_v31, %v13483_v59  ;;  %v2755_v15 = vld [vmem:[#allocation2 + $0x1d2] ss:$2 sm:$0x7f]  ;;  %v2837_v43 = vld [vmem:[#allocation2 + $0x1c1] ss:$2 sm:$0x7f] }
 0x20b   :  { %v5187_v56 = vcombine.low %v14092_v61, %v4371_v12  ;;  %3214 = vrot.lane.b32.xlu0 %v2725_v37, %s12699_s18  ;;  %v5158_v14 = vrot.slane %v5148_v4, %v13483_v59  ;;  %v2576_v4 = vld [vmem:[#allocation2 + $0x100] ss:$2 sm:$0x7f] }
 0x20c   :  { %v14102_v25 = vpop.permute.xlu1 %3484  ;;  %v5201_v42 = vrot.slane %v5185_v5, %v13483_v59  ;;  %v5208_v7 = vrot.slane %v11003_v45, %v13483_v59  ;;  %v5183_v18 = vcombine.high %v5165_v62, %v5179_v53  ;;  %v5182_v55 = vcombine.low %v5165_v62, %v5179_v53  ;;  %11522 = vmatpush3.bf16.msra.mxu1 %v12288_v58 }
 0x20d   :  { %v14106_v38 = vpop.permute.xlu0 %3372  ;;  %v5215_v9 = vrot.slane %v5187_v56, %v13483_v59  ;;  %v5181_v21 = vcombine.high %v5158_v14, %v5172_v49  ;;  %v5180_v20 = vcombine.low %v5158_v14, %v5172_v49  ;;  %v2783_v56 = vld [vmem:[#allocation2 + $0x1d3] ss:$2 sm:$0x7f]  ;;  %v3687_v62 = vsel %vm577_vm2, %v2576_v4, %v13370_v17  ;;  %v2839_v17 = vld [vmem:[#allocation2 + $0x1e1] ss:$2 sm:$0x7f]  ;;  %11523 = vmatprep.subr.bf16.mxu1 %v12289_v48 }
 0x20e   :  { %3160 = vrot.lane.b32.xlu1 %v2672_v34, %s12700_s14  ;;  %v5217_v54 = vcombine.high %v5194_v19, %v5201_v42  ;;  %v5216_v26 = vcombine.low %v5194_v19, %v5201_v42  ;;  %v2865_v19 = vld [vmem:[#allocation2 + $0x1c2] ss:$2 sm:$0x7f]  ;;  %v2687_v34 = vld [vmem:[#allocation2 + $0x110] ss:$2 sm:$0x7f]  ;;  %v3702_v49 = vsel %vm3694_vm4, %v3687_v62, %v13387_v51  ;;  %v4373_v4 = vcombine.high %v14092_v61, %v14092_v61 }
 0x20f   :  { %3270 = vrot.lane.b32.xlu0 %v2753_v63, %s12701_s1  ;;  %v5219_v24 = vcombine.high %v5208_v7, %v5215_v9  ;;  %v5218_v10 = vcombine.low %v5208_v7, %v5215_v9  ;;  %v3731_v42 = vsel %vm577_vm2, %v2687_v34, %v14069_v41  ;;  %v2799_v7 = vld [vmem:[#allocation2 + $0x120] ss:$2 sm:$0x7f]  ;;  %v2893_v51 = vld [vmem:[#allocation2 + $0x1c3] ss:$2 sm:$0x7f] }
 0x210   :  { %v14118_v28 = vpop.permute.xlu1 %3206  ;;  %v5233_v3 = vrot.slane %v5217_v54, %v13483_v59  ;;  %v5226_v47 = vrot.slane %v5216_v26, %v13483_v59  ;;  %v3745_v63 = vsel %vm3694_vm4, %v3731_v42, %v14079_v40  ;;  %v3773_v54 = vsel %vm577_vm2, %v2799_v7, %v14106_v38  ;;  %v12291_v34 = vld [vmem:[%s16306_s3 + $0xd8] sm:$0xff]   ;;  %v12293_v61 = vld [vmem:[%s16306_s3 + $0xe0] sm:$0xff]  }
 0x211   :  { %v3429_v29 = vpop.permute.xlu0 %3428  ;;  %v5247_v52 = vrot.slane %v5219_v24, %v13483_v59  ;;  %v5240_v27 = vrot.slane %v5218_v10, %v13483_v59  ;;  %v3759_v41 = vsel %vm3709_vm5, %v3745_v63, %v14096_v57  ;;  %v2911_v24 = vld [vmem:[#allocation2 + $0x130] ss:$2 sm:$0x7f]  ;;  %v3717_v26 = vsel %vm3709_vm5, %v3702_v49, %v13364_v6  ;;  %v3005_v49 = vld [vmem:[#allocation2 + $0x1d3] ss:$2 sm:$0x7f] }
 0x212   :  { %3216 = vrot.lane.b32.xlu1 %v2727_v16, %s12699_s18  ;;  %v3787_v40 = vsel %vm3694_vm4, %v3773_v54, %v3429_v29  ;;  %v4375_v57 = vcombine.low %v3717_v26, %v3759_v41  ;;  %v12292_v42 = vld [vmem:[%s16306_s3 + $0x98] sm:$0xff]  }
 0x213   :  { %3326 = vrot.lane.b32.xlu0 %v2781_v46, %s12700_s14  ;;  %v5250_v30 = vcombine.low %v5233_v3, %v5247_v52  ;;  %v5251_v13 = vcombine.high %v5233_v3, %v5247_v52  ;;  %v5248_v8 = vcombine.low %v5226_v47, %v5240_v27  ;;  %v5249_v60 = vcombine.high %v5226_v47, %v5240_v27  ;;  %v2867_v3 = vld [vmem:[#allocation2 + $0x1e2] ss:$2 sm:$0x7f]  ;;  %v2949_v47 = vld [vmem:[#allocation2 + $0x1d1] ss:$2 sm:$0x7f] }
 0x214   :  { %v14135_v50 = vpop.permute.xlu1 %3262  ;;  %v3801_v29 = vsel %vm3709_vm5, %v3787_v40, %v14102_v25  ;;  %v4385_v33 = vrot.slane %v4375_v57, %v13483_v59  ;;  %v2895_v25 = vld [vmem:[#allocation2 + $0x1e3] ss:$2 sm:$0x7f] }
 0x215   :  { %v14137_v31 = vpop.permute.xlu0 %3150  ;;  %v5746_v1 = vpack.c.bf16 %v5250_v30, %v5182_v55  ;;  %v14139_v12 = vpack.c.bf16 %v5251_v13, %v5183_v18  ;;  %v5745_v37 = vpack.c.bf16 %v5248_v8, %v5180_v20  ;;  %v14142_v53 = vpack.c.bf16 %v5249_v60, %v5181_v21  ;;  %v12290_v18 = vld [vmem:[%s16306_s3 + $0x90] sm:$0xff]  }
 0x216   :  { %3272 = vrot.lane.b32.xlu1 %v2755_v15, %s12701_s1  ;;  %11524 = vmatpush3.bf16.msra.mxu1 %v12290_v18  ;;  %v4376_v21 = vcombine.high %v3717_v26, %v3759_v41  ;;  %v2977_v20 = vld [vmem:[#allocation2 + $0x1d2] ss:$2 sm:$0x7f]  ;;  %v12295_v26 = vld [vmem:[%s16306_s3 + $0xe8] sm:$0xff]  }
 0x217   :  { %6076 = vmatprep.mubr.bf16.mxu1 %v5746_v1  ;;  %3382 = vrot.lane.b32.xlu0 %v2837_v43, %s12699_s18  ;;  %v3007_v43 = vld [vmem:[#allocation2 + $0x1f3] ss:$2 sm:$0x7f] }
 0x218   :  { %6077 = vmatmul.mubr.bf16.gmra.mrb[8].mxu1 %v5745_v37  ;;  %v14145_v5 = vpop.permute.xlu1 %3318  ;;  %v4392_v58 = vrot.slane %v4376_v21, %v13483_v59  ;;  %11525 = vmatprep.subr.bf16.mxu1 %v12291_v34 }
 0x219   :  { %v3541_v45 = vpop.permute.xlu0 %3540 }
 0x21a   :  { %3328 = vrot.lane.b32.xlu1 %v2783_v56, %s12700_s14  ;;  %v3815_v10 = vsel %vm577_vm2, %v2911_v24, %v3541_v45  ;;  %11526 = vmatpush3.bf16.msra.mxu1 %v12292_v42  ;;  %v12294_v24 = vld [vmem:[%s16306_s3 + $0xa0] sm:$0xff]  }
 0x21b   :  { %3438 = vrot.lane.b32.xlu0 %v2865_v19, %s12701_s1  ;;  %11527 = vmatprep.subr.bf16.mxu1 %v12293_v61 }
 0x21c   :  { %v14153_v9 = vpop.permute.xlu1 %3374 }
 0x21d   :  { %v3597_v14 = vpop.permute.xlu0 %3596 }
 0x21e   :  { %3384 = vrot.lane.b32.xlu1 %v2839_v17, %s12699_s18  ;;  %v3829_v38 = vsel %vm3694_vm4, %v3815_v10, %v3597_v14  ;;  %11528 = vmatpush3.bf16.msra.mxu1 %v12294_v24 }
 0x21f   :  { %3494 = vrot.lane.b32.xlu0 %v2893_v51, %s12700_s14  ;;  %11529 = vmatprep.subr.bf16.mxu1 %v12295_v26  ;;  %v12300_v26 = vld [vmem:[%s16306_s3 + $0xb8] sm:$0xff]  }
 0x220   :  { %v14175_v44 = vpop.permute.xlu1 %3430 }
 0x221   :  { %v3653_v16 = vpop.permute.xlu0 %3652 }
 0x222   :  { %v3843_v52 = vsel %vm3709_vm5, %v3829_v38, %v3653_v16  ;;  %3440 = vrot.lane.b32.xlu1 %v2867_v3, %s12701_s1  ;;  %v2913_v3 = vld [vmem:[#allocation2 + $0x150] ss:$2 sm:$0x7f] }
 0x223   :  { %v4377_v6 = vcombine.low %v3801_v29, %v3843_v52  ;;  %v4378_v46 = vcombine.high %v3801_v29, %v3843_v52  ;;  %3550 = vrot.lane.b32.xlu0 %v2949_v47, %s12699_s18 }
 0x224   :  { %v3543_v27 = vpop.permute.xlu1 %3542 }
 0x225   :  { %v4399_v55 = vrot.slane %v4377_v6, %v13483_v59  ;;  %v4406_v30 = vrot.slane %v4378_v46, %v13483_v59  ;;  %v14187_v13 = vpop.permute.xlu0 %3040  ;;  %v12296_v46 = vld [vmem:[%s16306_s3 + $0xa8] sm:$0xff]  }
 0x226   :  { %3496 = vrot.lane.b32.xlu1 %v2895_v25, %s12700_s14  ;;  %11530 = vmatpush3.bf16.msra.mxu1 %v12296_v46 }
 0x227   :  { %v4407_v8 = vcombine.low %v4385_v33, %v4399_v55  ;;  %v4408_v60 = vcombine.high %v4385_v33, %v4399_v55  ;;  %v4409_v1 = vcombine.low %v4392_v58, %v4406_v30  ;;  %v4410_v15 = vcombine.high %v4392_v58, %v4406_v30  ;;  %3606 = vrot.lane.b32.xlu0 %v2977_v20, %s12701_s1  ;;  %v2689_v55 = vld [vmem:[#allocation2 + $0x130] ss:$2 sm:$0x7f]  ;;  %v2801_v30 = vld [vmem:[#allocation2 + $0x140] ss:$2 sm:$0x7f] }
 0x228   :  { %v3599_v37 = vpop.permute.xlu1 %3598  ;;  %v3816_v33 = vsel %vm577_vm2, %v2913_v3, %v3543_v27  ;;  %v3774_v27 = vsel %vm577_vm2, %v2801_v30, %v14153_v9 }
 0x229   :  { %v4417_v45 = vrot.slane %v4407_v8, %v13483_v59  ;;  %v4424_v56 = vrot.slane %v4409_v1, %v13483_v59  ;;  %v4431_v62 = vrot.slane %v4408_v60, %v13483_v59  ;;  %v3487_v19 = vpop.permute.xlu0 %3486  ;;  %v4438_v7 = vrot.slane %v4410_v15, %v13483_v59 }
 0x22a   :  { %3664 = vrot.lane.b32.xlu1 %v3007_v43, %s12700_s14  ;;  %v3830_v25 = vsel %vm3694_vm4, %v3816_v33, %v3599_v37  ;;  %v3732_v1 = vsel %vm577_vm2, %v2689_v55, %v14118_v28  ;;  %v2915_v55 = vld [vmem:[#allocation2 + $0x170] ss:$2 sm:$0x7f] }
 0x22b   :  { %v4439_v63 = vcombine.high %v4417_v45, %v4417_v45  ;;  %v4440_v14 = vcombine.high %v4424_v56, %v4424_v56  ;;  %v4441_v17 = vcombine.high %v4431_v62, %v4431_v62  ;;  %v5252_v48 = vcombine.low %v4373_v4, %v4417_v45  ;;  %3662 = vrot.lane.b32.xlu0 %v3005_v49, %s12700_s14  ;;  %v2578_v4 = vld [vmem:[#allocation2 + $0x120] ss:$2 sm:$0x7f]  ;;  %v12298_v49 = vld [vmem:[%s16306_s3 + $0xb0] sm:$0xff]  }
 0x22c   :  { %v14208_v18 = vpop.permute.xlu1 %3208  ;;  %v3746_v45 = vsel %vm3694_vm4, %v3732_v1, %v14135_v50  ;;  %v3688_v9 = vsel %vm577_vm2, %v2578_v4, %v14074_v11 }
 0x22d   :  { %v5253_v41 = vcombine.low %v4431_v62, %v4439_v63  ;;  %v5254_v54 = vcombine.low %v4441_v17, %v4424_v56  ;;  %v5255_v51 = vcombine.low %v4438_v7, %v4440_v14  ;;  %v14210_v40 = vpop.permute.xlu0 %3096  ;;  %v5262_v10 = vrot.slane %v5252_v48, %v13483_v59 }
 0x22e   :  { %v3788_v56 = vsel %vm3694_vm4, %v3774_v27, %v14175_v44  ;;  %v3760_v34 = vsel %vm3709_vm5, %v3746_v45, %v14145_v5  ;;  %v3703_v7 = vsel %vm3694_vm4, %v3688_v9, %v14088_v36  ;;  %v12297_v44 = vld [vmem:[%s16306_s3 + $0xf0] sm:$0xff]  }
 0x22f   :  { %v5269_v57 = vrot.slane %v5253_v41, %v13483_v59  ;;  %v5276_v21 = vrot.slane %v5254_v54, %v13483_v59  ;;  %v5283_v38 = vrot.slane %v5255_v51, %v13483_v59  ;;  %v3802_v42 = vsel %vm3709_vm5, %v3788_v56, %v3487_v19  ;;  %11531 = vmatprep.subr.bf16.mxu1 %v12297_v44  ;;  %v2691_v51 = vld [vmem:[#allocation2 + $0x150] ss:$2 sm:$0x7f] }
 0x230   :  { %v3655_v16 = vpop.permute.xlu1 %3654  ;;  %v3718_v5 = vsel %vm3709_vm5, %v3703_v7, %v14137_v31  ;;  %11532 = vmatpush3.bf16.msra.mxu1 %v12298_v49  ;;  %v12299_v31 = vld [vmem:[%s16306_s3 + $0xf8] sm:$0xff]  }
 0x231   :  { %v14222_v29 = vpop.permute.xlu0 %3152  ;;  %v5285_v52 = vcombine.high %v5262_v10, %v5269_v57  ;;  %v5287_v47 = vcombine.high %v5276_v21, %v5283_v38  ;;  %v5284_v6 = vcombine.low %v5262_v10, %v5269_v57  ;;  %v5286_v58 = vcombine.low %v5276_v21, %v5283_v38  ;;  %v2580_v10 = vld [vmem:[#allocation2 + $0x140] ss:$2 sm:$0x7f]  ;;  %11533 = vmatprep.subr.bf16.mxu1 %v12299_v31 }
 0x232   :  { %v3844_v15 = vsel %vm3709_vm5, %v3830_v25, %v3655_v16  ;;  %v4442_v19 = vcombine.low %v3718_v5, %v3760_v34  ;;  %v4443_v17 = vcombine.high %v3718_v5, %v3760_v34  ;;  %v3733_v57 = vsel %vm577_vm2, %v2691_v51, %v14208_v18 }
 0x233   :  { %v14230_v20 = vrot.slane %v5285_v52, %v13483_v59  ;;  %v14233_v8 = vrot.slane %v5287_v47, %v13483_v59  ;;  %v14236_v60 = vrot.slane %v5284_v6, %v13483_v59  ;;  %v14244_v37 = vrot.slane %v5286_v58, %v13483_v59 }
 0x234   :  { %v3265_v43 = vpop.permute.xlu1 %3264  ;;  %v4444_v50 = vcombine.low %v3802_v42, %v3844_v15  ;;  %v4445_v36 = vcombine.high %v3802_v42, %v3844_v15  ;;  %v4452_v41 = vrot.slane %v4442_v19, %v13483_v59  ;;  %v4459_v38 = vrot.slane %v4443_v17, %v13483_v59  ;;  %11534 = vmatpush3.bf16.msra.mxu1 %v12300_v26 }
 0x235   :  { %v3377_v62 = vpop.permute.xlu0 %3376  ;;  %v5319_v28 = vcombine.high %v14230_v20, %v14233_v8  ;;  %v5317_v11 = vcombine.high %v14236_v60, %v14244_v37  ;;  %v3689_v16 = vsel %vm577_vm2, %v2580_v10, %v14187_v13  ;;  %v3747_v52 = vsel %vm3694_vm4, %v3733_v57, %v3265_v43  ;;  %v2803_v13 = vld [vmem:[#allocation2 + $0x160] ss:$2 sm:$0x7f] }
 0x236   :  { %v4466_v14 = vrot.slane %v4444_v50, %v13483_v59  ;;  %v4473_v24 = vrot.slane %v4445_v36, %v13483_v59  ;;  %v3704_v6 = vsel %vm3694_vm4, %v3689_v16, %v14210_v40  ;;  %v3775_v1 = vsel %vm577_vm2, %v2803_v13, %v3377_v62 }
 0x237   :  { %v14293_v18 = vsel %vm3709_vm5, %v3704_v6, %v14222_v29 }
 0x238   :  { %v3321_v61 = vpop.permute.xlu1 %3320  ;;  %v4474_v21 = vcombine.low %v4452_v41, %v4466_v14  ;;  %v4475_v3 = vcombine.high %v4452_v41, %v4466_v14  ;;  %v4476_v58 = vcombine.low %v4459_v38, %v4473_v24  ;;  %v4477_v30 = vcombine.high %v4459_v38, %v4473_v24 }
 0x239   :  { %v3433_v63 = vpop.permute.xlu0 %3432  ;;  %v14287_v46 = vsel %vm3709_vm5, %v3747_v52, %v3321_v61 }
 0x23a   :  { %v4484_v25 = vrot.slane %v4474_v21, %v13483_v59  ;;  %v4498_v27 = vrot.slane %v4475_v3, %v13483_v59  ;;  %v4509_v15 = vcombine.low %v14293_v18, %v14287_v46  ;;  %v3789_v43 = vsel %vm3694_vm4, %v3775_v1, %v3433_v63 }
 0x23b   :  { %v4491_v62 = vrot.slane %v4476_v58, %v13483_v59  ;;  %v4505_v42 = vrot.slane %v4477_v30, %v13483_v59 }
 0x23c   :  { %v3545_v48 = vpop.permute.xlu1 %3544  ;;  %v5320_v7 = vcombine.low %v4484_v25, %v4498_v27  ;;  %v11004_v50 = vcombine.high %v4484_v25, %v4498_v27  ;;  %v4519_v44 = vrot.slane %v4509_v15, %v13483_v59  ;;  %v5316_v25 = vcombine.low %v14236_v60, %v14244_v37 }
 0x23d   :  { %v3489_v54 = vpop.permute.xlu0 %3488  ;;  %v3817_v40 = vsel %vm577_vm2, %v2915_v55, %v3545_v48  ;;  %v4507_v63 = vcombine.high %v4491_v62, %v4491_v62  ;;  %v5322_v36 = vcombine.low %v4491_v62, %v4505_v42  ;;  %v5318_v55 = vcombine.low %v14230_v20, %v14233_v8 }
 0x23e   :  { %v3803_v45 = vsel %vm3709_vm5, %v3789_v43, %v3489_v54  ;;  %v5330_v48 = vrot.slane %v5320_v7, %v13483_v59  ;;  %v5337_v41 = vrot.slane %v11004_v50, %v13483_v59 }
 0x23f   :  { %v5344_v31 = vrot.slane %v5322_v36, %v13483_v59 }
 0x240   :  { %v3601_v47 = vpop.permute.xlu1 %3600  ;;  %v5353_v10 = vcombine.high %v5330_v48, %v5337_v41  ;;  %v5352_v57 = vcombine.low %v5330_v48, %v5337_v41 }
 0x241   :  { %v14289_v33 = vpop.permute.xlu0 %3042  ;;  %v3831_v29 = vsel %vm3694_vm4, %v3817_v40, %v3601_v47 }
 0x242   :  { %v5369_v52 = vrot.slane %v5353_v10, %v13483_v59  ;;  %v5362_v6 = vrot.slane %v5352_v57, %v13483_v59  ;;  %v2917_v57 = vld [vmem:[#allocation2 + $0x190] ss:$2 sm:$0x7f] }
 0x244   :  { %v3657_v4 = vpop.permute.xlu1 %3656 }
 0x245   :  { %v14304_v56 = vpop.permute.xlu0 %3098  ;;  %v3845_v9 = vsel %vm3709_vm5, %v3831_v29, %v3657_v4 }
 0x246   :  { %v4511_v34 = vcombine.low %v3803_v45, %v3845_v9  ;;  %v4512_v7 = vcombine.high %v3803_v45, %v3845_v9  ;;  %v2582_v9 = vld [vmem:[#allocation2 + $0x160] ss:$2 sm:$0x7f] }
 0x248   :  { %v4533_v49 = vrot.slane %v4511_v34, %v13483_v59  ;;  %v14311_v5 = vpop.permute.xlu1 %3044  ;;  %v4540_v20 = vrot.slane %v4512_v7, %v13483_v59  ;;  %v2695_v7 = vld [vmem:[#allocation2 + $0x190] ss:$2 sm:$0x7f] }
 0x249   :  { %v14313_v61 = vpop.permute.xlu0 %3154 }
 0x24a   :  { %v4541_v19 = vcombine.low %v4519_v44, %v4533_v49  ;;  %v4542_v37 = vcombine.high %v4519_v44, %v4533_v49 }
 0x24c   :  { %v14316_v14 = vrot.slane %v4541_v19, %v13483_v59  ;;  %v14318_v17 = vpop.permute.xlu1 %3100  ;;  %v4510_v19 = vcombine.high %v14293_v18, %v14287_v46 }
 0x24d   :  { %v3211_v54 = vpop.permute.xlu0 %3210 }
 0x24e   :  { %v5323_v51 = vcombine.low %v4507_v63, %v14316_v14 }
 0x250   :  { %v14323_v24 = vpop.permute.xlu1 %3156  ;;  %v5351_v26 = vrot.slane %v5323_v51, %v13483_v59 }
 0x251   :  { %v3267_v21 = vpop.permute.xlu0 %3266 }
 0x252   :  { %v5355_v38 = vcombine.high %v5344_v31, %v5351_v26  ;;  %v5354_v16 = vcombine.low %v5344_v31, %v5351_v26  ;;  %v3690_v31 = vsel %vm577_vm2, %v2582_v9, %v14289_v33  ;;  %v4565_v26 = vrot.slane %v4542_v37, %v13483_v59 }
 0x253   :  { %v3705_v44 = vsel %vm3694_vm4, %v3690_v31, %v14304_v56 }
 0x254   :  { %v14327_v3 = vpop.permute.xlu1 %3212  ;;  %v5383_v47 = vrot.slane %v5355_v38, %v13483_v59  ;;  %v5376_v58 = vrot.slane %v5354_v16, %v13483_v59  ;;  %v4573_v38 = vcombine.high %v14316_v14, %v14316_v14 }
 0x255   :  { %v3323_v13 = vpop.permute.xlu0 %3322 }
 0x256   :  { %v5386_v30 = vcombine.low %v5369_v52, %v5383_v47  ;;  %v5384_v1 = vcombine.low %v5362_v6, %v5376_v58  ;;  %v5387_v40 = vcombine.high %v5369_v52, %v5383_v47  ;;  %v5385_v4 = vcombine.high %v5362_v6, %v5376_v58 }
 0x258   :  { %v14337_v27 = vpop.permute.xlu1 %3268  ;;  %v5750_v15 = vpack.c.bf16 %v5386_v30, %v5318_v55  ;;  %v5749_v43 = vpack.c.bf16 %v5384_v1, %v5316_v25  ;;  %v14342_v29 = vpack.c.bf16 %v5387_v40, %v5319_v28  ;;  %v14347_v62 = vpack.c.bf16 %v5385_v4, %v5317_v11  ;;  %v2693_v11 = vld [vmem:[#allocation2 + $0x170] ss:$2 sm:$0x7f]  ;;  %v2584_v30 = vld [vmem:[#allocation2 + $0x180] ss:$2 sm:$0x7f] }
 0x259   :  { %v3379_v34 = vpop.permute.xlu0 %3378  ;;  %v4526_v28 = vrot.slane %v4510_v19, %v13483_v59  ;;  %v3734_v41 = vsel %vm577_vm2, %v2693_v11, %v3211_v54  ;;  %v2805_v54 = vld [vmem:[#allocation2 + $0x180] ss:$2 sm:$0x7f]  ;;  %v4575_v55 = vcombine.high %v4565_v26, %v4565_v26  ;;  %v5388_v4 = vcombine.low %v4565_v26, %v4573_v38 }
 0x25a   :  { %6084 = vmatprep.mubr.bf16.mxu1 %v5750_v15  ;;  %v3748_v18 = vsel %vm3694_vm4, %v3734_v41, %v3267_v21  ;;  %v3720_v21 = vsel %vm3709_vm5, %v3705_v44, %v14313_v61  ;;  %v3776_v16 = vsel %vm577_vm2, %v2805_v54, %v3379_v34  ;;  %v3691_v61 = vsel %vm577_vm2, %v2584_v30, %v14311_v5 }
 0x25b   :  { %6085 = vmatmul.mubr.bf16.gmra.mrb[12].mxu1 %v5749_v43  ;;  %v4543_v48 = vcombine.low %v4526_v28, %v4540_v20  ;;  %v3762_v10 = vsel %vm3709_vm5, %v3748_v18, %v3323_v13  ;;  %v4544_v49 = vcombine.high %v4526_v28, %v4540_v20  ;;  %v3706_v34 = vsel %vm3694_vm4, %v3691_v61, %v14318_v17  ;;  %v2919_v18 = vld [vmem:[#allocation2 + $0x1b0] ss:$2 sm:$0x7f] }
 0x25c   :  { %v3325_v42 = vpop.permute.xlu1 %3324  ;;  %v4576_v6 = vcombine.low %v3720_v21, %v3762_v10  ;;  %v4577_v25 = vcombine.high %v3720_v21, %v3762_v10  ;;  %v3735_v20 = vsel %vm577_vm2, %v2695_v7, %v14327_v3  ;;  %v14395_v11 = vsel %vm3709_vm5, %v3706_v34, %v14323_v24 }
 0x25d   :  { %v3435_v50 = vpop.permute.xlu0 %3434  ;;  %v4558_v46 = vrot.slane %v4543_v48, %v13483_v59  ;;  %v4572_v43 = vrot.slane %v4544_v49, %v13483_v59  ;;  %v3749_v17 = vsel %vm3694_vm4, %v3735_v20, %v14337_v27  ;;  %v5398_v44 = vrot.slane %v5388_v4, %v13483_v59 }
 0x25e   :  { %v3790_v58 = vsel %vm3694_vm4, %v3776_v16, %v3435_v50  ;;  %v4586_v19 = vrot.slane %v4576_v6, %v13483_v59  ;;  %v4593_v37 = vrot.slane %v4577_v25, %v13483_v59  ;;  %v14398_v41 = vsel %vm3709_vm5, %v3749_v17, %v3325_v42 }
 0x25f   :  { %v4574_v47 = vcombine.high %v4558_v46, %v4558_v46  ;;  %v5389_v48 = vcombine.low %v4575_v55, %v4558_v46 }
 0x260   :  { %v14351_v63 = vpop.permute.xlu1 %3380 }
 0x261   :  { %v3491_v8 = vpop.permute.xlu0 %3490  ;;  %v5405_v16 = vrot.slane %v5389_v48, %v13483_v59 }
 0x262   :  { %v3804_v14 = vsel %vm3709_vm5, %v3790_v58, %v3491_v8 }
 0x263   :  { %v5421_v30 = vcombine.high %v5398_v44, %v5405_v16 }
 0x264   :  { %v14355_v36 = vpop.permute.xlu1 %3436 }
 0x265   :  { %v3547_v60 = vpop.permute.xlu0 %3546 }
 0x266   :  { %v3818_v33 = vsel %vm577_vm2, %v2917_v57, %v3547_v60  ;;  %v5390_v60 = vcombine.low %v4572_v43, %v4574_v47  ;;  %v4643_v57 = vcombine.low %v14395_v11, %v14398_v41 }
 0x268   :  { %v14358_v45 = vpop.permute.xlu1 %3492  ;;  %v4653_v55 = vrot.slane %v4643_v57, %v13483_v59 }
 0x269   :  { %v3603_v51 = vpop.permute.xlu0 %3602 }
 0x26a   :  { %v3832_v56 = vsel %vm3694_vm4, %v3818_v33, %v3603_v51  ;;  %v2807_v51 = vld [vmem:[#allocation2 + $0x1a0] ss:$2 sm:$0x7f] }
 0x26b   :  { %v3777_v27 = vsel %vm577_vm2, %v2807_v51, %v14351_v63 }
 0x26c   :  { %v3549_v52 = vpop.permute.xlu1 %3548  ;;  %v3791_v38 = vsel %vm3694_vm4, %v3777_v27, %v14355_v36 }
 0x26d   :  { %v3659_v13 = vpop.permute.xlu0 %3658  ;;  %v3819_v46 = vsel %vm577_vm2, %v2919_v18, %v3549_v52  ;;  %v14419_v63 = vsel %vm3709_vm5, %v3791_v38, %v14358_v45 }
 0x26e   :  { %v3846_v1 = vsel %vm3709_vm5, %v3832_v56, %v3659_v13  ;;  %v5412_v56 = vrot.slane %v5390_v60, %v13483_v59 }
 0x26f   :  { %v4578_v40 = vcombine.low %v3804_v14, %v3846_v1  ;;  %v4579_v15 = vcombine.high %v3804_v14, %v3846_v1  ;;  %v5420_v1 = vcombine.low %v5398_v44, %v5405_v16 }
 0x270   :  { %v3605_v50 = vpop.permute.xlu1 %3604 }
 0x271   :  { %v4600_v8 = vrot.slane %v4578_v40, %v13483_v59  ;;  %v4607_v28 = vrot.slane %v4579_v15, %v13483_v59  ;;  %v14388_v5 = vpop.permute.xlu0 %3046  ;;  %v3833_v42 = vsel %vm3694_vm4, %v3819_v46, %v3605_v50  ;;  %v5430_v48 = vrot.slane %v5420_v1, %v13483_v59 }
 0x272   :  { %v4644_v1 = vcombine.high %v14395_v11, %v14398_v41 }
 0x273   :  { %v4608_v3 = vcombine.low %v4586_v19, %v4600_v8  ;;  %v4609_v9 = vcombine.high %v4586_v19, %v4600_v8  ;;  %v4610_v31 = vcombine.low %v4593_v37, %v4607_v28  ;;  %v4611_v26 = vcombine.high %v4593_v37, %v4607_v28 }
 0x274   :  { %v3661_v10 = vpop.permute.xlu1 %3660  ;;  %v5437_v8 = vrot.slane %v5421_v30, %v13483_v59 }
 0x275   :  { %v4618_v24 = vrot.slane %v4608_v3, %v13483_v59  ;;  %v4632_v49 = vrot.slane %v4609_v9, %v13483_v59  ;;  %v14407_v54 = vpop.permute.xlu0 %3102  ;;  %v14414_v21 = vsel %vm3709_vm5, %v3833_v42, %v3661_v10  ;;  %v4625_v52 = vrot.slane %v4610_v31, %v13483_v59 }
 0x276   :  { %v4639_v47 = vrot.slane %v4611_v26, %v13483_v59  ;;  %v4645_v6 = vcombine.low %v14419_v63, %v14414_v21 }
 0x277   :  { %v5391_v33 = vcombine.low %v4618_v24, %v4632_v49  ;;  %v11005_v25 = vcombine.high %v4618_v24, %v4632_v49  ;;  %v4641_v19 = vcombine.high %v4625_v52, %v4625_v52 }
 0x278   :  { %v14425_v58 = vpop.permute.xlu1 %3048  ;;  %v4667_v45 = vrot.slane %v4645_v6, %v13483_v59  ;;  %v5457_v40 = vcombine.low %v4625_v52, %v4639_v47  ;;  %v4646_v6 = vcombine.high %v14419_v63, %v14414_v21  ;;  %v4660_v63 = vrot.slane %v4644_v1, %v13483_v59  ;;  %v2921_v1 = vld [vmem:[#allocation2 + $0x1d0] ss:$2 sm:$0x7f] }
 0x279   :  { %v14427_v36 = vpop.permute.xlu0 %3158  ;;  %v5419_v13 = vrot.slane %v5391_v33, %v13483_v59  ;;  %v5466_v28 = vrot.slane %v11005_v25, %v13483_v59 }
 0x27a   :  { %v4675_v15 = vcombine.low %v4653_v55, %v4667_v45  ;;  %v4676_v43 = vcombine.high %v4653_v55, %v4667_v45  ;;  %v5473_v9 = vrot.slane %v5457_v40, %v13483_v59  ;;  %v4674_v21 = vrot.slane %v4646_v6, %v13483_v59 }
 0x27b   :  { %v5423_v14 = vcombine.high %v5412_v56, %v5419_v13  ;;  %v5422_v61 = vcombine.low %v5412_v56, %v5419_v13 }
 0x27c   :  { %v14433_v4 = vpop.permute.xlu1 %3104  ;;  %v4685_v20 = vrot.slane %v4675_v15, %v13483_v59  ;;  %v14442_v60 = vrot.slane %v4676_v43, %v13483_v59  ;;  %v5489_v27 = vcombine.high %v5466_v28, %v5473_v9  ;;  %v5488_v24 = vcombine.low %v5466_v28, %v5473_v9 }
 0x27d   :  { %v3215_v34 = vpop.permute.xlu0 %3214  ;;  %v5451_v7 = vrot.slane %v5423_v14, %v13483_v59  ;;  %v5444_v50 = vrot.slane %v5422_v61, %v13483_v59  ;;  %v4677_v28 = vcombine.low %v4660_v63, %v4674_v21 }
 0x27e   :  { %v4707_v37 = vcombine.high %v4685_v20, %v4685_v20  ;;  %v5458_v17 = vcombine.low %v4641_v19, %v4685_v20  ;;  %v5505_v16 = vrot.slane %v5489_v27, %v13483_v59  ;;  %v5498_v52 = vrot.slane %v5488_v24, %v13483_v59  ;;  %v2699_v27 = vld [vmem:[#allocation2 + $0x1d0] ss:$2 sm:$0x7f] }
 0x27f   :  { %v5455_v51 = vcombine.high %v5437_v8, %v5451_v7  ;;  %v5453_v31 = vcombine.high %v5430_v48, %v5444_v50  ;;  %v5454_v13 = vcombine.low %v5437_v8, %v5451_v7  ;;  %v5452_v45 = vcombine.low %v5430_v48, %v5444_v50  ;;  %v2923_v8 = vld [vmem:[#allocation2 + $0x1f0] ss:$2 sm:$0x7f] }
 0x280   :  { %v14444_v3 = vpop.permute.xlu1 %3160  ;;  %v5459_v26 = vcombine.low %v14442_v60, %v4707_v37  ;;  %v5480_v10 = vrot.slane %v5458_v17, %v13483_v59  ;;  %v2697_v48 = vld [vmem:[#allocation2 + $0x1b0] ss:$2 sm:$0x7f]  ;;  %v3821_v41 = vsel %vm577_vm2, %v2923_v8, %v13381_v35  ;;  %v2586_v37 = vld [vmem:[#allocation2 + $0x1a0] ss:$2 sm:$0x7f]  ;;  %v4678_v17 = vcombine.high %v4660_v63, %v4674_v21 }
 0x281   :  { %v3271_v18 = vpop.permute.xlu0 %3270  ;;  %v3736_v9 = vsel %vm577_vm2, %v2697_v48, %v3215_v34  ;;  %v2588_v35 = vld [vmem:[#allocation2 + $0x1c0] ss:$2 sm:$0x7f] }
 0x282   :  { %v5487_v44 = vrot.slane %v5459_v26, %v13483_v59  ;;  %v4692_v26 = vrot.slane %v4677_v28, %v13483_v59 }
 0x284   :  { %v3217_v46 = vpop.permute.xlu1 %3216  ;;  %v5491_v42 = vcombine.high %v5480_v10, %v5487_v44  ;;  %v5490_v57 = vcombine.low %v5480_v10, %v5487_v44  ;;  %v4709_v10 = vcombine.high %v14442_v60, %v14442_v60  ;;  %v3750_v44 = vsel %vm3694_vm4, %v3736_v9, %v3271_v18 }
 0x285   :  { %v3327_v49 = vpop.permute.xlu0 %3326  ;;  %v3737_v34 = vsel %vm577_vm2, %v2699_v27, %v3217_v46  ;;  %v3693_v60 = vsel %vm577_vm2, %v2588_v35, %v14425_v58  ;;  %v2809_v46 = vld [vmem:[#allocation2 + $0x1c0] ss:$2 sm:$0x7f] }
 0x286   :  { %v5519_v33 = vrot.slane %v5491_v42, %v13483_v59  ;;  %v5512_v47 = vrot.slane %v5490_v57, %v13483_v59  ;;  %v3764_v42 = vsel %vm3709_vm5, %v3750_v44, %v3327_v49  ;;  %v3708_v49 = vsel %vm3694_vm4, %v3693_v60, %v14433_v4 }
 0x287   :  { %v3723_v58 = vsel %vm3709_vm5, %v3708_v49, %v14444_v3 }
 0x288   :  { %v3273_v38 = vpop.permute.xlu1 %3272  ;;  %v5522_v55 = vcombine.low %v5505_v16, %v5519_v33  ;;  %v5520_v30 = vcombine.low %v5498_v52, %v5512_v47  ;;  %v5523_v25 = vcombine.high %v5505_v16, %v5519_v33  ;;  %v5521_v14 = vcombine.high %v5498_v52, %v5512_v47 }
 0x289   :  { %v3383_v56 = vpop.permute.xlu0 %3382  ;;  %v3751_v18 = vsel %vm3694_vm4, %v3737_v34, %v3273_v38 }
 0x28a   :  { %v5754_v61 = vpack.c.bf16 %v5522_v55, %v5454_v13  ;;  %v5753_v15 = vpack.c.bf16 %v5520_v30, %v5452_v45  ;;  %v14458_v43 = vpack.c.bf16 %v5523_v25, %v5455_v51  ;;  %v14460_v20 = vpack.c.bf16 %v5521_v14, %v5453_v31  ;;  %v2811_v45 = vld [vmem:[#allocation2 + $0x1e0] ss:$2 sm:$0x7f] }
 0x28b   :  { %v3692_v31 = vsel %vm577_vm2, %v2586_v37, %v14388_v5  ;;  %v3835_v5 = vsel %vm3694_vm4, %v3821_v41, %v13396_v2  ;;  %v5524_v55 = vcombine.low %v4709_v10, %v4692_v26  ;;  %v3778_v14 = vsel %vm577_vm2, %v2809_v46, %v3383_v56 }
 0x28c   :  { %v3329_v40 = vpop.permute.xlu1 %3328  ;;  %6092 = vmatprep.mubr.bf16.mxu1 %v5754_v61  ;;  %v3707_v24 = vsel %vm3694_vm4, %v3692_v31, %v14407_v54  ;;  %v4706_v54 = vrot.slane %v4678_v17, %v13483_v59 }
 0x28d   :  { %v3439_v19 = vpop.permute.xlu0 %3438  ;;  %6093 = vmatmul.mubr.bf16.gmra.mrb[16].mxu1 %v5753_v15  ;;  %v3722_v16 = vsel %vm3709_vm5, %v3707_v24, %v14427_v36  ;;  %v3765_v47 = vsel %vm3709_vm5, %v3751_v18, %v3329_v40  ;;  %v4708_v36 = vcombine.high %v4692_v26, %v4692_v26 }
 0x28e   :  { %v4710_v38 = vcombine.low %v3722_v16, %v3764_v42  ;;  %v4711_v25 = vcombine.high %v3722_v16, %v3764_v42  ;;  %v4777_v40 = vcombine.low %v3723_v58, %v3765_v47  ;;  %v4778_v15 = vcombine.high %v3723_v58, %v3765_v47 }
 0x28f   :  { %v3792_v3 = vsel %vm3694_vm4, %v3778_v14, %v3439_v19  ;;  %v5525_v31 = vcombine.low %v4706_v54, %v4708_v36 }
 0x290   :  { %v3385_v7 = vpop.permute.xlu1 %3384  ;;  %v4787_v19 = vrot.slane %v4777_v40, %v13483_v59  ;;  %v4794_v10 = vrot.slane %v4778_v15, %v13483_v59  ;;  %v4720_v24 = vrot.slane %v4710_v38, %v13483_v59 }
 0x291   :  { %v3495_v50 = vpop.permute.xlu0 %3494  ;;  %v3779_v4 = vsel %vm577_vm2, %v2811_v45, %v3385_v7  ;;  %v5541_v47 = vrot.slane %v5525_v31, %v13483_v59 }
 0x292   :  { %v3806_v7 = vsel %vm3709_vm5, %v3792_v3, %v3495_v50  ;;  %v4727_v50 = vrot.slane %v4711_v25, %v13483_v59 }
 0x294   :  { %v3441_v11 = vpop.permute.xlu1 %3440 }
 0x295   :  { %v3551_v51 = vpop.permute.xlu0 %3550  ;;  %v3793_v63 = vsel %vm3694_vm4, %v3779_v4, %v3441_v11  ;;  %v5534_v11 = vrot.slane %v5524_v55, %v13483_v59 }
 0x296   :  { %v11477_v57 = vpop.f32.mrb[0].mxu1  ;;  %v3820_v21 = vsel %vm577_vm2, %v2921_v1, %v3551_v51 }
 0x297   :  { %v11478_v33 = vpop.f32.mrb[1].mxu1 }
 0x298   :  { %v3497_v52 = vpop.permute.xlu1 %3496  ;;  %v14488_v6 = vadd.f32 %v11478_v33, %v11477_v57  ;;  %v11480_v2 = vpop.f32.mrb[2].mxu1 }
 0x299   :  { %v3607_v13 = vpop.permute.xlu0 %3606  ;;  %v11481_v30 = vpop.f32.mrb[3].mxu1  ;;  %v3807_v48 = vsel %vm3709_vm5, %v3793_v63, %v3497_v52 }
 0x29a   :  { %v14494_v61 = vadd.f32 %v11481_v30, %v11480_v2  ;;  %v3834_v28 = vsel %vm3694_vm4, %v3820_v21, %v3607_v13 }
 0x29c   :  { %v3665_v8 = vpop.permute.xlu1 %3664 }
 0x29d   :  { %v3663_v41 = vpop.permute.xlu0 %3662  ;;  %v3849_v56 = vsel %vm3709_vm5, %v3835_v5, %v3665_v8 }
 0x29e   :  { %v3848_v37 = vsel %vm3709_vm5, %v3834_v28, %v3663_v41  ;;  %v4779_v17 = vcombine.low %v3807_v48, %v3849_v56  ;;  %v4780_v9 = vcombine.high %v3807_v48, %v3849_v56  ;;  %v5557_v28 = vcombine.high %v5534_v11, %v5541_v47 }
 0x29f   :  { %v4712_v51 = vcombine.low %v3806_v7, %v3848_v37  ;;  %v4713_v26 = vcombine.high %v3806_v7, %v3848_v37  ;;  %v5556_v56 = vcombine.low %v5534_v11, %v5541_v47  ;;  %v12302_v47 = vld [vmem:[%s16307_s7 + $0x100] sm:$0xff]  }
 0x2a0   :  { %v4801_v44 = vrot.slane %v4779_v17, %v13483_v59  ;;  %v4808_v27 = vrot.slane %v4780_v9, %v13483_v59 }
 0x2a1   :  { %v4734_v35 = vrot.slane %v4712_v51, %v13483_v59  ;;  %v4741_v42 = vrot.slane %v4713_v26, %v13483_v59 }
 0x2a2   :  { %v4809_v34 = vcombine.low %v4787_v19, %v4801_v44  ;;  %v4810_v57 = vcombine.high %v4787_v19, %v4801_v44  ;;  %v4811_v5 = vcombine.low %v4794_v10, %v4808_v27  ;;  %v4812_v16 = vcombine.high %v4794_v10, %v4808_v27 }
 0x2a3   :  { %v4742_v60 = vcombine.low %v4720_v24, %v4734_v35  ;;  %v4743_v18 = vcombine.high %v4720_v24, %v4734_v35  ;;  %v4744_v33 = vcombine.low %v4727_v50, %v4741_v42  ;;  %v4745_v52 = vcombine.high %v4727_v50, %v4741_v42 }
 0x2a4   :  { %v4819_v54 = vrot.slane %v4809_v34, %v13483_v59  ;;  %v4826_v49 = vrot.slane %v4811_v5, %v13483_v59  ;;  %v4833_v46 = vrot.slane %v4810_v57, %v13483_v59  ;;  %v4840_v58 = vrot.slane %v4812_v16, %v13483_v59 }
 0x2a5   :  { %v4752_v2 = vrot.slane %v4742_v60, %v13483_v59  ;;  %v4759_v13 = vrot.slane %v4744_v33, %v13483_v59  ;;  %v4766_v36 = vrot.slane %v4743_v18, %v13483_v59  ;;  %v4773_v55 = vrot.slane %v4745_v52, %v13483_v59 }
 0x2a6   :  { %v4841_v38 = vcombine.high %v4819_v54, %v4819_v54  ;;  %v4842_v45 = vcombine.high %v4826_v49, %v4826_v49  ;;  %v4843_v30 = vcombine.high %v4833_v46, %v4833_v46  ;;  %v5573_v35 = vrot.slane %v5557_v28, %v13483_v59 }
 0x2a7   :  { %v4775_v25 = vcombine.high %v4759_v13, %v4759_v13  ;;  %v5526_v14 = vcombine.low %v4752_v2, %v4766_v36  ;;  %v11006_v4 = vcombine.high %v4752_v2, %v4766_v36  ;;  %v5592_v1 = vcombine.low %v4759_v13, %v4773_v55 }
 0x2a8   :  { %v5594_v40 = vcombine.low %v4833_v46, %v4841_v38  ;;  %v5595_v15 = vcombine.low %v4843_v30, %v4826_v49  ;;  %v5660_v21 = vcombine.low %v4840_v58, %v4842_v45  ;;  %v5566_v34 = vrot.slane %v5556_v56, %v13483_v59  ;;  %v12301_v46 = vld [vmem:[%s16307_s7 + $0x140] sm:$0xff]  }
 0x2a9   :  { %v5593_v63 = vcombine.low %v4775_v25, %v4819_v54  ;;  %v5548_v8 = vrot.slane %v5526_v14, %v13483_v59  ;;  %v5555_v3 = vrot.slane %v11006_v4, %v13483_v59  ;;  %v5602_v17 = vrot.slane %v5592_v1, %v13483_v59  ;;  %11621 = vmatprep.subr.bf16.mxu0 %v12301_v46  ;;  %v12323_v46 = vld [vmem:[%s16307_s7 + $0x68] sm:$0xff]  }
 0x2aa   :  { %v5616_v48 = vrot.slane %v5594_v40, %v13483_v59  ;;  %v5623_v41 = vrot.slane %v5595_v15, %v13483_v59  ;;  %v5667_v7 = vrot.slane %v5660_v21, %v13483_v59  ;;  %11622 = vmatpush3.bf16.msra.mxu0 %v12302_v47  ;;  %v12332_v47 = vld [vmem:[%s16307_s7 + $0x138] sm:$0xff]  }
 0x2ab   :  { %v5559_v37 = vcombine.high %v5548_v8, %v5555_v3  ;;  %v5609_v9 = vrot.slane %v5593_v63, %v13483_v59  ;;  %v5558_v31 = vcombine.low %v5548_v8, %v5555_v3  ;;  %v12305_v63 = vld [vmem:[%s16307_s7 + $0x150] sm:$0xff]  }
 0x2ac   :  { %v5627_v51 = vcombine.high %v5616_v48, %v5623_v41  ;;  %v5626_v26 = vcombine.low %v5616_v48, %v5623_v41  ;;  %v5668_v19 = vcombine.high %v5667_v7, %v5667_v7  ;;  %v5675_v2 = vrot.slane %v5667_v7, %v13483_v59  ;;  %v12306_v8 = vld [vmem:[%s16307_s7 + $0x110] sm:$0xff]   ;;  %v12307_v7 = vld [vmem:[%s16307_s7 + $0x158] sm:$0xff]  }
 0x2ad   :  { %v5587_v10 = vrot.slane %v5559_v37, %v13483_v59  ;;  %v5625_v44 = vcombine.high %v5602_v17, %v5609_v9  ;;  %v5580_v27 = vrot.slane %v5558_v31, %v13483_v59  ;;  %v5624_v24 = vcombine.low %v5602_v17, %v5609_v9  ;;  %v12308_v37 = vld [vmem:[%s16307_s7 + $0x118] sm:$0xff]   ;;  %v12309_v9 = vld [vmem:[%s16307_s7 + $0x160] sm:$0xff]  }
 0x2ae   :  { %v5655_v50 = vrot.slane %v5627_v51, %v13483_v59  ;;  %v5648_v11 = vrot.slane %v5626_v26, %v13483_v59  ;;  %v5682_v5 = vrot.slane %v5668_v19, %v13483_v59  ;;  %v5761_v13 = vpack.c.bf16 %v5675_v2, %v5675_v2  ;;  %v12310_v31 = vld [vmem:[%s16307_s7 + $0x120] sm:$0xff]  }
 0x2af   :  { %v5641_v42 = vrot.slane %v5625_v44, %v13483_v59  ;;  %v5634_v57 = vrot.slane %v5624_v24, %v13483_v59  ;;  %v5590_v16 = vcombine.low %v5573_v35, %v5587_v10  ;;  %v5588_v18 = vcombine.low %v5566_v34, %v5580_v27  ;;  %v12311_v24 = vld [vmem:[%s16307_s7 + $0x40] sm:$0xff]  }
 0x2b0   :  { %v5762_v49 = vpack.c.bf16 %v5682_v5, %v5682_v5  ;;  %v5683_v15 = vcombine.high %v5675_v2, %v5675_v2  ;;  %11577 = vmatprep.subr.bf16.mxu1 %v12311_v24  ;;  %v12324_v2 = vld [vmem:[%s16307_s7 + $0x28] sm:$0xff]  }
 0x2b1   :  { %v5658_v60 = vcombine.low %v5641_v42, %v5655_v50  ;;  %v5656_v33 = vcombine.low %v5634_v57, %v5648_v11  ;;  %v5659_v59 = vcombine.high %v5641_v42, %v5655_v50  ;;  %v12312_v50 = vld [vmem:[%s16307_s7] sm:$0xff]   ;;  %v12315_v42 = vld [vmem:[%s16307_s7 + $0x50] sm:$0xff]  }
 0x2b2   :  { %v5763_v21 = vpack.c.bf16 %v5683_v15, %v5683_v15 }
 0x2b3   :  { %v5758_v52 = vpack.c.bf16 %v5658_v60, %v5590_v16  ;;  %v5757_v54 = vpack.c.bf16 %v5656_v33, %v5588_v18  ;;  %v12319_v16 = vld [vmem:[%s16307_s7 + $0x58] sm:$0xff]   ;;  %v12327_v18 = vld [vmem:[%s16307_s7 + $0x170] sm:$0xff]  }
 0x2b4   :  { %v12320_v60 = vld [vmem:[%s16307_s7 + $0x18] sm:$0xff]   ;;  %v12328_v33 = vld [vmem:[%s16307_s7 + $0x130] sm:$0xff]  }
 0x2b5   :  { %6100 = vmatprep.mubr.bf16.mxu1 %v5758_v52  ;;  %v12321_v52 = vld [vmem:[%s16307_s7 + $0x60] sm:$0xff]  }
 0x2b6   :  { %6101 = vmatmul.mubr.bf16.gmra.mrb[20].mxu1 %v5757_v54  ;;  %v12331_v54 = vld [vmem:[%s16307_s7 + $0x178] sm:$0xff]  }
 0x2b7   :  { %6108 = vmatprep.mubr.bf16.mxu1 %v5762_v49  ;;  %v12322_v49 = vld [vmem:[%s16307_s7 + $0x20] sm:$0xff]  }
 0x2be   :  { %6109 = vmatmul.mubr.bf16.gmra.mrb[24].mxu1 %v5761_v13  ;;  %v12325_v13 = vld [vmem:[%s16307_s7 + $0x70] sm:$0xff]  }
 0x2bf   :  { %6148 = vmatprep.mubr.bf16.mxu1 %v13834_v23  ;;  %v5591_v23 = vcombine.high %v5573_v35, %v5587_v10  ;;  %v12314_v35 = vld [vmem:[%s16307_s7 + $0x8] sm:$0xff]  }
 0x2c6   :  { %6149 = vmatmul.mubr.bf16.vlgmr.msra.gmra.mrb[28].mxu1 %v13840_v32  ;;  %v11483_v36 = vpop.f32.mrb[4].mxu1  ;;  %v5760_v32 = vpack.c.bf16 %v5659_v59, %v5591_v23  ;;  %v12330_v59 = vld [vmem:[%s16307_s7 + $0x38] sm:$0xff]  }
 0x2c7   :  { %6156 = vmatprep.mubr.bf16.mxu1 %v13999_v39  ;;  %v11484_v55 = vpop.f32.mrb[5].mxu1  ;;  %v5657_v39 = vcombine.high %v5634_v57, %v5648_v11  ;;  %11578 = vmatpush3.bf16.msra.mxu1 %v12312_v50  ;;  %v12313_v11 = vld [vmem:[%s16307_s7 + $0x48] sm:$0xff]  }
 0x2c8   :  { %v14548_v58 = vadd.f32 %v11484_v55, %v11483_v36  ;;  %v11486_v38 = vpop.f32.mrb[6].mxu1  ;;  %11579 = vmatprep.subr.bf16.mxu1 %v12313_v11  ;;  %v12317_v57 = vld [vmem:[%s16307_s7 + $0x168] sm:$0xff]   ;;  %v12326_v36 = vld [vmem:[%s16307_s7 + $0x30] sm:$0xff]   ;;  %v12329_v55 = vld [vmem:[%s16307_s7 + $0x78] sm:$0xff]  }
 0x2c9   :  { %v11487_v45 = vpop.f32.mrb[7].mxu1 }
 0x2ca   :  { %v14550_v30 = vadd.f32 %v11487_v45, %v11486_v38  ;;  %v12335_v38 = vld [vmem:[%s16307_s7 + $0x240] sm:$0xff]  }
 0x2cb   :  { %11580 = vmatpush3.bf16.msra.mxu1 %v12314_v35 }
 0x2cc   :  { %11581 = vmatprep.subr.bf16.mxu1 %v12315_v42 }
 0x2ce   :  { %6157 = vmatmul.mubr.bf16.gmra.mrb[32].mxu1 %v14007_v22  ;;  %v12303_v22 = vld [vmem:[%s16307_s7 + $0x148] sm:$0xff]  }
 0x2cf   :  { %6164 = vmatprep.mubr.bf16.mxu1 %v14139_v12  ;;  %v12304_v12 = vld [vmem:[%s16307_s7 + $0x108] sm:$0xff]   ;;  %11623 = vmatprep.subr.bf16.mxu0 %v12303_v22 }
 0x2d0   :  { %11624 = vmatpush3.bf16.msra.mxu0 %v12304_v12 }
 0x2d1   :  { %11625 = vmatprep.subr.bf16.mxu0 %v12305_v63 }
 0x2d4   :  { %11626 = vmatpush3.bf16.msra.mxu0 %v12306_v8 }
 0x2d5   :  { %11627 = vmatprep.subr.bf16.mxu0 %v12307_v7 }
 0x2d6   :  { %6165 = vmatmul.mubr.bf16.gmra.mrb[36].mxu1 %v14142_v53  ;;  %v5684_v53 = vcombine.high %v5682_v5, %v5682_v5  ;;  %v12318_v5 = vld [vmem:[%s16307_s7 + $0x128] sm:$0xff]  }
 0x2d7   :  { %6172 = vmatprep.mubr.bf16.mxu1 %v14342_v29  ;;  %v5589_v29 = vcombine.high %v5566_v34, %v5580_v27  ;;  %v12316_v34 = vld [vmem:[%s16307_s7 + $0x10] sm:$0xff]  }
 0x2d8   :  { %v5764_v4 = vpack.c.bf16 %v5684_v53, %v5684_v53  ;;  %11628 = vmatpush3.bf16.msra.mxu0 %v12308_v37  ;;  %11582 = vmatpush3.bf16.msra.mxu1 %v12316_v34 }
 0x2d9   :  { %v5759_v25 = vpack.c.bf16 %v5657_v39, %v5589_v29  ;;  %11629 = vmatprep.subr.bf16.mxu0 %v12309_v9  ;;  %11583 = vmatprep.subr.bf16.mxu1 %v12319_v16 }
 0x2dc   :  { %11630 = vmatpush3.bf16.msra.mxu0 %v12310_v31  ;;  %11584 = vmatpush3.bf16.msra.mxu1 %v12320_v60 }
 0x2dd   :  { %11631 = vmatprep.subr.bf16.mxu0 %v12317_v57  ;;  %11585 = vmatprep.subr.bf16.mxu1 %v12321_v52 }
 0x2de   :  { %6173 = vmatmul.mubr.bf16.gmra.mrb[40].mxu1 %v14347_v62 }
 0x2df   :  { %6180 = vmatprep.mubr.bf16.mxu1 %v14458_v43 }
 0x2e0   :  { %11632 = vmatpush3.bf16.msra.mxu0 %v12318_v5  ;;  %11586 = vmatpush3.bf16.msra.mxu1 %v12322_v49 }
 0x2e1   :  { %11633 = vmatprep.subr.bf16.mxu0 %v12327_v18  ;;  %11587 = vmatprep.subr.bf16.mxu1 %v12323_v46 }
 0x2e4   :  { %11634 = vmatpush3.bf16.msra.mxu0 %v12328_v33  ;;  %11588 = vmatpush3.bf16.msra.mxu1 %v12324_v2 }
 0x2e5   :  { %11635 = vmatprep.subr.bf16.mxu0 %v12331_v54  ;;  %11589 = vmatprep.subr.bf16.mxu1 %v12325_v13 }
 0x2e6   :  { %6181 = vmatmul.mubr.bf16.gmra.mrb[44].mxu1 %v14460_v20 }
 0x2e7   :  { %6188 = vmatprep.mubr.bf16.mxu1 %v5760_v32  ;;  %v12333_v32 = vld [vmem:[%s16307_s7 + $0xc0] sm:$0xff]  }
 0x2e8   :  { %11636 = vmatpush3.bf16.msra.mxu0 %v12332_v47  ;;  %11590 = vmatpush3.bf16.msra.mxu1 %v12326_v36 }
 0x2e9   :  { %11665 = vmatprep.subr.bf16.mxu0 %v12335_v38  ;;  %11591 = vmatprep.subr.bf16.mxu1 %v12329_v55 }
 0x2eb   :  { %v11489_v62 = vpop.f32.mrb[8].mxu1 }
 0x2ec   :  { %v11490_v43 = vpop.f32.mrb[9].mxu1  ;;  %11592 = vmatpush3.bf16.msra.mxu1 %v12330_v59 }
 0x2ed   :  { %v14565_v14 = vadd.f32 %v11490_v43, %v11489_v62  ;;  %v11492_v20 = vpop.f32.mrb[10].mxu1  ;;  %11599 = vmatprep.subr.bf16.mxu1 %v12333_v32 }
 0x2ee   :  { %v11493_v1 = vpop.f32.mrb[11].mxu1  ;;  %6189 = vmatmul.mubr.bf16.gmra.mrb[48].mxu1 %v5759_v25 }
 0x2ef   :  { %v14567_v40 = vadd.f32 %v11493_v1, %v11492_v20  ;;  %6196 = vmatprep.mubr.bf16.mxu1 %v5764_v4  ;;  %v14676_v4 = vld [vmem:[%s16308_s4] ss:$0 sm:$0xff] }
 0x2f0   :  { %v6074_v50 = vadd.f32 %v14550_v30, %v14676_v4  ;;  %v6079_v30 = vadd.f32 %v14565_v14, %v14676_v4 }
 0x2f1   :  { %v6082_v46 = vadd.f32 %v14567_v40, %v14676_v4 }
 0x2f6   :  { %6197 = vmatmul.mubr.bf16.gmra.mrb[52].mxu1 %v5763_v21  ;;  %v6063_v21 = vadd.f32 %v14488_v6, %v14676_v4 }
 0x32e   :  { %v11495_v3 = vpop.f32.mrb[12].mxu1 }
 0x32f   :  { %v11496_v28 = vpop.f32.mrb[13].mxu1 }
 0x330   :  { %v14575_v48 = vadd.f32 %v11496_v28, %v11495_v3  ;;  %v11498_v41 = vpop.f32.mrb[14].mxu1  ;;  %v6066_v28 = vadd.f32 %v14494_v61, %v14676_v4 }
 0x331   :  { %v11499_v56 = vpop.f32.mrb[15].mxu1 }
 0x332   :  { %v14583_v17 = vadd.f32 %v11499_v56, %v11498_v41  ;;  %v6087_v40 = vadd.f32 %v14575_v48, %v14676_v4 }
 0x360   :  { %v11501_v51 = vpop.f32.mrb[16].mxu1 }
 0x361   :  { %v11502_v26 = vpop.f32.mrb[17].mxu1 }
 0x362   :  { %v14591_v19 = vadd.f32 %v11502_v26, %v11501_v51  ;;  %v11504_v10 = vpop.f32.mrb[18].mxu1  ;;  %v6071_v26 = vadd.f32 %v14548_v58, %v14676_v4 }
 0x363   :  { %v11505_v44 = vpop.f32.mrb[19].mxu1 }
 0x364   :  { %v14593_v27 = vadd.f32 %v11505_v44, %v11504_v10 }
 0x389   :  { %v11507_v45 = vpop.f32.mrb[20].mxu1 }
 0x38a   :  { %v11508_v23 = vpop.f32.mrb[21].mxu1 }
 0x38b   :  { %v14667_v39 = vadd.f32 %v11508_v23, %v11507_v45  ;;  %v11510_v22 = vpop.f32.mrb[22].mxu1 }
 0x38c   :  { %v11511_v12 = vpop.f32.mrb[23].mxu1 }
 0x38d   :  { %v14669_v53 = vadd.f32 %v11511_v12, %v11510_v22 }
 0x391   :  { %v11513_v29 = vpop.f32.mrb[24].mxu1 }
 0x392   :  { %v11514_v62 = vpop.f32.mrb[25].mxu1 }
 0x393   :  { %v14671_v43 = vadd.f32 %v11514_v62, %v11513_v29  ;;  %v11516_v25 = vpop.f32.mrb[26].mxu1  ;;  %v6090_v62 = vadd.f32 %v14583_v17, %v14676_v4  ;;  %v6095_v17 = vadd.f32 %v14591_v19, %v14676_v4 }
 0x394   :  { %v11517_v20 = vpop.f32.mrb[27].mxu1 }
 0x399   :  { %v11535_v1 = vpop.f32.mrb[28].mxu1 }
 0x39a   :  { %v11536_v15 = vpop.f32.mrb[29].mxu1 }
 0x39b   :  { %v11537_v63 = vadd.f32 %v11536_v15, %v11535_v1  ;;  %v11538_v8 = vpop.f32.mrb[30].mxu1 }
 0x39c   :  { %v11539_v3 = vpop.f32.mrb[31].mxu1 }
 0x39d   :  { %v14682_v41 = vadd.f32 %v11537_v63, %v6063_v21  ;;  %v11540_v56 = vadd.f32 %v11539_v3, %v11538_v8 }
 0x39f   :  { %v14684_v7 = vadd.f32 %v11540_v56, %v6066_v28  ;;  %v6225_v37 = vmul.f32 %v14682_v41, %v14682_v41 }
 0x3a1   :  { %v6204_v9 = vadd.f32 %v14684_v7, %v14682_v41  ;;  %v6226_v6 = vmul.f32 %v14684_v7, %v14684_v7  ;;  %v11541_v31 = vpop.f32.mrb[32].mxu1 }
 0x3a2   :  { %v11542_v51 = vpop.f32.mrb[33].mxu1 }
 0x3a3   :  { %v6238_v61 = vadd.f32 %v6226_v6, %v6225_v37  ;;  %v11543_v10 = vadd.f32 %v11542_v51, %v11541_v31  ;;  %v11544_v44 = vpop.f32.mrb[34].mxu1  ;;  %v6098_v31 = vadd.f32 %v14593_v27, %v14676_v4  ;;  %v6103_v27 = vadd.f32 %v14667_v39, %v14676_v4 }
 0x3a4   :  { %v11545_v24 = vpop.f32.mrb[35].mxu1 }
 0x3a5   :  { %v14696_v11 = vadd.f32 %v11543_v10, %v6071_v26  ;;  %v11546_v35 = vadd.f32 %v11545_v24, %v11544_v44 }
 0x3a7   :  { %v6205_v42 = vadd.f32 %v6204_v9, %v14696_v11  ;;  %v6227_v34 = vmul.f32 %v14696_v11, %v14696_v11  ;;  %v14701_v57 = vadd.f32 %v11546_v35, %v6074_v50 }
 0x3a9   :  { %v6239_v5 = vadd.f32 %v6238_v61, %v6227_v34  ;;  %v6206_v58 = vadd.f32 %v6205_v42, %v14701_v57  ;;  %v6228_v16 = vmul.f32 %v14701_v57, %v14701_v57  ;;  %v11547_v60 = vpop.f32.mrb[36].mxu1 }
 0x3aa   :  { %v11548_v18 = vpop.f32.mrb[37].mxu1 }
 0x3ab   :  { %v6240_v33 = vadd.f32 %v6239_v5, %v6228_v16  ;;  %v11549_v52 = vadd.f32 %v11548_v18, %v11547_v60  ;;  %v11550_v54 = vpop.f32.mrb[38].mxu1  ;;  %v6106_v60 = vadd.f32 %v14669_v53, %v14676_v4  ;;  %v6111_v53 = vadd.f32 %v14671_v43, %v14676_v4 }
 0x3ac   :  { %v11551_v49 = vpop.f32.mrb[39].mxu1 }
 0x3ad   :  { %v14710_v47 = vadd.f32 %v11549_v52, %v6079_v30  ;;  %v11552_v2 = vadd.f32 %v11551_v49, %v11550_v54 }
 0x3af   :  { %v6207_v13 = vadd.f32 %v6206_v58, %v14710_v47  ;;  %v6229_v36 = vmul.f32 %v14710_v47, %v14710_v47  ;;  %v14715_v55 = vadd.f32 %v11552_v2, %v6082_v46 }
 0x3b1   :  { %v6241_v38 = vadd.f32 %v6240_v33, %v6229_v36  ;;  %v6208_v14 = vadd.f32 %v6207_v13, %v14715_v55  ;;  %v6230_v45 = vmul.f32 %v14715_v55, %v14715_v55  ;;  %v11553_v59 = vpop.f32.mrb[40].mxu1 }
 0x3b2   :  { %v11554_v23 = vpop.f32.mrb[41].mxu1 }
 0x3b3   :  { %v6242_v32 = vadd.f32 %v6241_v38, %v6230_v45  ;;  %v11555_v22 = vadd.f32 %v11554_v23, %v11553_v59  ;;  %v11556_v12 = vpop.f32.mrb[42].mxu1 }
 0x3b4   :  { %v11557_v29 = vpop.f32.mrb[43].mxu1 }
 0x3b5   :  { %v14724_v25 = vadd.f32 %v11555_v22, %v6087_v40  ;;  %v11558_v20 = vadd.f32 %v11557_v29, %v11556_v12 }
 0x3b7   :  { %v6209_v1 = vadd.f32 %v6208_v14, %v14724_v25  ;;  %v6231_v15 = vmul.f32 %v14724_v25, %v14724_v25  ;;  %v14729_v21 = vadd.f32 %v11558_v20, %v6090_v62 }
 0x3b9   :  { %v6243_v63 = vadd.f32 %v6242_v32, %v6231_v15  ;;  %v6210_v48 = vadd.f32 %v6209_v1, %v14729_v21  ;;  %v6232_v8 = vmul.f32 %v14729_v21, %v14729_v21  ;;  %v11559_v3 = vpop.f32.mrb[44].mxu1 }
 0x3ba   :  { %v11560_v28 = vpop.f32.mrb[45].mxu1 }
 0x3bb   :  { %v6244_v56 = vadd.f32 %v6243_v63, %v6232_v8  ;;  %v11561_v37 = vadd.f32 %v11560_v28, %v11559_v3  ;;  %v11562_v9 = vpop.f32.mrb[46].mxu1 }
 0x3bc   :  { %v11563_v6 = vpop.f32.mrb[47].mxu1 }
 0x3bd   :  { %v14738_v51 = vadd.f32 %v11561_v37, %v6095_v17  ;;  %v11564_v26 = vadd.f32 %v11563_v6, %v11562_v9 }
 0x3bf   :  { %v6211_v61 = vadd.f32 %v6210_v48, %v14738_v51  ;;  %v6233_v10 = vmul.f32 %v14738_v51, %v14738_v51  ;;  %v14743_v44 = vadd.f32 %v11564_v26, %v6098_v31 }
 0x3c1   :  { %v6245_v24 = vadd.f32 %v6244_v56, %v6233_v10  ;;  %v6212_v19 = vadd.f32 %v6211_v61, %v14743_v44  ;;  %v6234_v50 = vmul.f32 %v14743_v44, %v14743_v44  ;;  %v11565_v35 = vpop.f32.mrb[48].mxu1 }
 0x3c2   :  { %v11566_v42 = vpop.f32.mrb[49].mxu1 }
 0x3c3   :  { %v6246_v34 = vadd.f32 %v6245_v24, %v6234_v50  ;;  %v11567_v5 = vadd.f32 %v11566_v42, %v11565_v35  ;;  %v11568_v58 = vpop.f32.mrb[50].mxu1 }
 0x3c4   :  { %v11569_v16 = vpop.f32.mrb[51].mxu1 }
 0x3c5   :  { %v14752_v18 = vadd.f32 %v11567_v5, %v6103_v27  ;;  %v11570_v30 = vadd.f32 %v11569_v16, %v11568_v58 }
 0x3c7   :  { %v6213_v33 = vadd.f32 %v6212_v19, %v14752_v18  ;;  %v6235_v52 = vmul.f32 %v14752_v18, %v14752_v18  ;;  %v14757_v54 = vadd.f32 %v11570_v30, %v6106_v60 }
 0x3c9   :  { %v6247_v49 = vadd.f32 %v6246_v34, %v6235_v52  ;;  %v6214_v39 = vadd.f32 %v6213_v33, %v14757_v54  ;;  %v6236_v46 = vmul.f32 %v14757_v54, %v14757_v54  ;;  %v11571_v2 = vpop.f32.mrb[52].mxu1  ;;  %v14807_v34 = vld [vmem:[%s16310_s6] ss:$0 sm:$0xff] }
 0x3ca   :  { %v11572_v13 = vpop.f32.mrb[53].mxu1 }
 0x3cb   :  { %v6248_v36 = vadd.f32 %v6247_v49, %v6236_v46  ;;  %v11573_v38 = vadd.f32 %v11572_v13, %v11571_v2  ;;  %v11574_v14 = vpop.f32.mrb[54].mxu1 }
 0x3cc   :  { %v11575_v45 = vpop.f32.mrb[55].mxu1 }
 0x3cd   :  { %v6199_v59 = vadd.f32 %v11573_v38, %v6111_v53 }
 0x3cf   :  { %v6216_v23 = vsel %vm6215_vm6, %v6199_v59, 0.0  ;;  %v6237_v40 = vmul.f32 %v6199_v59, %v6199_v59 }
 0x3d0   :  { %v6217_v32 = vadd.f32 %v6216_v23, %v6214_v39 }
 0x3d1   :  { %v6249_v22 = vsel %vm6215_vm6, %v6237_v40, 0.0 }
 0x3d2   :  { %v6218_v12 = vrot.slane %v6217_v32, 4  ;;  %v6250_v29 = vadd.f32 %v6249_v22, %v6248_v36 }
 0x3d4   :  { %v6219_v62 = vadd.f32 %v6218_v12, %v6217_v32  ;;  %v6251_v20 = vrot.slane %v6250_v29, 4 }
 0x3d6   :  { %v6220_v1 = vrot.slane %v6219_v62, 2  ;;  %v6252_v15 = vadd.f32 %v6251_v20, %v6250_v29 }
 0x3d8   :  { %v6221_v63 = vadd.f32 %v6220_v1, %v6219_v62  ;;  %v6253_v48 = vrot.slane %v6252_v15, 2 }
 0x3da   :  { %v6222_v8 = vrot.slane %v6221_v63, 1  ;;  %v6254_v43 = vadd.f32 %v6253_v48, %v6252_v15 }
 0x3dc   :  { %v6223_v4 = vadd.f32 %v6222_v8, %v6221_v63  ;;  %v6255_v3 = vrot.slane %v6254_v43, 1 }
 0x3de   :  { %v14764_v28 = vmul.f32 0.010204081, %v6223_v4  ;;  %v6256_v17 = vadd.f32 %v6255_v3, %v6254_v43 }
 0x3e0   :  { %v6257_v56 = vmul.f32 0.010204081, %v6256_v17  ;;  %v6258_v37 = vmul.f32 %v14764_v28, %v14764_v28  ;;  %v6273_v9 = vsub.f32 %v6199_v59, %v14764_v28  ;;  %v6261_v6 = vsub.f32 %v14682_v41, %v14764_v28 }
 0x3e1   :  { %v6262_v31 = vsub.f32 %v14684_v7, %v14764_v28  ;;  %v6267_v26 = vsub.f32 %v14724_v25, %v14764_v28  ;;  %v6268_v61 = vsub.f32 %v14729_v21, %v14764_v28  ;;  %v6263_v10 = vsub.f32 %v14696_v11, %v14764_v28 }
 0x3e2   :  { %v6259_v24 = vsub.f32 %v6257_v56, %v6258_v37  ;;  %v6264_v19 = vsub.f32 %v14701_v57, %v14764_v28  ;;  %v6269_v50 = vsub.f32 %v14738_v51, %v14764_v28  ;;  %v6270_v41 = vsub.f32 %v14743_v44, %v14764_v28  ;;  %v14796_v51 = vld [vmem:[%s16309_s5] ss:$0 sm:$0xff] }
 0x3e3   :  { %v6265_v7 = vsub.f32 %v14710_v47, %v14764_v28  ;;  %v6266_v25 = vsub.f32 %v14715_v55, %v14764_v28  ;;  %v6271_v21 = vsub.f32 %v14752_v18, %v14764_v28  ;;  %v6272_v11 = vsub.f32 %v14757_v54, %v14764_v28  ;;  %v12360_v54 = vld [vmem:[%s16307_s7 + $0x230] sm:$0xff]   ;;  %v12361_v28 = vld [vmem:[%s16307_s7 + $0xf8] sm:$0xff]  }
 0x3e4   :  { %v6260_v35 = vmax.f32 %v6259_v24, 0.0 }
 0x3e6   :  { %v6274_v57 = vadd.f32 1e-05, %v6260_v35 }
 0x3e8   :  { %12693 = vrsqrt.f32 %v6274_v57  ;;  %v12334_v57 = vld [vmem:[%s16307_s7 + $0x80] sm:$0xff]  }
 0x3f2   :  { %v14798_v44 = vpop.eup %12693 }
 0x3f3   :  { %v6288_v47 = vmul.f32 %v14798_v44, %v6273_v9  ;;  %v6276_v55 = vmul.f32 %v14798_v44, %v6261_v6  ;;  %v6277_v42 = vmul.f32 %v14798_v44, %v6262_v31  ;;  %v6282_v27 = vmul.f32 %v14798_v44, %v6267_v26 }
 0x3f4   :  { %v6283_v5 = vmul.f32 %v14798_v44, %v6268_v61  ;;  %v6278_v58 = vmul.f32 %v14798_v44, %v6263_v10  ;;  %v6279_v16 = vmul.f32 %v14798_v44, %v6264_v19  ;;  %v6284_v60 = vmul.f32 %v14798_v44, %v6269_v50 }
 0x3f5   :  { %v14814_v18 = vmul.f32 %v14796_v51, %v6288_v47  ;;  %v6296_v30 = vmul.f32 %v14796_v51, %v6276_v55  ;;  %v6297_v33 = vmul.f32 %v14796_v51, %v6277_v42  ;;  %v6302_v52 = vmul.f32 %v14796_v51, %v6282_v27  ;;  %v12336_v42 = vld [vmem:[%s16307_s7 + $0x200] sm:$0xff]  }
 0x3f6   :  { %v6303_v49 = vmul.f32 %v14796_v51, %v6283_v5  ;;  %v6285_v39 = vmul.f32 %v14798_v44, %v6270_v41  ;;  %v6298_v46 = vmul.f32 %v14796_v51, %v6278_v58  ;;  %v6299_v2 = vmul.f32 %v14796_v51, %v6279_v16 }
 0x3f7   :  { %v6316_v13 = vadd.f32 %v14807_v34, %v6296_v30  ;;  %v6317_v53 = vadd.f32 %v14807_v34, %v6297_v33  ;;  %v6322_v36 = vadd.f32 %v14807_v34, %v6302_v52  ;;  %v6304_v38 = vmul.f32 %v14796_v51, %v6284_v60  ;;  %v12337_v30 = vld [vmem:[%s16307_s7 + $0xc8] sm:$0xff]  }
 0x3f8   :  { %v6323_v14 = vadd.f32 %v14807_v34, %v6303_v49  ;;  %v6305_v45 = vmul.f32 %v14796_v51, %v6285_v39  ;;  %v6318_v59 = vadd.f32 %v14807_v34, %v6298_v46  ;;  %v6319_v23 = vadd.f32 %v14807_v34, %v6299_v2  ;;  %v12339_v39 = vld [vmem:[%s16307_s7 + $0x248] sm:$0xff]  }
 0x3f9   :  { %v6329_v40 = vmax.f32 %v6316_v13, 0.0  ;;  %v6330_v32 = vmax.f32 %v6317_v53, 0.0  ;;  %v6335_v22 = vmax.f32 %v6322_v36, 0.0  ;;  %v14832_v12 = vadd.f32 %v14807_v34, %v6304_v38 }
 0x3fa   :  { %v6336_v29 = vmax.f32 %v6323_v14, 0.0  ;;  %v14835_v62 = vadd.f32 %v14807_v34, %v6305_v45  ;;  %v6331_v20 = vmax.f32 %v6318_v59, 0.0  ;;  %v6332_v1 = vmax.f32 %v6319_v23, 0.0  ;;  %v12338_v45 = vld [vmem:[%s16307_s7 + $0x88] sm:$0xff]  }
 0x3fb   :  { %v14837_v15 = vpack.c.bf16 %v6330_v32, %v6329_v40  ;;  %v6337_v63 = vmax.f32 %v14832_v12, 0.0  ;;  %v14841_v48 = vmul.f32 %v14798_v44, %v6265_v7  ;;  %v14844_v8 = vmul.f32 %v14798_v44, %v6266_v25 }
 0x3fc   :  { %v14846_v43 = vpack.c.bf16 %v6336_v29, %v6335_v22  ;;  %v6338_v4 = vmax.f32 %v14835_v62, 0.0  ;;  %v14849_v3 = vpack.c.bf16 %v6332_v1, %v6331_v20  ;;  %v14852_v17 = vmul.f32 %v14798_v44, %v6271_v21  ;;  %v12340_v22 = vld [vmem:[%s16307_s7 + $0x208] sm:$0xff]   ;;  %v12341_v29 = vld [vmem:[%s16307_s7 + $0xd0] sm:$0xff]  }
 0x3fd   :  { %v6354_v56 = vshrl.u32 %v14837_v15, 16  ;;  %v6350_v37 = vsel %vm6349_vm7, %v14837_v15, 0  ;;  %v6374_v9 = vrot.slane %v14837_v15, 2  ;;  %v6362_v6 = vrot.slane %v14837_v15, 1 }
 0x3fe   :  { %v6357_v31 = vrot.slane %v14846_v43, 1  ;;  %v6352_v26 = vsel %vm6351_vm8, %v14846_v43, %v6350_v37  ;;  %v6381_v61 = vrot.slane %v14846_v43, 3  ;;  %v6369_v10 = vrot.slane %v14846_v43, 2  ;;  %v12343_v37 = vld [vmem:[%s16307_s7 + $0x250] sm:$0xff]  }
 0x3ff   :  { %v6356_v24 = vsel %vm6349_vm7, %v6354_v56, 0  ;;  %v6378_v19 = vshrl.u32 %v6374_v9, 16  ;;  %v6366_v50 = vshrl.u32 %v6362_v6, 16  ;;  %v6375_v41 = vsel %vm6349_vm7, %v6374_v9, 0 }
 0x400   :  { %v6359_v7 = vshll.u32 %v6357_v31, 16  ;;  %v6383_v25 = vshll.u32 %v6381_v61, 16  ;;  %v6371_v21 = vshll.u32 %v6369_v10, 16  ;;  %v6376_v35 = vsel %vm6351_vm8, %v6369_v10, %v6375_v41  ;;  %v12342_v41 = vld [vmem:[%s16307_s7 + $0x90] sm:$0xff]  }
 0x401   :  { %v6380_v47 = vsel %vm6349_vm7, %v6378_v19, 0  ;;  %v6368_v55 = vsel %vm6349_vm7, %v6366_v50, 0  ;;  %v6398_v27 = vrot.slane %v14837_v15, 4  ;;  %v6405_v5 = vrot.slane %v14846_v43, 5 }
 0x402   :  { %v6361_v58 = vsel %vm6351_vm8, %v6359_v7, %v6356_v24  ;;  %v6385_v16 = vsel %vm6351_vm8, %v6383_v25, %v6380_v47  ;;  %v6373_v60 = vsel %vm6351_vm8, %v6371_v21, %v6368_v55  ;;  %v6363_v33 = vsel %vm6349_vm7, %v6362_v6, 0 }
 0x403   :  { %9810 = vmatprep.mubr.bf16.mxu1 %v6361_v58  ;;  %9890 = vmatprep.mubr.bf16.mxu0 %v6385_v16  ;;  %v6402_v52 = vshrl.u32 %v6398_v27, 16  ;;  %v6407_v49 = vshll.u32 %v6405_v5, 16  ;;  %v14890_v46 = vsel %vm6351_vm8, %v6357_v31, %v6363_v33  ;;  %v6386_v2 = vrot.slane %v14837_v15, 3  ;;  %v12346_v33 = vld [vmem:[%s16307_s7 + $0x98] sm:$0xff]  }
 0x404   :  { %9811 = vmatmul.mubr.bf16.vlgmr.msra.gmra.mrb[56].mxu1 %v6352_v26  ;;  %9891 = vmatmul.mubr.bf16.vlgmr.msra.gmra.mrb[100].mxu0 %v6376_v35  ;;  %v6393_v13 = vrot.slane %v14846_v43, 4  ;;  %v6399_v53 = vsel %vm6349_vm7, %v6398_v27, 0  ;;  %v6422_v36 = vrot.slane %v14837_v15, 6  ;;  %v6429_v38 = vrot.slane %v14846_v43, 7  ;;  %v12344_v35 = vld [vmem:[%s16307_s7 + $0x210] sm:$0xff]  }
 0x405   :  { %11600 = vmatpush3.bf16.msra.mxu1 %v12334_v57  ;;  %9850 = vmatprep.mubr.bf16.mxu1 %v6373_v60  ;;  %v6404_v14 = vsel %vm6349_vm7, %v6402_v52, 0  ;;  %v6390_v59 = vshrl.u32 %v6386_v2, 16  ;;  %v6387_v23 = vsel %vm6349_vm7, %v6386_v2, 0  ;;  %v6410_v40 = vrot.slane %v14837_v15, 5  ;;  %v12345_v57 = vld [vmem:[%s16307_s7 + $0xd8] sm:$0xff]  }
 0x406   :  { %11666 = vmatpush3.bf16.msra.mxu0 %v12336_v42  ;;  %v6409_v32 = vsel %vm6351_vm8, %v6407_v49, %v6404_v14  ;;  %11601 = vmatprep.subr.bf16.mxu1 %v12337_v30  ;;  %v6395_v20 = vshll.u32 %v6393_v13, 16  ;;  %v14911_v1 = vsel %vm6351_vm8, %v6393_v13, %v6399_v53  ;;  %v6426_v56 = vshrl.u32 %v6422_v36, 16  ;;  %v12348_v2 = vld [vmem:[%s16307_s7 + $0x218] sm:$0xff]   ;;  %v12349_v13 = vld [vmem:[%s16307_s7 + $0xe0] sm:$0xff]  }
 0x407   :  { %9970 = vmatprep.mubr.bf16.mxu0 %v6409_v32  ;;  %11667 = vmatprep.subr.bf16.mxu0 %v12339_v39  ;;  %v6392_v9 = vsel %vm6349_vm7, %v6390_v59, 0  ;;  %v6431_v6 = vshll.u32 %v6429_v38, 16  ;;  %v14920_v31 = vsel %vm6351_vm8, %v6381_v61, %v6387_v23  ;;  %v6414_v26 = vshrl.u32 %v6410_v40, 16  ;;  %v12351_v59 = vld [vmem:[%s16307_s7 + $0x260] sm:$0xff]  }
 0x408   :  { %v14923_v10 = vsel %vm6351_vm8, %v6395_v20, %v6392_v9  ;;  %v6428_v24 = vsel %vm6349_vm7, %v6426_v56, 0  ;;  %v6417_v19 = vrot.slane %v14846_v43, 6  ;;  %v6423_v50 = vsel %vm6349_vm7, %v6422_v36, 0 }
 0x409   :  { %11602 = vmatpush3.bf16.msra.mxu1 %v12338_v45  ;;  %v14932_v7 = vsel %vm6351_vm8, %v6431_v6, %v6428_v24  ;;  %v6416_v61 = vsel %vm6349_vm7, %v6414_v26, 0  ;;  %v14939_v25 = vpack.c.bf16 %v6338_v4, %v6337_v63  ;;  %v6448_v21 = vshrl.u32 %v14849_v3, 16  ;;  %v12347_v63 = vld [vmem:[%s16307_s7 + $0x258] sm:$0xff]  }
 0x40a   :  { %11668 = vmatpush3.bf16.msra.mxu0 %v12340_v22  ;;  %11603 = vmatprep.subr.bf16.mxu1 %v12341_v29  ;;  %v6419_v47 = vshll.u32 %v6417_v19, 16  ;;  %v14949_v55 = vsel %vm6351_vm8, %v6417_v19, %v6423_v50  ;;  %v6411_v12 = vsel %vm6349_vm7, %v6410_v40, 0  ;;  %v6434_v62 = vrot.slane %v14837_v15, 7  ;;  %v12352_v19 = vld [vmem:[%s16307_s7 + $0x220] sm:$0xff]   ;;  %v12353_v50 = vld [vmem:[%s16307_s7 + $0xe8] sm:$0xff]  }
 0x40b   :  { %11669 = vmatprep.subr.bf16.mxu0 %v12343_v37  ;;  %v6450_v4 = vsel %vm6349_vm7, %v6448_v21, 0  ;;  %v6451_v42 = vrot.slane %v14939_v25, 1  ;;  %v14961_v27 = vsel %vm6351_vm8, %v6405_v5, %v6411_v12  ;;  %v6442_v58 = vshll.u32 %v14939_v25, 16  ;;  %v12350_v37 = vld [vmem:[%s16307_s7 + $0xa0] sm:$0xff]  }
 0x40c   :  { %v14965_v16 = vsel %vm6351_vm8, %v6419_v47, %v6416_v61  ;;  %v6438_v15 = vshrl.u32 %v6434_v62, 16  ;;  %v6445_v60 = vsel %vm6349_vm7, %v14849_v3, 0  ;;  %v6468_v30 = vrot.slane %v14849_v3, 2 }
 0x40d   :  { %11604 = vmatpush3.bf16.msra.mxu1 %v12342_v41  ;;  %v6453_v52 = vshll.u32 %v6451_v42, 16  ;;  %v14975_v5 = vsel %vm6351_vm8, %v14939_v25, %v6445_v60  ;;  %v6475_v49 = vrot.slane %v14939_v25, 3  ;;  %v6435_v39 = vsel %vm6349_vm7, %v6434_v62, 0 }
 0x40e   :  { %11670 = vmatpush3.bf16.msra.mxu0 %v12344_v35  ;;  %11605 = vmatprep.subr.bf16.mxu1 %v12345_v57  ;;  %v6440_v53 = vsel %vm6349_vm7, %v6438_v15, 0  ;;  %v6472_v36 = vshrl.u32 %v6468_v30, 16  ;;  %v14989_v14 = vsel %vm6351_vm8, %v6429_v38, %v6435_v39  ;;  %v6456_v45 = vrot.slane %v14849_v3, 1  ;;  %v12355_v57 = vld [vmem:[%s16307_s7 + $0x268] sm:$0xff]  }
 0x40f   :  { %11671 = vmatprep.subr.bf16.mxu0 %v12347_v63  ;;  %v14996_v23 = vsel %vm6351_vm8, %v6453_v52, %v6450_v4  ;;  %v14999_v40 = vsel %vm6351_vm8, %v6442_v58, %v6440_v53  ;;  %v6477_v32 = vshll.u32 %v6475_v49, 16  ;;  %v6463_v22 = vrot.slane %v14939_v25, 2 }
 0x410   :  { %v6474_v38 = vsel %vm6349_vm7, %v6472_v36, 0  ;;  %v6460_v29 = vshrl.u32 %v6456_v45, 16  ;;  %v6469_v20 = vsel %vm6349_vm7, %v6468_v30, 0  ;;  %v6492_v56 = vrot.slane %v14849_v3, 4  ;;  %v12354_v30 = vld [vmem:[%s16307_s7 + $0xa8] sm:$0xff]  }
 0x411   :  { %11606 = vmatpush3.bf16.msra.mxu1 %v12346_v33  ;;  %v15011_v9 = vsel %vm6351_vm8, %v6477_v32, %v6474_v38  ;;  %v6465_v6 = vshll.u32 %v6463_v22, 16  ;;  %v15014_v26 = vsel %vm6351_vm8, %v6463_v22, %v6469_v20  ;;  %v6499_v24 = vrot.slane %v14939_v25, 5  ;;  %v12359_v32 = vld [vmem:[%s16307_s7 + $0x270] sm:$0xff]  }
 0x412   :  { %11672 = vmatpush3.bf16.msra.mxu0 %v12348_v2  ;;  %11607 = vmatprep.subr.bf16.mxu1 %v12349_v13  ;;  %v6462_v41 = vsel %vm6349_vm7, %v6460_v29, 0  ;;  %v6496_v61 = vshrl.u32 %v6492_v56, 16  ;;  %v6457_v21 = vsel %vm6349_vm7, %v6456_v45, 0  ;;  %v6480_v35 = vrot.slane %v14849_v3, 3  ;;  %v12356_v2 = vld [vmem:[%s16307_s7 + $0x228] sm:$0xff]   ;;  %v12357_v13 = vld [vmem:[%s16307_s7 + $0xf0] sm:$0xff]  }
 0x413   :  { %11673 = vmatprep.subr.bf16.mxu0 %v12351_v59  ;;  %v15030_v47 = vsel %vm6351_vm8, %v6465_v6, %v6462_v41  ;;  %v6501_v12 = vshll.u32 %v6499_v24, 16  ;;  %v15035_v62 = vsel %vm6351_vm8, %v6451_v42, %v6457_v21  ;;  %v6487_v63 = vrot.slane %v14939_v25, 4 }
 0x414   :  { %v6498_v4 = vsel %vm6349_vm7, %v6496_v61, 0  ;;  %v6484_v58 = vshrl.u32 %v6480_v35, 16  ;;  %v6493_v15 = vsel %vm6349_vm7, %v6492_v56, 0  ;;  %v6516_v60 = vrot.slane %v14849_v3, 6 }
 0x415   :  { %11608 = vmatpush3.bf16.msra.mxu1 %v12350_v37  ;;  %v15045_v33 = vsel %vm6351_vm8, %v6501_v12, %v6498_v4  ;;  %v6489_v52 = vshll.u32 %v6487_v63, 16  ;;  %v15048_v42 = vsel %vm6351_vm8, %v6487_v63, %v6493_v15  ;;  %v6523_v39 = vrot.slane %v14939_v25, 7 }
 0x416   :  { %11674 = vmatpush3.bf16.msra.mxu0 %v12352_v19  ;;  %11609 = vmatprep.subr.bf16.mxu1 %v12353_v50  ;;  %v6486_v53 = vsel %vm6349_vm7, %v6484_v58, 0  ;;  %v6520_v36 = vshrl.u32 %v6516_v60, 16  ;;  %v6481_v45 = vsel %vm6349_vm7, %v6480_v35, 0  ;;  %v6504_v59 = vrot.slane %v14849_v3, 5  ;;  %v12358_v50 = vld [vmem:[%s16307_s7 + $0xb0] sm:$0xff]  }
 0x417   :  { %11675 = vmatprep.subr.bf16.mxu0 %v12355_v57  ;;  %v15064_v22 = vsel %vm6351_vm8, %v6489_v52, %v6486_v53  ;;  %v6525_v38 = vshll.u32 %v6523_v39, 16  ;;  %v15069_v29 = vsel %vm6351_vm8, %v6475_v49, %v6481_v45  ;;  %v6511_v20 = vrot.slane %v14939_v25, 6  ;;  %v12363_v57 = vld [vmem:[%s16307_s7 + $0x278] sm:$0xff]  }
 0x418   :  { %v6522_v56 = vsel %vm6349_vm7, %v6520_v36, 0  ;;  %v6508_v37 = vshrl.u32 %v6504_v59, 16  ;;  %v6517_v6 = vsel %vm6349_vm7, %v6516_v60, 0  ;;  %v6287_v19 = vmul.f32 %v14798_v44, %v6272_v11  ;;  %v12362_v60 = vld [vmem:[%s16307_s7 + $0xb8] sm:$0xff]  }
 0x419   :  { %11610 = vmatpush3.bf16.msra.mxu1 %v12354_v30  ;;  %v15082_v49 = vsel %vm6351_vm8, %v6525_v38, %v6522_v56  ;;  %v6513_v41 = vshll.u32 %v6511_v20, 16  ;;  %v15085_v61 = vsel %vm6351_vm8, %v6511_v20, %v6517_v6  ;;  %v6300_v21 = vmul.f32 %v14796_v51, %v14841_v48  ;;  %v12364_v25 = vld [vmem:[%s16307_s7 + $0x238] sm:$0xff]  }
 0x41a   :  { %11676 = vmatpush3.bf16.msra.mxu0 %v12356_v2  ;;  %11611 = vmatprep.subr.bf16.mxu1 %v12357_v13  ;;  %v6510_v11 = vsel %vm6349_vm7, %v6508_v37, 0  ;;  %v6301_v44 = vmul.f32 %v14796_v51, %v14844_v8  ;;  %v6306_v35 = vmul.f32 %v14796_v51, %v14852_v17  ;;  %v6307_v48 = vmul.f32 %v14796_v51, %v6287_v19  ;;  %v12369_v37 = vld [vmem:[%s16307_s7 + $0x1c8] sm:$0xff]  }
 0x41b   :  { %11677 = vmatprep.subr.bf16.mxu0 %v12359_v32  ;;  %v15105_v12 = vsel %vm6351_vm8, %v6513_v41, %v6510_v11  ;;  %v6320_v63 = vadd.f32 %v14807_v34, %v6300_v21  ;;  %v6505_v4 = vsel %vm6349_vm7, %v6504_v59, 0  ;;  %v6528_v58 = vrot.slane %v14849_v3, 7  ;;  %v12368_v41 = vld [vmem:[%s16307_s7 + $0x300] sm:$0xff]  }
 0x41c   :  { %v6321_v8 = vadd.f32 %v14807_v34, %v6301_v44  ;;  %v6326_v17 = vadd.f32 %v14807_v34, %v6306_v35  ;;  %v6327_v51 = vadd.f32 %v14807_v34, %v6307_v48  ;;  %v15116_v15 = vsel %vm6351_vm8, %v6499_v24, %v6505_v4  ;;  %v12365_v24 = vld [vmem:[%s16307_s7 + $0x1c0] sm:$0xff]   ;;  %v12371_v44 = vld [vmem:[%s16307_s7 + $0x348] sm:$0xff]  }
 0x41d   :  { %11612 = vmatpush3.bf16.msra.mxu1 %v12358_v50  ;;  %v6333_v30 = vmax.f32 %v6320_v63, 0.0  ;;  %v6532_v52 = vshrl.u32 %v6528_v58, 16  ;;  %v6529_v3 = vsel %vm6349_vm7, %v6528_v58, 0  ;;  %v6328_v2 = vadd.f32 %v14807_v34, %v14814_v18  ;;  %v12367_v34 = vld [vmem:[%s16307_s7 + $0x340] sm:$0xff]   ;;  %v12370_v4 = vld [vmem:[%s16307_s7 + $0x188] sm:$0xff]  }
 0x41e   :  { %11678 = vmatpush3.bf16.msra.mxu0 %v12360_v54  ;;  %11613 = vmatprep.subr.bf16.mxu1 %v12361_v28  ;;  %v6334_v13 = vmax.f32 %v6321_v8, 0.0  ;;  %v6339_v53 = vmax.f32 %v6326_v17, 0.0  ;;  %v6340_v36 = vmax.f32 %v6327_v51, 0.0  ;;  %v15131_v45 = vsel %vm6351_vm8, %v6523_v39, %v6529_v3  ;;  %v12366_v39 = vld [vmem:[%s16307_s7 + $0x180] sm:$0xff]   ;;  %v12373_v51 = vld [vmem:[%s16307_s7 + $0x1d0] sm:$0xff]  }
 0x41f   :  { %11679 = vmatprep.subr.bf16.mxu0 %v12363_v57  ;;  %v6534_v18 = vsel %vm6349_vm7, %v6532_v52, 0  ;;  %v6341_v59 = vmax.f32 %v6328_v2, 0.0  ;;  %v15139_v32 = vsel %vm6349_vm7, %v14846_v43, 0 }
 0x420   :  { %v15141_v38 = vpack.c.bf16 %v6334_v13, %v6333_v30  ;;  %v15143_v20 = vpack.c.bf16 %v6340_v36, %v6339_v53  ;;  %v12375_v13 = vld [vmem:[%s16307_s7 + $0x350] sm:$0xff]  }
 0x421   :  { %11614 = vmatpush3.bf16.msra.mxu1 %v12362_v60  ;;  %v15148_v56 = vpack.c.bf16 %v6341_v59, %v6341_v59 }
 0x422   :  { %11680 = vmatpush3.bf16.msra.mxu0 %v12364_v25  ;;  %11643 = vmatprep.subr.bf16.mxu1 %v12365_v24  ;;  %v6542_v43 = vshrl.u32 %v15141_v38, 16  ;;  %v6545_v6 = vrot.slane %v15143_v20, 1  ;;  %v6536_v19 = vshll.u32 %v15143_v20, 16  ;;  %v6539_v50 = vsel %vm6349_vm7, %v15141_v38, 0 }
 0x423   :  { %11709 = vmatprep.subr.bf16.mxu0 %v12367_v34  ;;  %v15163_v21 = vsel %vm6351_vm8, %v15143_v20, %v6539_v50  ;;  %v6562_v54 = vrot.slane %v15141_v38, 2  ;;  %v6569_v28 = vrot.slane %v15143_v20, 3  ;;  %v6550_v11 = vrot.slane %v15141_v38, 1 }
 0x424   :  { %9851 = vmatmul.mubr.bf16.vlgmr.msra.gmra.mrb[60].mxu1 %v14890_v46  ;;  %v6544_v35 = vsel %vm6349_vm7, %v6542_v43, 0  ;;  %v6547_v48 = vshll.u32 %v6545_v6, 16  ;;  %v15174_v57 = vsel %vm6351_vm8, %v6536_v19, %v6534_v18  ;;  %v6557_v63 = vrot.slane %v15143_v20, 2  ;;  %v12374_v18 = vld [vmem:[%s16307_s7 + $0x190] sm:$0xff]   ;;  %v12377_v19 = vld [vmem:[%s16307_s7 + $0x1d8] sm:$0xff]  }
 0x425   :  { %11644 = vmatpush3.bf16.msra.mxu1 %v12366_v39  ;;  %9930 = vmatprep.mubr.bf16.mxu1 %v14923_v10  ;;  %v6566_v46 = vshrl.u32 %v6562_v54, 16  ;;  %v6571_v58 = vshll.u32 %v6569_v28, 16  ;;  %v6554_v8 = vshrl.u32 %v6550_v11, 16  ;;  %v6563_v17 = vsel %vm6349_vm7, %v6562_v54, 0 }
 0x426   :  { %9971 = vmatmul.mubr.bf16.vlgmr.msra.gmra.mrb[104].mxu0 %v14911_v1  ;;  %11645 = vmatprep.subr.bf16.mxu1 %v12369_v37  ;;  %v15189_v10 = vsel %vm6351_vm8, %v6547_v48, %v6544_v35  ;;  %v6559_v60 = vshll.u32 %v6557_v63, 16  ;;  %v15192_v30 = vsel %vm6351_vm8, %v6557_v63, %v6563_v17  ;;  %v6586_v52 = vrot.slane %v15141_v38, 4  ;;  %v12372_v1 = vld [vmem:[%s16307_s7 + $0x308] sm:$0xff]  }
 0x427   :  { %11710 = vmatpush3.bf16.msra.mxu0 %v12368_v41  ;;  %10050 = vmatprep.mubr.bf16.mxu0 %v14932_v7  ;;  %v6568_v3 = vsel %vm6349_vm7, %v6566_v46, 0  ;;  %v6556_v2 = vsel %vm6349_vm7, %v6554_v8, 0  ;;  %v6593_v25 = vrot.slane %v15143_v20, 5  ;;  %v6551_v24 = vsel %vm6349_vm7, %v6550_v11, 0  ;;  %v12376_v11 = vld [vmem:[%s16307_s7 + $0x310] sm:$0xff]  }
 0x428   :  { %11711 = vmatprep.subr.bf16.mxu0 %v12371_v44  ;;  %v15207_v53 = vsel %vm6351_vm8, %v6571_v58, %v6568_v3  ;;  %v15210_v7 = vsel %vm6351_vm8, %v6559_v60, %v6556_v2  ;;  %v6590_v36 = vshrl.u32 %v6586_v52, 16  ;;  %v15213_v34 = vsel %vm6351_vm8, %v6545_v6, %v6551_v24  ;;  %v12381_v2 = vld [vmem:[%s16307_s7 + $0x1e0] sm:$0xff]  }
 0x429   :  { %11646 = vmatpush3.bf16.msra.mxu1 %v12370_v4  ;;  %v6595_v59 = vshll.u32 %v6593_v25, 16  ;;  %v6574_v39 = vrot.slane %v15141_v38, 3  ;;  %v6581_v37 = vrot.slane %v15143_v20, 4  ;;  %v6587_v43 = vsel %vm6349_vm7, %v6586_v52, 0  ;;  %v12379_v4 = vld [vmem:[%s16307_s7 + $0x358] sm:$0xff]  }
 0x42a   :  { %11647 = vmatprep.subr.bf16.mxu1 %v12373_v51  ;;  %v6592_v6 = vsel %vm6349_vm7, %v6590_v36, 0  ;;  %v6610_v50 = vrot.slane %v15141_v38, 6  ;;  %v6617_v41 = vrot.slane %v15143_v20, 7  ;;  %v6598_v54 = vrot.slane %v15141_v38, 5  ;;  %v12378_v51 = vld [vmem:[%s16307_s7 + $0x198] sm:$0xff]  }
 0x42b   :  { %11712 = vmatpush3.bf16.msra.mxu0 %v12372_v1  ;;  %v15232_v44 = vsel %vm6351_vm8, %v6595_v59, %v6592_v6  ;;  %v6578_v35 = vshrl.u32 %v6574_v39, 16  ;;  %v6583_v48 = vshll.u32 %v6581_v37, 16  ;;  %v15235_v63 = vsel %vm6351_vm8, %v6581_v37, %v6587_v43  ;;  %v12383_v43 = vld [vmem:[%s16307_s7 + $0x360] sm:$0xff]  }
 0x42c   :  { %11713 = vmatprep.subr.bf16.mxu0 %v12375_v13  ;;  %v6614_v46 = vshrl.u32 %v6610_v50, 16  ;;  %v6619_v58 = vshll.u32 %v6617_v41, 16  ;;  %v6575_v8 = vsel %vm6349_vm7, %v6574_v39, 0  ;;  %v6602_v17 = vshrl.u32 %v6598_v54, 16 }
 0x42d   :  { %11648 = vmatpush3.bf16.msra.mxu1 %v12374_v18  ;;  %v6580_v60 = vsel %vm6349_vm7, %v6578_v35, 0  ;;  %v15248_v52 = vsel %vm6351_vm8, %v6569_v28, %v6575_v8  ;;  %v6605_v1 = vrot.slane %v15143_v20, 6  ;;  %v6611_v3 = vsel %vm6349_vm7, %v6610_v50, 0  ;;  %v12380_v20 = vld [vmem:[%s16307_s7 + $0x318] sm:$0xff]   ;;  %v12382_v50 = vld [vmem:[%s16307_s7 + $0x1a0] sm:$0xff]  }
 0x42e   :  { %11649 = vmatprep.subr.bf16.mxu1 %v12377_v19  ;;  %v15256_v24 = vsel %vm6351_vm8, %v6583_v48, %v6580_v60  ;;  %v6616_v13 = vsel %vm6349_vm7, %v6614_v46, 0  ;;  %v6604_v36 = vsel %vm6349_vm7, %v6602_v17, 0  ;;  %v6599_v18 = vsel %vm6349_vm7, %v6598_v54, 0  ;;  %v12385_v54 = vld [vmem:[%s16307_s7 + $0x1e8] sm:$0xff]   ;;  %v12391_v17 = vld [vmem:[%s16307_s7 + $0x370] sm:$0xff]   ;;  %v12393_v60 = vld [vmem:[%s16307_s7 + $0x1f8] sm:$0xff]  }
 0x42f   :  { %11714 = vmatpush3.bf16.msra.mxu0 %v12376_v11  ;;  %v15265_v28 = vsel %vm6351_vm8, %v6619_v58, %v6616_v13  ;;  %v6607_v59 = vshll.u32 %v6605_v1, 16  ;;  %v15268_v39 = vsel %vm6351_vm8, %v6605_v1, %v6611_v3  ;;  %v15271_v37 = vsel %vm6351_vm8, %v6593_v25, %v6599_v18  ;;  %v12386_v58 = vld [vmem:[%s16307_s7 + $0x1a8] sm:$0xff]   ;;  %v12392_v1 = vld [vmem:[%s16307_s7 + $0x330] sm:$0xff]   ;;  %v12395_v3 = vld [vmem:[%s16307_s7 + $0x378] sm:$0xff]  }
 0x430   :  { %11715 = vmatprep.subr.bf16.mxu0 %v12379_v4  ;;  %v6622_v19 = vrot.slane %v15141_v38, 7  ;;  %v15280_v6 = vsel %vm6351_vm8, %v15148_v56, %v15139_v32  ;;  %v12384_v32 = vld [vmem:[%s16307_s7 + $0x320] sm:$0xff]   ;;  %v6630_v35 = vshll.u32 %v15148_v56, 16  ;;  %v12387_v4 = vld [vmem:[%s16307_s7 + $0x368] sm:$0xff]   ;;  %v12389_v56 = vld [vmem:[%s16307_s7 + $0x1f0] sm:$0xff]  }
 0x431   :  { %11650 = vmatpush3.bf16.msra.mxu1 %v12378_v51  ;;  %v15286_v25 = vsel %vm6351_vm8, %v6607_v59, %v6604_v36  ;;  %v12390_v51 = vld [vmem:[%s16307_s7 + $0x1b0] sm:$0xff]   ;;  %v12397_v13 = vld [vmem:[%s16307_s7 + $0x2c0] sm:$0xff]   ;;  %v12396_v36 = vld [vmem:[%s16307_s7 + $0x338] sm:$0xff]  }
 0x432   :  { %11651 = vmatprep.subr.bf16.mxu1 %v12381_v2  ;;  %v6626_v11 = vshrl.u32 %v6622_v19, 16  ;;  %v6623_v38 = vsel %vm6349_vm7, %v6622_v19, 0  ;;  %v12394_v2 = vld [vmem:[%s16307_s7 + $0x1b8] sm:$0xff]   ;;  %v12399_v18 = vld [vmem:[%s16307_s7 + $0x440] sm:$0xff]   ;;  %v12401_v59 = vld [vmem:[%s16307_s7 + $0x2c8] sm:$0xff]  }
 0x433   :  { %11716 = vmatpush3.bf16.msra.mxu0 %v12380_v20  ;;  %v15297_v48 = vsel %vm6351_vm8, %v6617_v41, %v6623_v38  ;;  %v12388_v41 = vld [vmem:[%s16307_s7 + $0x328] sm:$0xff]   ;;  %v12398_v20 = vld [vmem:[%s16307_s7 + $0x280] sm:$0xff]   ;;  %v12411_v38 = vld [vmem:[%s16307_s7 + $0x458] sm:$0xff]  }
 0x434   :  { %11717 = vmatprep.subr.bf16.mxu0 %v12383_v43  ;;  %v6628_v46 = vsel %vm6349_vm7, %v6626_v11, 0  ;;  %v12400_v43 = vld [vmem:[%s16307_s7 + $0x400] sm:$0xff]   ;;  %v12403_v19 = vld [vmem:[%s16307_s7 + $0x448] sm:$0xff]   ;;  %v12409_v11 = vld [vmem:[%s16307_s7 + $0x2d8] sm:$0xff]  }
 0x435   :  { %11652 = vmatpush3.bf16.msra.mxu1 %v12382_v50  ;;  %v15307_v8 = vsel %vm6351_vm8, %v6630_v35, %v6628_v46  ;;  %v12402_v50 = vld [vmem:[%s16307_s7 + $0x288] sm:$0xff]   ;;  %v12413_v35 = vld [vmem:[%s16307_s7 + $0x2e0] sm:$0xff]  }
 0x436   :  { %11653 = vmatprep.subr.bf16.mxu1 %v12385_v54  ;;  %v12405_v54 = vld [vmem:[%s16307_s7 + $0x2d0] sm:$0xff]   ;;  %v12415_v46 = vld [vmem:[%s16307_s7 + $0x460] sm:$0xff]  }
 0x437   :  { %11718 = vmatpush3.bf16.msra.mxu0 %v12384_v32  ;;  %v12410_v32 = vld [vmem:[%s16307_s7 + $0x298] sm:$0xff]  }
 0x438   :  { %11719 = vmatprep.subr.bf16.mxu0 %v12387_v4  ;;  %v12412_v4 = vld [vmem:[%s16307_s7 + $0x418] sm:$0xff]  }
 0x439   :  { %11654 = vmatpush3.bf16.msra.mxu1 %v12386_v58  ;;  %v12414_v58 = vld [vmem:[%s16307_s7 + $0x2a0] sm:$0xff]  }
 0x43a   :  { %11655 = vmatprep.subr.bf16.mxu1 %v12389_v56  ;;  %v12417_v56 = vld [vmem:[%s16307_s7 + $0x2e8] sm:$0xff]  }
 0x43b   :  { %11720 = vmatpush3.bf16.msra.mxu0 %v12388_v41  ;;  %v12416_v41 = vld [vmem:[%s16307_s7 + $0x420] sm:$0xff]  }
 0x43c   :  { %11721 = vmatprep.subr.bf16.mxu0 %v12391_v17  ;;  %v12419_v17 = vld [vmem:[%s16307_s7 + $0x468] sm:$0xff]  }
 0x43d   :  { %11656 = vmatpush3.bf16.msra.mxu1 %v12390_v51  ;;  %v12418_v51 = vld [vmem:[%s16307_s7 + $0x2a8] sm:$0xff]  }
 0x43e   :  { %11657 = vmatprep.subr.bf16.mxu1 %v12393_v60  ;;  %v12421_v60 = vld [vmem:[%s16307_s7 + $0x2f0] sm:$0xff]  }
 0x43f   :  { %11722 = vmatpush3.bf16.msra.mxu0 %v12392_v1  ;;  %v12420_v1 = vld [vmem:[%s16307_s7 + $0x428] sm:$0xff]  }
 0x440   :  { %11723 = vmatprep.subr.bf16.mxu0 %v12395_v3  ;;  %v12423_v3 = vld [vmem:[%s16307_s7 + $0x470] sm:$0xff]  }
 0x441   :  { %11658 = vmatpush3.bf16.msra.mxu1 %v12394_v2  ;;  %v12422_v2 = vld [vmem:[%s16307_s7 + $0x2b0] sm:$0xff]  }
 0x442   :  { %11687 = vmatprep.subr.bf16.mxu1 %v12397_v13  ;;  %v12425_v13 = vld [vmem:[%s16307_s7 + $0x2f8] sm:$0xff]  }
 0x443   :  { %11724 = vmatpush3.bf16.msra.mxu0 %v12396_v36  ;;  %v12424_v36 = vld [vmem:[%s16307_s7 + $0x430] sm:$0xff]  }
 0x444   :  { %9931 = vmatmul.mubr.bf16.vlgmr.msra.gmra.mrb[64].mxu1 %v14920_v31  ;;  %11753 = vmatprep.subr.bf16.mxu0 %v12399_v18  ;;  %v12404_v31 = vld [vmem:[%s16307_s7 + $0x408] sm:$0xff]   ;;  %v12427_v18 = vld [vmem:[%s16307_s7 + $0x478] sm:$0xff]  }
 0x445   :  { %11688 = vmatpush3.bf16.msra.mxu1 %v12398_v20  ;;  %10010 = vmatprep.mubr.bf16.mxu1 %v14965_v16  ;;  %v12407_v16 = vld [vmem:[%s16307_s7 + $0x450] sm:$0xff]   ;;  %v12426_v20 = vld [vmem:[%s16307_s7 + $0x2b8] sm:$0xff]  }
 0x446   :  { %10051 = vmatmul.mubr.bf16.vlgmr.msra.gmra.mrb[108].mxu0 %v14949_v55  ;;  %11689 = vmatprep.subr.bf16.mxu1 %v12401_v59  ;;  %v12406_v55 = vld [vmem:[%s16307_s7 + $0x290] sm:$0xff]   ;;  %v12429_v59 = vld [vmem:[%s16307_s7 + $0x3c0] sm:$0xff]  }
 0x447   :  { %11754 = vmatpush3.bf16.msra.mxu0 %v12400_v43  ;;  %10130 = vmatprep.mubr.bf16.mxu0 %v14996_v23  ;;  %v12408_v23 = vld [vmem:[%s16307_s7 + $0x410] sm:$0xff]   ;;  %v12428_v43 = vld [vmem:[%s16307_s7 + $0x438] sm:$0xff]  }
 0x448   :  { %11755 = vmatprep.subr.bf16.mxu0 %v12403_v19  ;;  %v12431_v19 = vld [vmem:[%s16307_s7 + $0x540] sm:$0xff]  }
 0x449   :  { %11690 = vmatpush3.bf16.msra.mxu1 %v12402_v50  ;;  %v12430_v50 = vld [vmem:[%s16307_s7 + $0x380] sm:$0xff]  }
 0x44a   :  { %11691 = vmatprep.subr.bf16.mxu1 %v12405_v54  ;;  %v12433_v54 = vld [vmem:[%s16307_s7 + $0x3c8] sm:$0xff]  }
 0x44b   :  { %11756 = vmatpush3.bf16.msra.mxu0 %v12404_v31  ;;  %v12432_v31 = vld [vmem:[%s16307_s7 + $0x500] sm:$0xff]  }
 0x44c   :  { %11757 = vmatprep.subr.bf16.mxu0 %v12407_v16  ;;  %v12435_v16 = vld [vmem:[%s16307_s7 + $0x548] sm:$0xff]  }
 0x44d   :  { %11692 = vmatpush3.bf16.msra.mxu1 %v12406_v55  ;;  %v12434_v55 = vld [vmem:[%s16307_s7 + $0x388] sm:$0xff]  }
 0x44e   :  { %11693 = vmatprep.subr.bf16.mxu1 %v12409_v11  ;;  %v12437_v11 = vld [vmem:[%s16307_s7 + $0x3d0] sm:$0xff]  }
 0x44f   :  { %11758 = vmatpush3.bf16.msra.mxu0 %v12408_v23  ;;  %v12441_v23 = vld [vmem:[%s16307_s7 + $0x3d8] sm:$0xff]  }
 0x450   :  { %11759 = vmatprep.subr.bf16.mxu0 %v12411_v38  ;;  %v12443_v38 = vld [vmem:[%s16307_s7 + $0x558] sm:$0xff]  }
 0x451   :  { %11694 = vmatpush3.bf16.msra.mxu1 %v12410_v32  ;;  %v12442_v32 = vld [vmem:[%s16307_s7 + $0x398] sm:$0xff]  }
 0x452   :  { %11695 = vmatprep.subr.bf16.mxu1 %v12413_v35  ;;  %v12445_v35 = vld [vmem:[%s16307_s7 + $0x3e0] sm:$0xff]  }
 0x453   :  { %11760 = vmatpush3.bf16.msra.mxu0 %v12412_v4  ;;  %v12444_v4 = vld [vmem:[%s16307_s7 + $0x518] sm:$0xff]  }
 0x454   :  { %11761 = vmatprep.subr.bf16.mxu0 %v12415_v46  ;;  %v12447_v46 = vld [vmem:[%s16307_s7 + $0x560] sm:$0xff]  }
 0x455   :  { %11696 = vmatpush3.bf16.msra.mxu1 %v12414_v58  ;;  %v12446_v58 = vld [vmem:[%s16307_s7 + $0x3a0] sm:$0xff]  }
 0x456   :  { %11697 = vmatprep.subr.bf16.mxu1 %v12417_v56  ;;  %v12449_v56 = vld [vmem:[%s16307_s7 + $0x3e8] sm:$0xff]  }
 0x457   :  { %11762 = vmatpush3.bf16.msra.mxu0 %v12416_v41  ;;  %v12448_v41 = vld [vmem:[%s16307_s7 + $0x520] sm:$0xff]  }
 0x458   :  { %11763 = vmatprep.subr.bf16.mxu0 %v12419_v17  ;;  %v12451_v17 = vld [vmem:[%s16307_s7 + $0x568] sm:$0xff]  }
 0x459   :  { %11698 = vmatpush3.bf16.msra.mxu1 %v12418_v51  ;;  %v12450_v51 = vld [vmem:[%s16307_s7 + $0x3a8] sm:$0xff]  }
 0x45a   :  { %11699 = vmatprep.subr.bf16.mxu1 %v12421_v60  ;;  %v12453_v60 = vld [vmem:[%s16307_s7 + $0x3f0] sm:$0xff]  }
 0x45b   :  { %11764 = vmatpush3.bf16.msra.mxu0 %v12420_v1  ;;  %v12452_v1 = vld [vmem:[%s16307_s7 + $0x528] sm:$0xff]  }
 0x45c   :  { %11765 = vmatprep.subr.bf16.mxu0 %v12423_v3  ;;  %v12455_v3 = vld [vmem:[%s16307_s7 + $0x570] sm:$0xff]  }
 0x45d   :  { %11700 = vmatpush3.bf16.msra.mxu1 %v12422_v2  ;;  %v12454_v2 = vld [vmem:[%s16307_s7 + $0x3b0] sm:$0xff]  }
 0x45e   :  { %11701 = vmatprep.subr.bf16.mxu1 %v12425_v13  ;;  %v12457_v13 = vld [vmem:[%s16307_s7 + $0x3f8] sm:$0xff]  }
 0x45f   :  { %11766 = vmatpush3.bf16.msra.mxu0 %v12424_v36  ;;  %v12456_v36 = vld [vmem:[%s16307_s7 + $0x530] sm:$0xff]  }
 0x460   :  { %11767 = vmatprep.subr.bf16.mxu0 %v12427_v18  ;;  %v12459_v18 = vld [vmem:[%s16307_s7 + $0x578] sm:$0xff]  }
 0x461   :  { %11702 = vmatpush3.bf16.msra.mxu1 %v12426_v20  ;;  %v12458_v20 = vld [vmem:[%s16307_s7 + $0x3b8] sm:$0xff]  }
 0x462   :  { %11731 = vmatprep.subr.bf16.mxu1 %v12429_v59  ;;  %v12461_v59 = vld [vmem:[%s16307_s7 + $0x4c0] sm:$0xff]  }
 0x463   :  { %11768 = vmatpush3.bf16.msra.mxu0 %v12428_v43  ;;  %v12460_v43 = vld [vmem:[%s16307_s7 + $0x538] sm:$0xff]  }
 0x464   :  { %10011 = vmatmul.mubr.bf16.vlgmr.msra.gmra.mrb[68].mxu1 %v14961_v27  ;;  %11797 = vmatprep.subr.bf16.mxu0 %v12431_v19  ;;  %v12436_v27 = vld [vmem:[%s16307_s7 + $0x508] sm:$0xff]   ;;  %v12463_v19 = vld [vmem:[%s16307_s7 + $0x640] sm:$0xff]  }
 0x465   :  { %11732 = vmatpush3.bf16.msra.mxu1 %v12430_v50  ;;  %10090 = vmatprep.mubr.bf16.mxu1 %v14999_v40  ;;  %v12439_v40 = vld [vmem:[%s16307_s7 + $0x550] sm:$0xff]   ;;  %v12462_v50 = vld [vmem:[%s16307_s7 + $0x480] sm:$0xff]  }
 0x466   :  { %10131 = vmatmul.mubr.bf16.vlgmr.msra.gmra.mrb[112].mxu0 %v14975_v5  ;;  %11733 = vmatprep.subr.bf16.mxu1 %v12433_v54  ;;  %v12438_v5 = vld [vmem:[%s16307_s7 + $0x390] sm:$0xff]   ;;  %v12465_v54 = vld [vmem:[%s16307_s7 + $0x4c8] sm:$0xff]  }
 0x467   :  { %11798 = vmatpush3.bf16.msra.mxu0 %v12432_v31  ;;  %10210 = vmatprep.mubr.bf16.mxu0 %v15011_v9  ;;  %v12440_v9 = vld [vmem:[%s16307_s7 + $0x510] sm:$0xff]   ;;  %v12464_v31 = vld [vmem:[%s16307_s7 + $0x600] sm:$0xff]  }
 0x468   :  { %11799 = vmatprep.subr.bf16.mxu0 %v12435_v16  ;;  %v12467_v16 = vld [vmem:[%s16307_s7 + $0x648] sm:$0xff]  }
 0x469   :  { %11734 = vmatpush3.bf16.msra.mxu1 %v12434_v55  ;;  %v12466_v55 = vld [vmem:[%s16307_s7 + $0x488] sm:$0xff]  }
 0x46a   :  { %11735 = vmatprep.subr.bf16.mxu1 %v12437_v11  ;;  %v12469_v11 = vld [vmem:[%s16307_s7 + $0x4d0] sm:$0xff]  }
 0x46b   :  { %11800 = vmatpush3.bf16.msra.mxu0 %v12436_v27  ;;  %v12473_v27 = vld [vmem:[%s16307_s7 + $0x4d8] sm:$0xff]  }
 0x46c   :  { %11801 = vmatprep.subr.bf16.mxu0 %v12439_v40  ;;  %v12475_v40 = vld [vmem:[%s16307_s7 + $0x658] sm:$0xff]  }
 0x46d   :  { %11736 = vmatpush3.bf16.msra.mxu1 %v12438_v5  ;;  %v12474_v5 = vld [vmem:[%s16307_s7 + $0x498] sm:$0xff]  }
 0x46e   :  { %11737 = vmatprep.subr.bf16.mxu1 %v12441_v23  ;;  %v12477_v23 = vld [vmem:[%s16307_s7 + $0x4e0] sm:$0xff]  }
 0x46f   :  { %11802 = vmatpush3.bf16.msra.mxu0 %v12440_v9  ;;  %v12476_v9 = vld [vmem:[%s16307_s7 + $0x618] sm:$0xff]  }
 0x470   :  { %11803 = vmatprep.subr.bf16.mxu0 %v12443_v38  ;;  %v12479_v38 = vld [vmem:[%s16307_s7 + $0x660] sm:$0xff]  }
 0x471   :  { %11738 = vmatpush3.bf16.msra.mxu1 %v12442_v32  ;;  %v12478_v32 = vld [vmem:[%s16307_s7 + $0x4a0] sm:$0xff]  }
 0x472   :  { %11739 = vmatprep.subr.bf16.mxu1 %v12445_v35  ;;  %v12481_v35 = vld [vmem:[%s16307_s7 + $0x4e8] sm:$0xff]  }
 0x473   :  { %11804 = vmatpush3.bf16.msra.mxu0 %v12444_v4  ;;  %v12480_v4 = vld [vmem:[%s16307_s7 + $0x620] sm:$0xff]  }
 0x474   :  { %11805 = vmatprep.subr.bf16.mxu0 %v12447_v46  ;;  %v12483_v46 = vld [vmem:[%s16307_s7 + $0x668] sm:$0xff]  }
 0x475   :  { %11740 = vmatpush3.bf16.msra.mxu1 %v12446_v58  ;;  %v12482_v58 = vld [vmem:[%s16307_s7 + $0x4a8] sm:$0xff]  }
 0x476   :  { %11741 = vmatprep.subr.bf16.mxu1 %v12449_v56  ;;  %v12485_v56 = vld [vmem:[%s16307_s7 + $0x4f0] sm:$0xff]  }
 0x477   :  { %11806 = vmatpush3.bf16.msra.mxu0 %v12448_v41  ;;  %v12484_v41 = vld [vmem:[%s16307_s7 + $0x628] sm:$0xff]  }
 0x478   :  { %11807 = vmatprep.subr.bf16.mxu0 %v12451_v17  ;;  %v12487_v17 = vld [vmem:[%s16307_s7 + $0x670] sm:$0xff]  }
 0x479   :  { %11742 = vmatpush3.bf16.msra.mxu1 %v12450_v51  ;;  %v12486_v51 = vld [vmem:[%s16307_s7 + $0x4b0] sm:$0xff]  }
 0x47a   :  { %11743 = vmatprep.subr.bf16.mxu1 %v12453_v60  ;;  %v12489_v60 = vld [vmem:[%s16307_s7 + $0x4f8] sm:$0xff]  }
 0x47b   :  { %11808 = vmatpush3.bf16.msra.mxu0 %v12452_v1  ;;  %v12488_v1 = vld [vmem:[%s16307_s7 + $0x630] sm:$0xff]  }
 0x47c   :  { %11809 = vmatprep.subr.bf16.mxu0 %v12455_v3  ;;  %v12491_v3 = vld [vmem:[%s16307_s7 + $0x678] sm:$0xff]  }
 0x47d   :  { %11744 = vmatpush3.bf16.msra.mxu1 %v12454_v2  ;;  %v12490_v2 = vld [vmem:[%s16307_s7 + $0x4b8] sm:$0xff]  }
 0x47e   :  { %11745 = vmatprep.subr.bf16.mxu1 %v12457_v13  ;;  %v12493_v13 = vld [vmem:[%s16307_s7 + $0x5c0] sm:$0xff]  }
 0x47f   :  { %11810 = vmatpush3.bf16.msra.mxu0 %v12456_v36  ;;  %v12492_v36 = vld [vmem:[%s16307_s7 + $0x638] sm:$0xff]  }
 0x480   :  { %11811 = vmatprep.subr.bf16.mxu0 %v12459_v18  ;;  %v12495_v18 = vld [vmem:[%s16307_s7 + $0x740] sm:$0xff]  }
 0x481   :  { %11746 = vmatpush3.bf16.msra.mxu1 %v12458_v20  ;;  %v12494_v20 = vld [vmem:[%s16307_s7 + $0x580] sm:$0xff]  }
 0x482   :  { %11775 = vmatprep.subr.bf16.mxu1 %v12461_v59  ;;  %v12497_v59 = vld [vmem:[%s16307_s7 + $0x5c8] sm:$0xff]  }
 0x483   :  { %11812 = vmatpush3.bf16.msra.mxu0 %v12460_v43  ;;  %v12496_v43 = vld [vmem:[%s16307_s7 + $0x700] sm:$0xff]  }
 0x484   :  { %10091 = vmatmul.mubr.bf16.vlgmr.msra.gmra.mrb[72].mxu1 %v14989_v14  ;;  %11841 = vmatprep.subr.bf16.mxu0 %v12463_v19  ;;  %v12468_v14 = vld [vmem:[%s16307_s7 + $0x608] sm:$0xff]  }
 0x485   :  { %11776 = vmatpush3.bf16.msra.mxu1 %v12462_v50  ;;  %10170 = vmatprep.mubr.bf16.mxu1 %v15030_v47  ;;  %v12471_v47 = vld [vmem:[%s16307_s7 + $0x650] sm:$0xff]   ;;  %v12499_v19 = vld [vmem:[%s16307_s7 + $0x748] sm:$0xff]  }
 0x486   :  { %10211 = vmatmul.mubr.bf16.vlgmr.msra.gmra.mrb[116].mxu0 %v15014_v26  ;;  %11777 = vmatprep.subr.bf16.mxu1 %v12465_v54  ;;  %v12470_v26 = vld [vmem:[%s16307_s7 + $0x490] sm:$0xff]   ;;  %v12498_v50 = vld [vmem:[%s16307_s7 + $0x588] sm:$0xff]  }
 0x487   :  { %11842 = vmatpush3.bf16.msra.mxu0 %v12464_v31  ;;  %10290 = vmatprep.mubr.bf16.mxu0 %v15045_v33  ;;  %v12472_v33 = vld [vmem:[%s16307_s7 + $0x610] sm:$0xff]   ;;  %v12505_v31 = vld [vmem:[%s16307_s7 + $0x5d8] sm:$0xff]  }
 0x488   :  { %11843 = vmatprep.subr.bf16.mxu0 %v12467_v16  ;;  %v12501_v54 = vld [vmem:[%s16307_s7 + $0x5d0] sm:$0xff]   ;;  %v12507_v16 = vld [vmem:[%s16307_s7 + $0x758] sm:$0xff]  }
 0x489   :  { %11778 = vmatpush3.bf16.msra.mxu1 %v12466_v55  ;;  %v12506_v55 = vld [vmem:[%s16307_s7 + $0x598] sm:$0xff]  }
 0x48a   :  { %11779 = vmatprep.subr.bf16.mxu1 %v12469_v11  ;;  %v12509_v11 = vld [vmem:[%s16307_s7 + $0x5e0] sm:$0xff]  }
 0x48b   :  { %11844 = vmatpush3.bf16.msra.mxu0 %v12468_v14  ;;  %v12508_v14 = vld [vmem:[%s16307_s7 + $0x718] sm:$0xff]  }
 0x48c   :  { %11845 = vmatprep.subr.bf16.mxu0 %v12471_v47  ;;  %v12511_v47 = vld [vmem:[%s16307_s7 + $0x760] sm:$0xff]  }
 0x48d   :  { %11780 = vmatpush3.bf16.msra.mxu1 %v12470_v26  ;;  %v12510_v26 = vld [vmem:[%s16307_s7 + $0x5a0] sm:$0xff]  }
 0x48e   :  { %11781 = vmatprep.subr.bf16.mxu1 %v12473_v27  ;;  %v12513_v27 = vld [vmem:[%s16307_s7 + $0x5e8] sm:$0xff]  }
 0x48f   :  { %11846 = vmatpush3.bf16.msra.mxu0 %v12472_v33  ;;  %v12512_v33 = vld [vmem:[%s16307_s7 + $0x720] sm:$0xff]  }
 0x490   :  { %11847 = vmatprep.subr.bf16.mxu0 %v12475_v40  ;;  %v12515_v40 = vld [vmem:[%s16307_s7 + $0x768] sm:$0xff]  }
 0x491   :  { %11782 = vmatpush3.bf16.msra.mxu1 %v12474_v5  ;;  %v12514_v5 = vld [vmem:[%s16307_s7 + $0x5a8] sm:$0xff]  }
 0x492   :  { %11783 = vmatprep.subr.bf16.mxu1 %v12477_v23  ;;  %v12517_v23 = vld [vmem:[%s16307_s7 + $0x5f0] sm:$0xff]  }
 0x493   :  { %11848 = vmatpush3.bf16.msra.mxu0 %v12476_v9  ;;  %v12516_v9 = vld [vmem:[%s16307_s7 + $0x728] sm:$0xff]  }
 0x494   :  { %11849 = vmatprep.subr.bf16.mxu0 %v12479_v38  ;;  %v12519_v38 = vld [vmem:[%s16307_s7 + $0x770] sm:$0xff]  }
 0x495   :  { %11784 = vmatpush3.bf16.msra.mxu1 %v12478_v32  ;;  %v12518_v32 = vld [vmem:[%s16307_s7 + $0x5b0] sm:$0xff]  }
 0x496   :  { %11785 = vmatprep.subr.bf16.mxu1 %v12481_v35  ;;  %v12521_v35 = vld [vmem:[%s16307_s7 + $0x5f8] sm:$0xff]  }
 0x497   :  { %11850 = vmatpush3.bf16.msra.mxu0 %v12480_v4  ;;  %v12520_v4 = vld [vmem:[%s16307_s7 + $0x730] sm:$0xff]  }
 0x498   :  { %11851 = vmatprep.subr.bf16.mxu0 %v12483_v46  ;;  %v12523_v46 = vld [vmem:[%s16307_s7 + $0x778] sm:$0xff]  }
 0x499   :  { %11786 = vmatpush3.bf16.msra.mxu1 %v12482_v58  ;;  %v12522_v58 = vld [vmem:[%s16307_s7 + $0x5b8] sm:$0xff]  }
 0x49a   :  { %11787 = vmatprep.subr.bf16.mxu1 %v12485_v56  ;;  %v12525_v56 = vld [vmem:[%s16307_s7 + $0x6c0] sm:$0xff]  }
 0x49b   :  { %11852 = vmatpush3.bf16.msra.mxu0 %v12484_v41  ;;  %v12524_v41 = vld [vmem:[%s16307_s7 + $0x738] sm:$0xff]  }
 0x49c   :  { %11853 = vmatprep.subr.bf16.mxu0 %v12487_v17  ;;  %v12527_v17 = vld [vmem:[%s16307_s7 + $0x840] sm:$0xff]  }
 0x49d   :  { %11788 = vmatpush3.bf16.msra.mxu1 %v12486_v51  ;;  %v12526_v51 = vld [vmem:[%s16307_s7 + $0x680] sm:$0xff]  }
 0x49e   :  { %11789 = vmatprep.subr.bf16.mxu1 %v12489_v60  ;;  %v12529_v60 = vld [vmem:[%s16307_s7 + $0x6c8] sm:$0xff]  }
 0x49f   :  { %11854 = vmatpush3.bf16.msra.mxu0 %v12488_v1  ;;  %v12528_v1 = vld [vmem:[%s16307_s7 + $0x800] sm:$0xff]  }
 0x4a0   :  { %11855 = vmatprep.subr.bf16.mxu0 %v12491_v3  ;;  %v12531_v3 = vld [vmem:[%s16307_s7 + $0x848] sm:$0xff]  }
 0x4a1   :  { %11790 = vmatpush3.bf16.msra.mxu1 %v12490_v2  ;;  %v12530_v2 = vld [vmem:[%s16307_s7 + $0x688] sm:$0xff]  }
 0x4a2   :  { %11819 = vmatprep.subr.bf16.mxu1 %v12493_v13  ;;  %v12533_v13 = vld [vmem:[%s16307_s7 + $0x6d0] sm:$0xff]  }
 0x4a3   :  { %11856 = vmatpush3.bf16.msra.mxu0 %v12492_v36  ;;  %v12537_v36 = vld [vmem:[%s16307_s7 + $0x6d8] sm:$0xff]  }
 0x4a4   :  { %10171 = vmatmul.mubr.bf16.vlgmr.msra.gmra.mrb[76].mxu1 %v15035_v62  ;;  %11885 = vmatprep.subr.bf16.mxu0 %v12495_v18  ;;  %v12500_v62 = vld [vmem:[%s16307_s7 + $0x708] sm:$0xff]   ;;  %v12539_v18 = vld [vmem:[%s16307_s7 + $0x858] sm:$0xff]  }
 0x4a5   :  { %11820 = vmatpush3.bf16.msra.mxu1 %v12494_v20  ;;  %10250 = vmatprep.mubr.bf16.mxu1 %v15064_v22  ;;  %v12503_v22 = vld [vmem:[%s16307_s7 + $0x750] sm:$0xff]   ;;  %v12538_v20 = vld [vmem:[%s16307_s7 + $0x698] sm:$0xff]  }
 0x4a6   :  { %10291 = vmatmul.mubr.bf16.vlgmr.msra.gmra.mrb[120].mxu0 %v15048_v42  ;;  %11821 = vmatprep.subr.bf16.mxu1 %v12497_v59  ;;  %v12502_v42 = vld [vmem:[%s16307_s7 + $0x590] sm:$0xff]   ;;  %v12541_v59 = vld [vmem:[%s16307_s7 + $0x6e0] sm:$0xff]  }
 0x4a7   :  { %11886 = vmatpush3.bf16.msra.mxu0 %v12496_v43  ;;  %10370 = vmatprep.mubr.bf16.mxu0 %v15082_v49  ;;  %v12504_v49 = vld [vmem:[%s16307_s7 + $0x710] sm:$0xff]   ;;  %v12540_v43 = vld [vmem:[%s16307_s7 + $0x818] sm:$0xff]  }
 0x4a8   :  { %11887 = vmatprep.subr.bf16.mxu0 %v12499_v19  ;;  %v12543_v19 = vld [vmem:[%s16307_s7 + $0x860] sm:$0xff]  }
 0x4a9   :  { %11822 = vmatpush3.bf16.msra.mxu1 %v12498_v50  ;;  %v12542_v50 = vld [vmem:[%s16307_s7 + $0x6a0] sm:$0xff]  }
 0x4aa   :  { %11823 = vmatprep.subr.bf16.mxu1 %v12501_v54  ;;  %v12545_v54 = vld [vmem:[%s16307_s7 + $0x6e8] sm:$0xff]  }
 0x4ab   :  { %11888 = vmatpush3.bf16.msra.mxu0 %v12500_v62  ;;  %v12544_v62 = vld [vmem:[%s16307_s7 + $0x820] sm:$0xff]  }
 0x4ac   :  { %11889 = vmatprep.subr.bf16.mxu0 %v12503_v22  ;;  %v12547_v22 = vld [vmem:[%s16307_s7 + $0x868] sm:$0xff]  }
 0x4ad   :  { %11824 = vmatpush3.bf16.msra.mxu1 %v12502_v42  ;;  %v12546_v42 = vld [vmem:[%s16307_s7 + $0x6a8] sm:$0xff]  }
 0x4ae   :  { %11825 = vmatprep.subr.bf16.mxu1 %v12505_v31  ;;  %v12549_v31 = vld [vmem:[%s16307_s7 + $0x6f0] sm:$0xff]  }
 0x4af   :  { %11890 = vmatpush3.bf16.msra.mxu0 %v12504_v49 }
 0x4b0   :  { %11891 = vmatprep.subr.bf16.mxu0 %v12507_v16 }
 0x4b1   :  { %11826 = vmatpush3.bf16.msra.mxu1 %v12506_v55  ;;  %v12548_v55 = vld [vmem:[%s16307_s7 + $0x828] sm:$0xff]  }
 0x4b2   :  { %11827 = vmatprep.subr.bf16.mxu1 %v12509_v11 }
 0x4b3   :  { %11892 = vmatpush3.bf16.msra.mxu0 %v12508_v14 }
 0x4b4   :  { %11893 = vmatprep.subr.bf16.mxu0 %v12511_v47  ;;  %v12551_v47 = vld [vmem:[%s16307_s7 + $0x870] sm:$0xff]  }
 0x4b5   :  { %11828 = vmatpush3.bf16.msra.mxu1 %v12510_v26 }
 0x4b6   :  { %11829 = vmatprep.subr.bf16.mxu1 %v12513_v27 }
 0x4b7   :  { %11894 = vmatpush3.bf16.msra.mxu0 %v12512_v33 }
 0x4b8   :  { %11895 = vmatprep.subr.bf16.mxu0 %v12515_v40 }
 0x4b9   :  { %11830 = vmatpush3.bf16.msra.mxu1 %v12514_v5  ;;  %v12550_v5 = vld [vmem:[%s16307_s7 + $0x6b0] sm:$0xff]  }
 0x4ba   :  { %11831 = vmatprep.subr.bf16.mxu1 %v12517_v23 }
 0x4bb   :  { %11896 = vmatpush3.bf16.msra.mxu0 %v12516_v9 }
 0x4bc   :  { %11897 = vmatprep.subr.bf16.mxu0 %v12519_v38  ;;  %v12553_v38 = vld [vmem:[%s16307_s7 + $0x6f8] sm:$0xff]  }
 0x4bd   :  { %11832 = vmatpush3.bf16.msra.mxu1 %v12518_v32  ;;  %v12552_v32 = vld [vmem:[%s16307_s7 + $0x830] sm:$0xff]  }
 0x4be   :  { %11833 = vmatprep.subr.bf16.mxu1 %v12521_v35  ;;  %v12555_v35 = vld [vmem:[%s16307_s7 + $0x878] sm:$0xff]  }
 0x4bf   :  { %11898 = vmatpush3.bf16.msra.mxu0 %v12520_v4  ;;  %v12554_v4 = vld [vmem:[%s16307_s7 + $0x6b8] sm:$0xff]  }
 0x4c0   :  { %11899 = vmatprep.subr.bf16.mxu0 %v12523_v46  ;;  %v12557_v46 = vld [vmem:[%s16307_s7 + $0x7c0] sm:$0xff]  }
 0x4c1   :  { %11834 = vmatpush3.bf16.msra.mxu1 %v12522_v58  ;;  %v12556_v58 = vld [vmem:[%s16307_s7 + $0x838] sm:$0xff]  }
 0x4c2   :  { %11863 = vmatprep.subr.bf16.mxu1 %v12525_v56  ;;  %v12559_v56 = vld [vmem:[%s16307_s7 + $0x940] sm:$0xff]  }
 0x4c3   :  { %11900 = vmatpush3.bf16.msra.mxu0 %v12524_v41  ;;  %v12558_v41 = vld [vmem:[%s16307_s7 + $0x780] sm:$0xff]  }
 0x4c4   :  { %10251 = vmatmul.mubr.bf16.vlgmr.msra.gmra.mrb[80].mxu1 %v15069_v29  ;;  %11929 = vmatprep.subr.bf16.mxu0 %v12527_v17  ;;  %v12532_v29 = vld [vmem:[%s16307_s7 + $0x808] sm:$0xff]  }
 0x4c5   :  { %11864 = vmatpush3.bf16.msra.mxu1 %v12526_v51  ;;  %10330 = vmatprep.mubr.bf16.mxu1 %v15105_v12  ;;  %v12535_v12 = vld [vmem:[%s16307_s7 + $0x850] sm:$0xff]   ;;  %v12561_v17 = vld [vmem:[%s16307_s7 + $0x7c8] sm:$0xff]   ;;  %v12560_v51 = vld [vmem:[%s16307_s7 + $0x900] sm:$0xff]  }
 0x4c6   :  { %10371 = vmatmul.mubr.bf16.vlgmr.msra.gmra.mrb[124].mxu0 %v15085_v61  ;;  %11865 = vmatprep.subr.bf16.mxu1 %v12529_v60  ;;  %v12534_v61 = vld [vmem:[%s16307_s7 + $0x690] sm:$0xff]   ;;  %v12563_v60 = vld [vmem:[%s16307_s7 + $0x948] sm:$0xff]  }
 0x4c7   :  { %11930 = vmatpush3.bf16.msra.mxu0 %v12528_v1  ;;  %10450 = vmatprep.mubr.bf16.mxu0 %v15189_v10  ;;  %v12536_v10 = vld [vmem:[%s16307_s7 + $0x810] sm:$0xff]   ;;  %v12562_v1 = vld [vmem:[%s16307_s7 + $0x788] sm:$0xff]  }
 0x4c8   :  { %11931 = vmatprep.subr.bf16.mxu0 %v12531_v3  ;;  %v12565_v3 = vld [vmem:[%s16307_s7 + $0x7d0] sm:$0xff]  }
 0x4c9   :  { %11866 = vmatpush3.bf16.msra.mxu1 %v12530_v2  ;;  %v12569_v2 = vld [vmem:[%s16307_s7 + $0x7d8] sm:$0xff]  }
 0x4ca   :  { %11867 = vmatprep.subr.bf16.mxu1 %v12533_v13  ;;  %v12571_v13 = vld [vmem:[%s16307_s7 + $0x958] sm:$0xff]  }
 0x4cb   :  { %11932 = vmatpush3.bf16.msra.mxu0 %v12532_v29  ;;  %v12570_v29 = vld [vmem:[%s16307_s7 + $0x798] sm:$0xff]  }
 0x4cc   :  { %11933 = vmatprep.subr.bf16.mxu0 %v12535_v12  ;;  %v12573_v12 = vld [vmem:[%s16307_s7 + $0x7e0] sm:$0xff]  }
 0x4cd   :  { %11868 = vmatpush3.bf16.msra.mxu1 %v12534_v61  ;;  %v12572_v61 = vld [vmem:[%s16307_s7 + $0x918] sm:$0xff]  }
 0x4ce   :  { %11869 = vmatprep.subr.bf16.mxu1 %v12537_v36  ;;  %v12575_v36 = vld [vmem:[%s16307_s7 + $0x960] sm:$0xff]  }
 0x4cf   :  { %11934 = vmatpush3.bf16.msra.mxu0 %v12536_v10  ;;  %v12574_v10 = vld [vmem:[%s16307_s7 + $0x7a0] sm:$0xff]  }
 0x4d0   :  { %11935 = vmatprep.subr.bf16.mxu0 %v12539_v18  ;;  %v12577_v18 = vld [vmem:[%s16307_s7 + $0x7e8] sm:$0xff]  }
 0x4d1   :  { %11870 = vmatpush3.bf16.msra.mxu1 %v12538_v20  ;;  %v12576_v20 = vld [vmem:[%s16307_s7 + $0x920] sm:$0xff]  }
 0x4d2   :  { %11871 = vmatprep.subr.bf16.mxu1 %v12541_v59  ;;  %v12579_v59 = vld [vmem:[%s16307_s7 + $0x968] sm:$0xff]  }
 0x4d3   :  { %11936 = vmatpush3.bf16.msra.mxu0 %v12540_v43  ;;  %v12578_v43 = vld [vmem:[%s16307_s7 + $0x7a8] sm:$0xff]  }
 0x4d4   :  { %11937 = vmatprep.subr.bf16.mxu0 %v12543_v19  ;;  %v11042_v19 = vld [vmem:[%s16311_s8] ss:$0 sm:$0xff] }
 0x4d5   :  { %11872 = vmatpush3.bf16.msra.mxu1 %v12542_v50  ;;  %v12581_v50 = vld [vmem:[%s16307_s7 + $0x7f0] sm:$0xff]  }
 0x4d6   :  { %11873 = vmatprep.subr.bf16.mxu1 %v12545_v54 }
 0x4d7   :  { %11938 = vmatpush3.bf16.msra.mxu0 %v12544_v62  ;;  %v11593_v49 = vpop.f32.mrb[56].mxu1  ;;  %v11637_v16 = vpop.f32.mrb[100].mxu0  ;;  %v12580_v62 = vld [vmem:[%s16307_s7 + $0x928] sm:$0xff]  }
 0x4d8   :  { %v11594_v11 = vpop.f32.mrb[57].mxu1  ;;  %11939 = vmatprep.subr.bf16.mxu0 %v12547_v22  ;;  %v11638_v14 = vpop.f32.mrb[101].mxu0 }
 0x4d9   :  { %v15818_v26 = vadd.f32 %v11594_v11, %v11593_v49  ;;  %11874 = vmatpush3.bf16.msra.mxu1 %v12546_v42  ;;  %v11596_v27 = vpop.f32.mrb[58].mxu1  ;;  %v15820_v33 = vadd.f32 %v11638_v14, %v11637_v16  ;;  %v11640_v40 = vpop.f32.mrb[102].mxu0  ;;  %v12583_v42 = vld [vmem:[%s16307_s7 + $0x970] sm:$0xff]  }
 0x4da   :  { %v11597_v23 = vpop.f32.mrb[59].mxu1  ;;  %v11641_v9 = vpop.f32.mrb[103].mxu0  ;;  %11875 = vmatprep.subr.bf16.mxu1 %v12549_v31  ;;  %v12582_v11 = vld [vmem:[%s16307_s7 + $0x7b0] sm:$0xff]   ;;  %v12585_v27 = vld [vmem:[%s16307_s7 + $0x7f8] sm:$0xff]  }
 0x4db   :  { %11940 = vmatpush3.bf16.msra.mxu0 %v12548_v55  ;;  %v9813_v31 = vadd.f32 %v15818_v26, %v11042_v19  ;;  %v12584_v26 = vld [vmem:[%s16307_s7 + $0x930] sm:$0xff]  }
 0x4dc   :  { %11941 = vmatprep.subr.bf16.mxu0 %v12551_v47 }
 0x4dd   :  { %11876 = vmatpush3.bf16.msra.mxu1 %v12550_v5 }
 0x4de   :  { %11877 = vmatprep.subr.bf16.mxu1 %v12553_v38  ;;  %v12587_v38 = vld [vmem:[%s16307_s7 + $0x978] sm:$0xff]  }
 0x4df   :  { %11942 = vmatpush3.bf16.msra.mxu0 %v12552_v32  ;;  %v12586_v32 = vld [vmem:[%s16307_s7 + $0x7b8] sm:$0xff]  }
 0x4e0   :  { %11943 = vmatprep.subr.bf16.mxu0 %v12555_v35 }
 0x4e1   :  { %11878 = vmatpush3.bf16.msra.mxu1 %v12554_v4  ;;  %v12589_v4 = vld [vmem:[%s16307_s7 + $0x8c0] sm:$0xff]  }
 0x4e2   :  { %11907 = vmatprep.subr.bf16.mxu1 %v12557_v46  ;;  %v12588_v46 = vld [vmem:[%s16307_s7 + $0x938] sm:$0xff]  }
 0x4e3   :  { %11944 = vmatpush3.bf16.msra.mxu0 %v12556_v58  ;;  %v12591_v58 = vld [vmem:[%s16307_s7 + $0xa40] sm:$0xff]  }
 0x4e4   :  { %10331 = vmatmul.mubr.bf16.vlgmr.msra.gmra.mrb[84].mxu1 %v15116_v15  ;;  %11973 = vmatprep.subr.bf16.mxu0 %v12559_v56  ;;  %v12564_v15 = vld [vmem:[%s16307_s7 + $0x908] sm:$0xff]  }
 0x4e5   :  { %11908 = vmatpush3.bf16.msra.mxu1 %v12558_v41  ;;  %10410 = vmatprep.mubr.bf16.mxu1 %v15174_v57  ;;  %v12567_v57 = vld [vmem:[%s16307_s7 + $0x950] sm:$0xff]   ;;  %v12593_v56 = vld [vmem:[%s16307_s7 + $0x8c8] sm:$0xff]   ;;  %v12592_v41 = vld [vmem:[%s16307_s7 + $0xa00] sm:$0xff]  }
 0x4e6   :  { %10451 = vmatmul.mubr.bf16.vlgmr.msra.gmra.mrb[128].mxu0 %v15163_v21  ;;  %11909 = vmatprep.subr.bf16.mxu1 %v12561_v17  ;;  %v12566_v21 = vld [vmem:[%s16307_s7 + $0x790] sm:$0xff]   ;;  %v12595_v17 = vld [vmem:[%s16307_s7 + $0xa48] sm:$0xff]  }
 0x4e7   :  { %11974 = vmatpush3.bf16.msra.mxu0 %v12560_v51  ;;  %10530 = vmatprep.mubr.bf16.mxu0 %v15207_v53  ;;  %v12568_v53 = vld [vmem:[%s16307_s7 + $0x910] sm:$0xff]   ;;  %v12594_v51 = vld [vmem:[%s16307_s7 + $0x888] sm:$0xff]  }
 0x4e8   :  { %11975 = vmatprep.subr.bf16.mxu0 %v12563_v60  ;;  %v12597_v60 = vld [vmem:[%s16307_s7 + $0x8d0] sm:$0xff]  }
 0x4e9   :  { %11910 = vmatpush3.bf16.msra.mxu1 %v12562_v1  ;;  %v12601_v1 = vld [vmem:[%s16307_s7 + $0x8d8] sm:$0xff]  }
 0x4ea   :  { %11911 = vmatprep.subr.bf16.mxu1 %v12565_v3  ;;  %v12603_v3 = vld [vmem:[%s16307_s7 + $0xa58] sm:$0xff]  }
 0x4eb   :  { %11976 = vmatpush3.bf16.msra.mxu0 %v12564_v15  ;;  %v12602_v15 = vld [vmem:[%s16307_s7 + $0x898] sm:$0xff]  }
 0x4ec   :  { %11977 = vmatprep.subr.bf16.mxu0 %v12567_v57  ;;  %v12605_v57 = vld [vmem:[%s16307_s7 + $0x8e0] sm:$0xff]  }
 0x4ed   :  { %11912 = vmatpush3.bf16.msra.mxu1 %v12566_v21  ;;  %v12604_v21 = vld [vmem:[%s16307_s7 + $0xa18] sm:$0xff]  }
 0x4ee   :  { %11913 = vmatprep.subr.bf16.mxu1 %v12569_v2  ;;  %v12607_v2 = vld [vmem:[%s16307_s7 + $0xa60] sm:$0xff]  }
 0x4ef   :  { %11978 = vmatpush3.bf16.msra.mxu0 %v12568_v53  ;;  %v12606_v53 = vld [vmem:[%s16307_s7 + $0x8a0] sm:$0xff]  }
 0x4f0   :  { %11979 = vmatprep.subr.bf16.mxu0 %v12571_v13  ;;  %v12609_v13 = vld [vmem:[%s16307_s7 + $0x8e8] sm:$0xff]  }
 0x4f1   :  { %11914 = vmatpush3.bf16.msra.mxu1 %v12570_v29  ;;  %v12608_v29 = vld [vmem:[%s16307_s7 + $0xa20] sm:$0xff]  }
 0x4f2   :  { %11915 = vmatprep.subr.bf16.mxu1 %v12573_v12  ;;  %v12611_v12 = vld [vmem:[%s16307_s7 + $0xa68] sm:$0xff]  }
 0x4f3   :  { %11980 = vmatpush3.bf16.msra.mxu0 %v12572_v61  ;;  %v12610_v61 = vld [vmem:[%s16307_s7 + $0x8a8] sm:$0xff]  }
 0x4f4   :  { %11981 = vmatprep.subr.bf16.mxu0 %v12575_v36  ;;  %v12613_v36 = vld [vmem:[%s16307_s7 + $0x8f0] sm:$0xff]  }
 0x4f5   :  { %11916 = vmatpush3.bf16.msra.mxu1 %v12574_v10 }
 0x4f6   :  { %11917 = vmatprep.subr.bf16.mxu1 %v12577_v18  ;;  %v12612_v18 = vld [vmem:[%s16307_s7 + $0xa28] sm:$0xff]  }
 0x4f7   :  { %11982 = vmatpush3.bf16.msra.mxu0 %v12576_v20  ;;  %v11615_v54 = vpop.f32.mrb[60].mxu1 }
 0x4f8   :  { %v11616_v22 = vpop.f32.mrb[61].mxu1  ;;  %11983 = vmatprep.subr.bf16.mxu0 %v12579_v59  ;;  %v12615_v59 = vld [vmem:[%s16307_s7 + $0xa70] sm:$0xff]  }
 0x4f9   :  { %v11617_v49 = vadd.f32 %v11616_v22, %v11615_v54  ;;  %v11681_v16 = vpop.f32.mrb[104].mxu0  ;;  %v11618_v55 = vpop.f32.mrb[62].mxu1  ;;  %11918 = vmatpush3.bf16.msra.mxu1 %v12578_v43  ;;  %v12614_v54 = vld [vmem:[%s16307_s7 + $0x8b0] sm:$0xff]  }
 0x4fa   :  { %v11682_v14 = vpop.f32.mrb[105].mxu0  ;;  %v11619_v47 = vpop.f32.mrb[63].mxu1  ;;  %11919 = vmatprep.subr.bf16.mxu1 %v12581_v50  ;;  %v12616_v55 = vld [vmem:[%s16307_s7 + $0xa30] sm:$0xff]  }
 0x4fb   :  { %v9853_v40 = vadd.f32 %v11617_v49, %v9813_v31  ;;  %v15932_v5 = vadd.f32 %v11682_v14, %v11681_v16  ;;  %v11684_v23 = vpop.f32.mrb[106].mxu0  ;;  %11984 = vmatpush3.bf16.msra.mxu0 %v12580_v62  ;;  %v12619_v14 = vld [vmem:[%s16307_s7 + $0xa78] sm:$0xff]  }
 0x4fc   :  { %v11685_v9 = vpop.f32.mrb[107].mxu0  ;;  %11985 = vmatprep.subr.bf16.mxu0 %v12583_v42  ;;  %v12617_v42 = vld [vmem:[%s16307_s7 + $0x8f8] sm:$0xff]  }
 0x4fd   :  { %11920 = vmatpush3.bf16.msra.mxu1 %v12582_v11  ;;  %v15944_v35 = vadd.f32 %v15820_v33, %v9853_v40  ;;  %v12590_v33 = vld [vmem:[%s16307_s7 + $0x880] sm:$0xff]   ;;  %v12618_v47 = vld [vmem:[%s16307_s7 + $0x8b8] sm:$0xff]   ;;  %v12625_v9 = vld [vmem:[%s16307_s7 + $0x9c8] sm:$0xff]  }
 0x4fe   :  { %11921 = vmatprep.subr.bf16.mxu1 %v12585_v27  ;;  %v12621_v40 = vld [vmem:[%s16307_s7 + $0x9c0] sm:$0xff]   ;;  %v12620_v23 = vld [vmem:[%s16307_s7 + $0xa38] sm:$0xff]  }
 0x4ff   :  { %11986 = vmatpush3.bf16.msra.mxu0 %v12584_v26  ;;  %v12623_v26 = vld [vmem:[%s16307_s7 + $0xb40] sm:$0xff]  }
 0x500   :  { %11987 = vmatprep.subr.bf16.mxu0 %v12587_v38  ;;  %v12624_v38 = vld [vmem:[%s16307_s7 + $0xb00] sm:$0xff]  }
 0x501   :  { %11922 = vmatpush3.bf16.msra.mxu1 %v12586_v32  ;;  %v12627_v32 = vld [vmem:[%s16307_s7 + $0xb48] sm:$0xff]  }
 0x502   :  { %11951 = vmatprep.subr.bf16.mxu1 %v12589_v4  ;;  %v12629_v4 = vld [vmem:[%s16307_s7 + $0x9d0] sm:$0xff]  }
 0x503   :  { %11988 = vmatpush3.bf16.msra.mxu0 %v12588_v46  ;;  %v12633_v46 = vld [vmem:[%s16307_s7 + $0x9d8] sm:$0xff]  }
 0x504   :  { %10411 = vmatmul.mubr.bf16.vlgmr.msra.gmra.mrb[88].mxu1 %v15131_v45  ;;  %12017 = vmatprep.subr.bf16.mxu0 %v12591_v58  ;;  %v12596_v45 = vld [vmem:[%s16307_s7 + $0xa08] sm:$0xff]   ;;  %v12635_v58 = vld [vmem:[%s16307_s7 + $0xb58] sm:$0xff]  }
 0x505   :  { %11952 = vmatpush3.bf16.msra.mxu1 %v12590_v33  ;;  %10490 = vmatprep.mubr.bf16.mxu1 %v15210_v7  ;;  %v12599_v7 = vld [vmem:[%s16307_s7 + $0xa50] sm:$0xff]   ;;  %v12634_v33 = vld [vmem:[%s16307_s7 + $0x998] sm:$0xff]  }
 0x506   :  { %10531 = vmatmul.mubr.bf16.vlgmr.msra.gmra.mrb[132].mxu0 %v15192_v30  ;;  %11953 = vmatprep.subr.bf16.mxu1 %v12593_v56  ;;  %v12598_v30 = vld [vmem:[%s16307_s7 + $0x890] sm:$0xff]   ;;  %v12637_v56 = vld [vmem:[%s16307_s7 + $0x9e0] sm:$0xff]  }
 0x507   :  { %12018 = vmatpush3.bf16.msra.mxu0 %v12592_v41  ;;  %10610 = vmatprep.mubr.bf16.mxu0 %v15232_v44  ;;  %v12600_v44 = vld [vmem:[%s16307_s7 + $0xa10] sm:$0xff]   ;;  %v12636_v41 = vld [vmem:[%s16307_s7 + $0xb18] sm:$0xff]  }
 0x508   :  { %12019 = vmatprep.subr.bf16.mxu0 %v12595_v17  ;;  %v12639_v17 = vld [vmem:[%s16307_s7 + $0xb60] sm:$0xff]  }
 0x509   :  { %11954 = vmatpush3.bf16.msra.mxu1 %v12594_v51  ;;  %v12638_v51 = vld [vmem:[%s16307_s7 + $0x9a0] sm:$0xff]  }
 0x50a   :  { %11955 = vmatprep.subr.bf16.mxu1 %v12597_v60  ;;  %v12641_v60 = vld [vmem:[%s16307_s7 + $0x9e8] sm:$0xff]  }
 0x50b   :  { %12020 = vmatpush3.bf16.msra.mxu0 %v12596_v45  ;;  %v12640_v45 = vld [vmem:[%s16307_s7 + $0xb20] sm:$0xff]  }
 0x50c   :  { %12021 = vmatprep.subr.bf16.mxu0 %v12599_v7  ;;  %v12643_v7 = vld [vmem:[%s16307_s7 + $0xb68] sm:$0xff]  }
 0x50d   :  { %11956 = vmatpush3.bf16.msra.mxu1 %v12598_v30  ;;  %v12642_v30 = vld [vmem:[%s16307_s7 + $0x9a8] sm:$0xff]  }
 0x50e   :  { %11957 = vmatprep.subr.bf16.mxu1 %v12601_v1  ;;  %v12645_v1 = vld [vmem:[%s16307_s7 + $0x9f0] sm:$0xff]  }
 0x50f   :  { %12022 = vmatpush3.bf16.msra.mxu0 %v12600_v44 }
 0x510   :  { %12023 = vmatprep.subr.bf16.mxu0 %v12603_v3  ;;  %v12644_v3 = vld [vmem:[%s16307_s7 + $0xb28] sm:$0xff]  }
 0x511   :  { %11958 = vmatpush3.bf16.msra.mxu1 %v12602_v15 }
 0x512   :  { %11959 = vmatprep.subr.bf16.mxu1 %v12605_v57  ;;  %v12647_v57 = vld [vmem:[%s16307_s7 + $0xb70] sm:$0xff]  }
 0x513   :  { %12024 = vmatpush3.bf16.msra.mxu0 %v12604_v21 }
 0x514   :  { %12025 = vmatprep.subr.bf16.mxu0 %v12607_v2 }
 0x515   :  { %11960 = vmatpush3.bf16.msra.mxu1 %v12606_v53 }
 0x516   :  { %11961 = vmatprep.subr.bf16.mxu1 %v12609_v13  ;;  %v12646_v13 = vld [vmem:[%s16307_s7 + $0x9b0] sm:$0xff]  }
 0x517   :  { %12026 = vmatpush3.bf16.msra.mxu0 %v12608_v29  ;;  %v11659_v10 = vpop.f32.mrb[64].mxu1 }
 0x518   :  { %v11660_v20 = vpop.f32.mrb[65].mxu1  ;;  %12027 = vmatprep.subr.bf16.mxu0 %v12611_v12 }
 0x519   :  { %v11661_v43 = vadd.f32 %v11660_v20, %v11659_v10  ;;  %v11725_v19 = vpop.f32.mrb[108].mxu0  ;;  %v11662_v50 = vpop.f32.mrb[66].mxu1  ;;  %11962 = vmatpush3.bf16.msra.mxu1 %v12610_v61  ;;  %v12649_v61 = vld [vmem:[%s16307_s7 + $0x9f8] sm:$0xff]   ;;  %v12648_v20 = vld [vmem:[%s16307_s7 + $0xb30] sm:$0xff]  }
 0x51a   :  { %v11726_v62 = vpop.f32.mrb[109].mxu0  ;;  %v11663_v22 = vpop.f32.mrb[67].mxu1  ;;  %11963 = vmatprep.subr.bf16.mxu1 %v12613_v36 }
 0x51b   :  { %v9933_v31 = vadd.f32 %v11661_v43, %v15944_v35  ;;  %v16038_v49 = vadd.f32 %v11726_v62, %v11725_v19  ;;  %v11728_v16 = vpop.f32.mrb[110].mxu0  ;;  %12028 = vmatpush3.bf16.msra.mxu0 %v12612_v18  ;;  %v12626_v35 = vld [vmem:[%s16307_s7 + $0x988] sm:$0xff]   ;;  %v12651_v43 = vld [vmem:[%s16307_s7 + $0xb78] sm:$0xff]   ;;  %v12654_v22 = vld [vmem:[%s16307_s7 + $0xa80] sm:$0xff]  }
 0x51c   :  { %v11729_v11 = vpop.f32.mrb[111].mxu0  ;;  %12029 = vmatprep.subr.bf16.mxu0 %v12615_v59  ;;  %v12650_v19 = vld [vmem:[%s16307_s7 + $0x9b8] sm:$0xff]   ;;  %v12659_v16 = vld [vmem:[%s16307_s7 + $0xad0] sm:$0xff]  }
 0x51d   :  { %11964 = vmatpush3.bf16.msra.mxu1 %v12614_v54  ;;  %v16050_v27 = vadd.f32 %v15932_v5, %v9933_v31  ;;  %v12622_v5 = vld [vmem:[%s16307_s7 + $0x980] sm:$0xff]   ;;  %v12652_v62 = vld [vmem:[%s16307_s7 + $0xb38] sm:$0xff]  }
 0x51e   :  { %11965 = vmatprep.subr.bf16.mxu1 %v12617_v42  ;;  %v12653_v54 = vld [vmem:[%s16307_s7 + $0xac0] sm:$0xff]   ;;  %v12656_v42 = vld [vmem:[%s16307_s7 + $0xac8] sm:$0xff]   ;;  %v12663_v11 = vld [vmem:[%s16307_s7 + $0xa98] sm:$0xff]  }
 0x51f   :  { %12030 = vmatpush3.bf16.msra.mxu0 %v12616_v55  ;;  %v12655_v31 = vld [vmem:[%s16307_s7 + $0xc00] sm:$0xff]   ;;  %v12661_v55 = vld [vmem:[%s16307_s7 + $0xc10] sm:$0xff]  }
 0x520   :  { %12031 = vmatprep.subr.bf16.mxu0 %v12619_v14  ;;  %v12665_v14 = vld [vmem:[%s16307_s7 + $0xae0] sm:$0xff]  }
 0x521   :  { %11966 = vmatpush3.bf16.msra.mxu1 %v12618_v47  ;;  %v12664_v47 = vld [vmem:[%s16307_s7 + $0xc18] sm:$0xff]  }
 0x522   :  { %11995 = vmatprep.subr.bf16.mxu1 %v12621_v40  ;;  %v12668_v40 = vld [vmem:[%s16307_s7 + $0xae8] sm:$0xff]  }
 0x523   :  { %12032 = vmatpush3.bf16.msra.mxu0 %v12620_v23  ;;  %v12667_v23 = vld [vmem:[%s16307_s7 + $0xc20] sm:$0xff]  }
 0x524   :  { %10491 = vmatmul.mubr.bf16.vlgmr.msra.gmra.mrb[92].mxu1 %v15213_v34  ;;  %12061 = vmatprep.subr.bf16.mxu0 %v12623_v26  ;;  %v12628_v34 = vld [vmem:[%s16307_s7 + $0xb08] sm:$0xff]  }
 0x525   :  { %11996 = vmatpush3.bf16.msra.mxu1 %v12622_v5  ;;  %10570 = vmatprep.mubr.bf16.mxu1 %v15256_v24  ;;  %v12631_v24 = vld [vmem:[%s16307_s7 + $0xb50] sm:$0xff]   ;;  %v12669_v26 = vld [vmem:[%s16307_s7 + $0xaa8] sm:$0xff]  }
 0x526   :  { %10611 = vmatmul.mubr.bf16.vlgmr.msra.gmra.mrb[136].mxu0 %v15235_v63  ;;  %11997 = vmatprep.subr.bf16.mxu1 %v12625_v9  ;;  %v12630_v63 = vld [vmem:[%s16307_s7 + $0x990] sm:$0xff]  }
 0x527   :  { %12062 = vmatpush3.bf16.msra.mxu0 %v12624_v38  ;;  %10690 = vmatprep.mubr.bf16.mxu0 %v15265_v28  ;;  %v12632_v28 = vld [vmem:[%s16307_s7 + $0xb10] sm:$0xff]   ;;  %v12670_v38 = vld [vmem:[%s16307_s7 + $0xc28] sm:$0xff]  }
 0x528   :  { %12063 = vmatprep.subr.bf16.mxu0 %v12627_v32  ;;  %v12671_v5 = vld [vmem:[%s16307_s7 + $0xaf0] sm:$0xff]  }
 0x529   :  { %11998 = vmatpush3.bf16.msra.mxu1 %v12626_v35 }
 0x52a   :  { %11999 = vmatprep.subr.bf16.mxu1 %v12629_v4 }
 0x52b   :  { %12064 = vmatpush3.bf16.msra.mxu0 %v12628_v34 }
 0x52c   :  { %12065 = vmatprep.subr.bf16.mxu0 %v12631_v24  ;;  %v12672_v24 = vld [vmem:[%s16307_s7 + $0xab0] sm:$0xff]  }
 0x52d   :  { %12000 = vmatpush3.bf16.msra.mxu1 %v12630_v63 }
 0x52e   :  { %12001 = vmatprep.subr.bf16.mxu1 %v12633_v46 }
 0x52f   :  { %12066 = vmatpush3.bf16.msra.mxu0 %v12632_v28  ;;  %v12674_v28 = vld [vmem:[%s16307_s7 + $0xaf8] sm:$0xff]  }
 0x530   :  { %12067 = vmatprep.subr.bf16.mxu0 %v12635_v58 }
 0x531   :  { %12002 = vmatpush3.bf16.msra.mxu1 %v12634_v33 }
 0x532   :  { %12003 = vmatprep.subr.bf16.mxu1 %v12637_v56 }
 0x533   :  { %12068 = vmatpush3.bf16.msra.mxu0 %v12636_v41  ;;  %v12673_v41 = vld [vmem:[%s16307_s7 + $0xc30] sm:$0xff]  }
 0x534   :  { %12069 = vmatprep.subr.bf16.mxu0 %v12639_v17 }
 0x535   :  { %12004 = vmatpush3.bf16.msra.mxu1 %v12638_v51  ;;  %v12675_v51 = vld [vmem:[%s16307_s7 + $0xab8] sm:$0xff]  }
 0x536   :  { %12005 = vmatprep.subr.bf16.mxu1 %v12641_v60 }
 0x537   :  { %12070 = vmatpush3.bf16.msra.mxu0 %v12640_v45  ;;  %v11703_v44 = vpop.f32.mrb[68].mxu1  ;;  %v12677_v45 = vld [vmem:[%s16307_s7 + $0xbc0] sm:$0xff]  }
 0x538   :  { %v11704_v15 = vpop.f32.mrb[69].mxu1  ;;  %12071 = vmatprep.subr.bf16.mxu0 %v12643_v7  ;;  %v12676_v7 = vld [vmem:[%s16307_s7 + $0xc38] sm:$0xff]  }
 0x539   :  { %v11705_v21 = vadd.f32 %v11704_v15, %v11703_v44  ;;  %v11769_v2 = vpop.f32.mrb[112].mxu0  ;;  %v11706_v53 = vpop.f32.mrb[70].mxu1  ;;  %12006 = vmatpush3.bf16.msra.mxu1 %v12642_v30  ;;  %v12678_v30 = vld [vmem:[%s16307_s7 + $0xb80] sm:$0xff]   ;;  %v12681_v44 = vld [vmem:[%s16307_s7 + $0xbd0] sm:$0xff]  }
 0x53a   :  { %v11770_v29 = vpop.f32.mrb[113].mxu0  ;;  %v11707_v12 = vpop.f32.mrb[71].mxu1  ;;  %12007 = vmatprep.subr.bf16.mxu1 %v12645_v1  ;;  %v12679_v1 = vld [vmem:[%s16307_s7 + $0xbc8] sm:$0xff]   ;;  %v12686_v15 = vld [vmem:[%s16307_s7 + $0xba0] sm:$0xff]  }
 0x53b   :  { %v10013_v36 = vadd.f32 %v11705_v21, %v16050_v27  ;;  %v16144_v10 = vadd.f32 %v11770_v29, %v11769_v2  ;;  %v11772_v18 = vpop.f32.mrb[114].mxu0  ;;  %12072 = vmatpush3.bf16.msra.mxu0 %v12644_v3  ;;  %v12666_v27 = vld [vmem:[%s16307_s7 + $0xaa0] sm:$0xff]   ;;  %v12682_v3 = vld [vmem:[%s16307_s7 + $0xb90] sm:$0xff]   ;;  %v12688_v21 = vld [vmem:[%s16307_s7 + $0xba8] sm:$0xff]  }
 0x53c   :  { %v11773_v59 = vpop.f32.mrb[115].mxu0  ;;  %12073 = vmatprep.subr.bf16.mxu0 %v12647_v57  ;;  %v12687_v57 = vld [vmem:[%s16307_s7 + $0xbe8] sm:$0xff]   ;;  %v12689_v2 = vld [vmem:[%s16307_s7 + $0xbf0] sm:$0xff]  }
 0x53d   :  { %12008 = vmatpush3.bf16.msra.mxu1 %v12646_v13  ;;  %v16156_v50 = vadd.f32 %v16038_v49, %v10013_v36  ;;  %v12657_v49 = vld [vmem:[%s16307_s7 + $0xa88] sm:$0xff]   ;;  %v12690_v36 = vld [vmem:[%s16307_s7 + $0xbb0] sm:$0xff]  }
 0x53e   :  { %12009 = vmatprep.subr.bf16.mxu1 %v12649_v61 }
 0x53f   :  { %12074 = vmatpush3.bf16.msra.mxu0 %v12648_v20  ;;  %v12691_v20 = vld [vmem:[%s16307_s7 + $0xbf8] sm:$0xff]  }
 0x540   :  { %12075 = vmatprep.subr.bf16.mxu0 %v12651_v43 }
 0x541   :  { %12010 = vmatpush3.bf16.msra.mxu1 %v12650_v19 }
 0x542   :  { %12039 = vmatprep.subr.bf16.mxu1 %v12653_v54  ;;  %v12692_v54 = vld [vmem:[%s16307_s7 + $0xbb8] sm:$0xff]  }
 0x543   :  { %12076 = vmatpush3.bf16.msra.mxu0 %v12652_v62 }
 0x544   :  { %10571 = vmatmul.mubr.bf16.vlgmr.msra.gmra.mrb[96].mxu1 %v15248_v52  ;;  %12216 = vmatprep.subr.bf16.mxu0 %v12697_v0  ;;  %v12658_v52 = vld [vmem:[%s16307_s7 + $0xc08] sm:$0xff]  }
 0x545   :  { %12040 = vmatpush3.bf16.msra.mxu1 %v12654_v22  ;;  %10650 = vmatprep.mubr.bf16.mxu1 %v15286_v25  ;;  %v12662_v25 = vld [vmem:[%s16307_s7 + $0xad8] sm:$0xff]  }
 0x546   :  { %10691 = vmatmul.mubr.bf16.vlgmr.msra.gmra.mrb[140].mxu0 %v15268_v39  ;;  %12041 = vmatprep.subr.bf16.mxu1 %v12656_v42  ;;  %v12660_v39 = vld [vmem:[%s16307_s7 + $0xa90] sm:$0xff]  }
 0x547   :  { %12217 = vmatpush3.bf16.msra.mxu0 %v12655_v31  ;;  %12232 = vmatprep.mubr.msk.bf16.mxu0 %vm12698_vm0, %v12697_v0 }
 0x548   :  { %12218 = vmatprep.subr.bf16.mxu0 %v12697_v0 }
 0x549   :  { %12042 = vmatpush3.bf16.msra.mxu1 %v12657_v49 }
 0x54a   :  { %12043 = vmatprep.subr.bf16.mxu1 %v12659_v16 }
 0x54b   :  { %12219 = vmatpush3.bf16.msra.mxu0 %v12658_v52 }
 0x54c   :  { %12220 = vmatprep.subr.bf16.mxu0 %v12697_v0 }
 0x54d   :  { %12044 = vmatpush3.bf16.msra.mxu1 %v12660_v39 }
 0x54e   :  { %12045 = vmatprep.subr.bf16.mxu1 %v12662_v25 }
 0x54f   :  { %12221 = vmatpush3.bf16.msra.mxu0 %v12661_v55 }
 0x550   :  { %12222 = vmatprep.subr.bf16.mxu0 %v12697_v0 }
 0x551   :  { %12046 = vmatpush3.bf16.msra.mxu1 %v12663_v11 }
 0x552   :  { %12047 = vmatprep.subr.bf16.mxu1 %v12665_v14 }
 0x553   :  { %12223 = vmatpush3.bf16.msra.mxu0 %v12664_v47 }
 0x554   :  { %12224 = vmatprep.subr.bf16.mxu0 %v12697_v0 }
 0x555   :  { %12048 = vmatpush3.bf16.msra.mxu1 %v12666_v27 }
 0x556   :  { %12049 = vmatprep.subr.bf16.mxu1 %v12668_v40 }
 0x557   :  { %12225 = vmatpush3.bf16.msra.mxu0 %v12667_v23  ;;  %v11747_v9 = vpop.f32.mrb[72].mxu1 }
 0x558   :  { %v11748_v32 = vpop.f32.mrb[73].mxu1  ;;  %12226 = vmatprep.subr.bf16.mxu0 %v12697_v0 }
 0x559   :  { %v11749_v35 = vadd.f32 %v11748_v32, %v11747_v9  ;;  %v11813_v4 = vpop.f32.mrb[116].mxu0  ;;  %v11750_v34 = vpop.f32.mrb[74].mxu1  ;;  %12050 = vmatpush3.bf16.msra.mxu1 %v12669_v26 }
 0x55a   :  { %v11814_v63 = vpop.f32.mrb[117].mxu0  ;;  %v11751_v46 = vpop.f32.mrb[75].mxu1  ;;  %12051 = vmatprep.subr.bf16.mxu1 %v12671_v5 }
 0x55b   :  { %v10093_v58 = vadd.f32 %v11749_v35, %v16156_v50  ;;  %v11815_v33 = vadd.f32 %v11814_v63, %v11813_v4  ;;  %v11816_v56 = vpop.f32.mrb[118].mxu0  ;;  %12227 = vmatpush3.bf16.msra.mxu0 %v12670_v38 }
 0x55c   :  { %v11817_v17 = vpop.f32.mrb[119].mxu0  ;;  %12228 = vmatprep.subr.bf16.mxu0 %v12697_v0 }
 0x55d   :  { %12052 = vmatpush3.bf16.msra.mxu1 %v12672_v24  ;;  %v10133_v60 = vadd.f32 %v16144_v10, %v10093_v58 }
 0x55e   :  { %12053 = vmatprep.subr.bf16.mxu1 %v12674_v28 }
 0x55f   :  { %12229 = vmatpush3.bf16.msra.mxu0 %v12673_v41 }
 0x560   :  { %12230 = vmatprep.subr.bf16.mxu0 %v12697_v0  ;;  %v12680_v0 = vld [vmem:[%s16307_s7 + $0xb88] sm:$0xff]  }
 0x561   :  { %12054 = vmatpush3.bf16.msra.mxu1 %v12675_v51 }
 0x562   :  { %12083 = vmatprep.subr.bf16.mxu1 %v12677_v45 }
 0x563   :  { %12231 = vmatpush3.bf16.msra.mxu0 %v12676_v7 }
 0x564   :  { %10651 = vmatmul.mubr.bf16.vlgmr.msra.gmra.mrb[100].mxu1 %v15271_v37  ;;  %v12683_v37 = vld [vmem:[%s16307_s7 + $0xbd8] sm:$0xff]  }
 0x565   :  { %12084 = vmatpush3.bf16.msra.mxu1 %v12678_v30  ;;  %10730 = vmatprep.mubr.bf16.mxu1 %v15307_v8  ;;  %v12685_v8 = vld [vmem:[%s16307_s7 + $0xbe0] sm:$0xff]  }
 0x566   :  { %12233 = vmatmul.mubr.bf16.vlgmr.msra.gmra.mrb[144].mxu0 %v15280_v6  ;;  %12085 = vmatprep.subr.bf16.mxu1 %v12679_v1  ;;  %v12684_v6 = vld [vmem:[%s16307_s7 + $0xb98] sm:$0xff]  }
 0x569   :  { %12086 = vmatpush3.bf16.msra.mxu1 %v12680_v0 }
 0x56a   :  { %12087 = vmatprep.subr.bf16.mxu1 %v12681_v44 }
 0x56d   :  { %12088 = vmatpush3.bf16.msra.mxu1 %v12682_v3 }
 0x56e   :  { %12089 = vmatprep.subr.bf16.mxu1 %v12683_v37 }
 0x571   :  { %12090 = vmatpush3.bf16.msra.mxu1 %v12684_v6 }
 0x572   :  { %12091 = vmatprep.subr.bf16.mxu1 %v12685_v8 }
 0x575   :  { %12092 = vmatpush3.bf16.msra.mxu1 %v12686_v15 }
 0x576   :  { %12093 = vmatprep.subr.bf16.mxu1 %v12687_v57 }
 0x577   :  { %v11791_v53 = vpop.f32.mrb[76].mxu1 }
 0x578   :  { %v11792_v13 = vpop.f32.mrb[77].mxu1 }
 0x579   :  { %v11793_v29 = vadd.f32 %v11792_v13, %v11791_v53  ;;  %v11857_v12 = vpop.f32.mrb[120].mxu0  ;;  %v11794_v61 = vpop.f32.mrb[78].mxu1  ;;  %12094 = vmatpush3.bf16.msra.mxu1 %v12688_v21 }
 0x57a   :  { %v11858_v10 = vpop.f32.mrb[121].mxu0  ;;  %v11795_v18 = vpop.f32.mrb[79].mxu1  ;;  %12095 = vmatprep.subr.bf16.mxu1 %v12689_v2 }
 0x57b   :  { %v10173_v59 = vadd.f32 %v11793_v29, %v10133_v60  ;;  %v11859_v43 = vadd.f32 %v11858_v10, %v11857_v12  ;;  %v11860_v19 = vpop.f32.mrb[122].mxu0 }
 0x57c   :  { %v11861_v50 = vpop.f32.mrb[123].mxu0 }
 0x57d   :  { %12096 = vmatpush3.bf16.msra.mxu1 %v12690_v36  ;;  %v10213_v62 = vadd.f32 %v11815_v33, %v10173_v59 }
 0x57e   :  { %12097 = vmatprep.subr.bf16.mxu1 %v12691_v20 }
 0x581   :  { %12098 = vmatpush3.bf16.msra.mxu1 %v12692_v54 }
 0x584   :  { %10731 = vmatmul.mubr.bf16.vlgmr.msra.gmra.mrb[104].mxu1 %v15297_v48 }
 0x597   :  { %v11835_v22 = vpop.f32.mrb[80].mxu1 }
 0x598   :  { %v11836_v42 = vpop.f32.mrb[81].mxu1 }
 0x599   :  { %v11837_v31 = vadd.f32 %v11836_v42, %v11835_v22  ;;  %v11901_v49 = vpop.f32.mrb[124].mxu0  ;;  %v11838_v16 = vpop.f32.mrb[82].mxu1 }
 0x59a   :  { %v11902_v52 = vpop.f32.mrb[125].mxu0  ;;  %v11839_v39 = vpop.f32.mrb[83].mxu1 }
 0x59b   :  { %v10253_v25 = vadd.f32 %v11837_v31, %v10213_v62  ;;  %v11903_v55 = vadd.f32 %v11902_v52, %v11901_v49  ;;  %v11904_v11 = vpop.f32.mrb[126].mxu0 }
 0x59c   :  { %v11905_v14 = vpop.f32.mrb[127].mxu0 }
 0x59d   :  { %v10293_v47 = vadd.f32 %v11859_v43, %v10253_v25 }
 0x5b7   :  { %v11879_v27 = vpop.f32.mrb[84].mxu1 }
 0x5b8   :  { %v11880_v40 = vpop.f32.mrb[85].mxu1 }
 0x5b9   :  { %v11881_v23 = vadd.f32 %v11880_v40, %v11879_v27  ;;  %v11945_v26 = vpop.f32.mrb[128].mxu0  ;;  %v11882_v5 = vpop.f32.mrb[86].mxu1 }
 0x5ba   :  { %v11946_v9 = vpop.f32.mrb[129].mxu0  ;;  %v11883_v38 = vpop.f32.mrb[87].mxu1 }
 0x5bb   :  { %v10333_v48 = vadd.f32 %v11881_v23, %v10293_v47  ;;  %v11947_v32 = vadd.f32 %v11946_v9, %v11945_v26  ;;  %v11948_v35 = vpop.f32.mrb[130].mxu0 }
 0x5bc   :  { %v11949_v4 = vpop.f32.mrb[131].mxu0 }
 0x5bd   :  { %v10373_v34 = vadd.f32 %v11903_v55, %v10333_v48 }
 0x5d7   :  { %v11923_v24 = vpop.f32.mrb[88].mxu1 }
 0x5d8   :  { %v11924_v63 = vpop.f32.mrb[89].mxu1 }
 0x5d9   :  { %v11925_v46 = vadd.f32 %v11924_v63, %v11923_v24  ;;  %v11989_v28 = vpop.f32.mrb[132].mxu0  ;;  %v11926_v58 = vpop.f32.mrb[90].mxu1 }
 0x5da   :  { %v11990_v33 = vpop.f32.mrb[133].mxu0  ;;  %v11927_v56 = vpop.f32.mrb[91].mxu1 }
 0x5db   :  { %v10413_v41 = vadd.f32 %v11925_v46, %v10373_v34  ;;  %v11991_v17 = vadd.f32 %v11990_v33, %v11989_v28  ;;  %v11992_v51 = vpop.f32.mrb[134].mxu0 }
 0x5dc   :  { %v11993_v60 = vpop.f32.mrb[135].mxu0 }
 0x5dd   :  { %v10453_v45 = vadd.f32 %v11947_v32, %v10413_v41 }
 0x5f7   :  { %v11967_v7 = vpop.f32.mrb[92].mxu1 }
 0x5f8   :  { %v11968_v30 = vpop.f32.mrb[93].mxu1 }
 0x5f9   :  { %v11969_v1 = vadd.f32 %v11968_v30, %v11967_v7  ;;  %v12033_v0 = vpop.f32.mrb[136].mxu0  ;;  %v11970_v44 = vpop.f32.mrb[94].mxu1 }
 0x5fa   :  { %v12034_v3 = vpop.f32.mrb[137].mxu0  ;;  %v11971_v37 = vpop.f32.mrb[95].mxu1 }
 0x5fb   :  { %v10493_v6 = vadd.f32 %v11969_v1, %v10453_v45  ;;  %v12035_v8 = vadd.f32 %v12034_v3, %v12033_v0  ;;  %v12036_v15 = vpop.f32.mrb[138].mxu0 }
 0x5fc   :  { %v12037_v57 = vpop.f32.mrb[139].mxu0 }
 0x5fd   :  { %v10533_v21 = vadd.f32 %v11991_v17, %v10493_v6 }
 0x617   :  { %v12011_v2 = vpop.f32.mrb[96].mxu1 }
 0x618   :  { %v12012_v53 = vpop.f32.mrb[97].mxu1 }
 0x619   :  { %v12013_v13 = vadd.f32 %v12012_v53, %v12011_v2  ;;  %v12077_v29 = vpop.f32.mrb[140].mxu0  ;;  %v12014_v12 = vpop.f32.mrb[98].mxu1 }
 0x61a   :  { %v12078_v61 = vpop.f32.mrb[141].mxu0  ;;  %v12015_v36 = vpop.f32.mrb[99].mxu1 }
 0x61b   :  { %v10573_v10 = vadd.f32 %v12013_v13, %v10533_v21  ;;  %v12079_v18 = vadd.f32 %v12078_v61, %v12077_v29  ;;  %v12080_v20 = vpop.f32.mrb[142].mxu0 }
 0x61c   :  { %v12081_v59 = vpop.f32.mrb[143].mxu0 }
 0x61d   :  { %v10613_v43 = vadd.f32 %v12035_v8, %v10573_v10 }
 0x637   :  { %v12055_v19 = vpop.f32.mrb[100].mxu1 }
 0x638   :  { %v12056_v50 = vpop.f32.mrb[101].mxu1 }
 0x639   :  { %v12057_v54 = vadd.f32 %v12056_v50, %v12055_v19  ;;  %v10772_v62 = vpop.f32.mrb[144].mxu0  ;;  %v12058_v22 = vpop.f32.mrb[102].mxu1 }
 0x63a   :  { %v12234_v42 = vpop.f32.mrb[145].mxu0  ;;  %v12059_v31 = vpop.f32.mrb[103].mxu1 }
 0x63b   :  { %v10653_v49 = vadd.f32 %v12057_v54, %v10613_v43  ;;  %v10775_v16 = vpop.f32.mrb[146].mxu0 }
 0x63c   :  { %v12235_v52 = vpop.f32.mrb[147].mxu0 }
 0x63d   :  { %v10693_v39 = vadd.f32 %v12079_v18, %v10653_v49 }
 0x657   :  { %v12099_v25 = vpop.f32.mrb[104].mxu1 }
 0x658   :  { %v12100_v55 = vpop.f32.mrb[105].mxu1 }
 0x659   :  { %v12101_v11 = vadd.f32 %v12100_v55, %v12099_v25  ;;  %v12102_v14 = vpop.f32.mrb[106].mxu1 }
 0x65a   :  { %v12103_v47 = vpop.f32.mrb[107].mxu1 }
 0x65b   :  { %v10733_v27 = vadd.f32 %v12101_v11, %v10693_v39 }
 0x65d   :  { %v10773_v40 = vadd.f32 %v10772_v62, %v10733_v27 }
 0x65f   :  { %10778 = vst [vmem:[%s16312_s9] sm:$0x3] %v10773_v40 }

</bundles_post_ra>
